<compile_context>
chip_gen: v6e
topology: v6e:2x2x1
jax: 0.10.0
libtpu: 0.0.40
codegen_flags: <defaults>
</compile_context>

<pallas_src>
import functools

import numpy as np
import jax
import jax.numpy as jnp
from jax.experimental import pallas as pl
from jax.experimental.pallas import tpu as pltpu


# ----------------------------------------------------------------------------
# Fused kernel: 2-layer LSTM recurrence + both (Toeplitz-folded) convs +
# all fully-connected chains + ensemble head, in a single invocation.
# ----------------------------------------------------------------------------
def _ensemble_kernel(
    xl_ref,        # (B*L, D)   f32  LSTM input rows, grouped (t, l) (seq-major)
    xc_ref,        # (B, Lp1*D) f32  zero-padded CNN input, flattened pos-major
    wih1_ref, whh1_ref, bl1_ref,      # LSTM layer 1: (D,4H) (H,4H) (1,4H)
    wih2_ref, whh2_ref, bl2_ref,      # LSTM layer 2: (H,4H) (H,4H) (1,4H)
    lfc1w_ref, lfc1b_ref, lfc2w_ref, lfc2b_ref,   # LSTM fc chain
    c1w_ref, c1b_ref, c2w_ref, c2b_ref,           # Toeplitz conv1 / conv2
    cfc1w_ref, cfc1b_ref, cfc2w_ref, cfc2b_ref,   # CNN fc chain
    hw1a_ref, hw1b_ref, hb1_ref, hw2_ref, hb2_ref, hw3_ref, hb3_ref,  # head
    out_ref,       # (B, 1)
    hflat_sc,      # (B, L*H) f32 scratch: flattened LSTM hidden history
    *, B, L, H,
):
    f32 = jnp.float32

    def mm(a, w_ref):
        w = w_ref[...]
        return jnp.dot(a.astype(w.dtype), w, preferred_element_type=f32)

    # ---------------- LSTM branch (nn.LSTM is seq-major: time axis == B) -----
    # Hoisted layer-1 input projection (no recurrent dependency).
    xw1 = mm(xl_ref[...], wih1_ref)            # (B*L, 4H)
    whh1 = whh1_ref[...]
    wih2 = wih2_ref[...]
    whh2 = whh2_ref[...]
    b1 = bl1_ref[...]
    b2 = bl2_ref[...]

    def cell(pre, h_prev, c_prev, whh):
        g = pre + jnp.dot(h_prev, whh, preferred_element_type=f32)
        # PyTorch gate order: input, forget, cell (g), output.
        i = jax.nn.sigmoid(g[:, 0 * H:1 * H])
        f = jax.nn.sigmoid(g[:, 1 * H:2 * H])
        gg = jnp.tanh(g[:, 2 * H:3 * H])
        o = jax.nn.sigmoid(g[:, 3 * H:4 * H])
        c_new = f * c_prev + i * gg
        h_new = o * jnp.tanh(c_new)
        return h_new, c_new

    h1 = jnp.zeros((L, H), f32)
    c1 = jnp.zeros((L, H), f32)
    h2 = jnp.zeros((L, H), f32)
    c2 = jnp.zeros((L, H), f32)
    for t in range(B):                         # fully unrolled recurrence
        h1, c1 = cell(xw1[t * L:(t + 1) * L, :] + b1, h1, c1, whh1)
        h2, c2 = cell(jnp.dot(h1, wih2, preferred_element_type=f32) + b2,
                      h2, c2, whh2)
        # Scatter step-t hidden states into the flat (B, L*H) layout expected
        # by lstm-fc1 (cheap masked lane-range stores, off the MXU path).
        for l in range(L):
            hflat_sc[t:t + 1, l * H:(l + 1) * H] = h2[l:l + 1, :]

    hflat = hflat_sc[...]                      # (B, L*H)
    x1 = jnp.maximum(mm(hflat, lfc1w_ref) + lfc1b_ref[...], 0.0)
    x1 = mm(x1, lfc2w_ref) + lfc2b_ref[...]

    # ---------------- CNN branch ---------------------------------------------
    # Conv layers are banded (Toeplitz) matmuls built host-side: padding and
    # im2col are folded into the weights, and each output is produced directly
    # in the flattened (position-major) layout the next layer consumes.
    a1 = jnp.maximum(mm(xc_ref[...], c1w_ref) + c1b_ref[...], 0.0)  # (B, L1*F)
    a2 = jnp.maximum(mm(a1, c2w_ref) + c2b_ref[...], 0.0)           # (B, L2*F)
    x2 = jnp.maximum(mm(a2, cfc1w_ref) + cfc1b_ref[...], 0.0)
    x2 = mm(x2, cfc2w_ref) + cfc2b_ref[...]

    # ---------------- ensemble head (concat realised as split weight) --------
    y = jnp.maximum(mm(x1, hw1a_ref) + mm(x2, hw1b_ref) + hb1_ref[...], 0.0)
    y = jnp.maximum(mm(y, hw2_ref) + hb2_ref[...], 0.0)
    y = mm(y, hw3_ref) + hb3_ref[...]
    out_ref[...] = y.astype(out_ref.dtype)


_WEIGHT_NAMES = ("wih1", "whh1", "bl1", "wih2", "whh2", "bl2",
                 "lfc1w", "lfc1b", "lfc2w", "lfc2b",
                 "c1w", "c1b", "c2w", "c2b",
                 "cfc1w", "cfc1b", "cfc2w", "cfc2b",
                 "hw1a", "hw1b", "hb1", "hw2", "hb2", "hw3", "hb3")


# ----------------------------------------------------------------------------
# Wrapper
# ----------------------------------------------------------------------------
def peptide_ensemble_forward(x, kp):
    """x: (B, L, D) float32.  kp: kernel-ready params from prepare_params."""
    x = x.astype(jnp.float32)
    B, L, D = x.shape
    H, p0 = kp["H"], kp["pad1"]

    # Host-side (free) layout work: LSTM rows grouped (time, batch) and the
    # zero-padded, position-major flattened CNN input.
    x_rows = x.reshape(B * L, D)
    xc = jnp.pad(x, ((0, 0), (p0, p0), (0, 0))).reshape(B, -1)

    weights = [kp[n] for n in _WEIGHT_NAMES]

    out = pl.pallas_call(
        functools.partial(_ensemble_kernel, B=B, L=L, H=H),
        out_shape=jax.ShapeDtypeStruct((B, 1), jnp.float32),
        scratch_shapes=[pltpu.VMEM((B, L * H), jnp.float32)],
        compiler_params=pltpu.CompilerParams(
            vmem_limit_bytes=16 * 1024 * 1024,   # actual footprint ~3 MiB
        ),
    )(x_rows, xc, *weights)
    return out


# ----------------------------------------------------------------------------
# Parameters: raw (torch-shaped) generation + kernel-layout preparation
# ----------------------------------------------------------------------------
def init_raw_params(key, cfg):
    """Deterministic random parameters with the PyTorch module's shapes."""
    L = cfg["length_peptide_sequence"]
    D = cfg["peptide_input_dim"]
    F = cfg["number_of_filters"]
    K0, K1 = cfg["kernel_sizes"]
    p0, p1 = cfg["padding_sizes"]
    H = cfg["hidden_size"]
    num_layers = cfg["num_layers"]
    assert num_layers == 2, "fused kernel is specialized to num_layers == 2"

    std = 0.05
    keys = iter(jax.random.split(key, 64))

    def nrm(shape):
        return (std * jax.random.normal(next(keys), shape)).astype(jnp.float32)

    raw = {}
    layers = []
    in_dim = D
    for _ in range(num_layers):
        layers.append(dict(w_ih=nrm((4 * H, in_dim)), w_hh=nrm((4 * H, H)),
                           b_ih=nrm((4 * H,)), b_hh=nrm((4 * H,))))
        in_dim = H
    raw["lstm_layers"] = layers
    lstm_out = L * H                                     # seq-major flatten
    raw["lstm_fc1_w"], raw["lstm_fc1_b"] = nrm((1024, lstm_out)), nrm((1024,))
    raw["lstm_fc2_w"], raw["lstm_fc2_b"] = nrm((256, 1024)), nrm((256,))

    raw["conv1_w"], raw["conv1_b"] = nrm((F, D, K0)), nrm((F,))
    raw["conv2_w"], raw["conv2_b"] = nrm((F, F, K1)), nrm((F,))
    lout1 = L + 2 * p0 - K0 + 1
    lout2 = lout1 + 2 * p1 - K1 + 1
    cnn_out = F * lout2
    raw["cnn_fc1_w"], raw["cnn_fc1_b"] = nrm((556, cnn_out)), nrm((556,))
    raw["cnn_fc2_w"], raw["cnn_fc2_b"] = nrm((256, 556)), nrm((256,))

    raw["fc1_w"], raw["fc1_b"] = nrm((256, 512)), nrm((256,))
    raw["fc2_w"], raw["fc2_b"] = nrm((64, 256)), nrm((64,))
    raw["fc3_w"], raw["fc3_b"] = nrm((1, 64)), nrm((1,))
    return raw


def prepare_params(raw, cfg):
    """Convert torch-shaped parameters into kernel-ready layouts."""
    L = cfg["length_peptide_sequence"]
    D = cfg["peptide_input_dim"]
    F = cfg["number_of_filters"]
    K0, K1 = cfg["kernel_sizes"]
    p0, p1 = cfg["padding_sizes"]
    H = cfg["hidden_size"]
    lout1 = L + 2 * p0 - K0 + 1
    lout2 = lout1 + 2 * p1 - K1 + 1
    Lp1 = L + 2 * p0
    bf16 = jnp.bfloat16

    kp = {}
    l1, l2 = raw["lstm_layers"]
    kp["wih1"] = l1["w_ih"].T                                       # (D, 4H)
    kp["whh1"] = l1["w_hh"].T                                       # (H, 4H)
    kp["bl1"] = (l1["b_ih"] + l1["b_hh"]).reshape(1, 4 * H)
    kp["wih2"] = l2["w_ih"].T                                       # (H, 4H)
    kp["whh2"] = l2["w_hh"].T
    kp["bl2"] = (l2["b_ih"] + l2["b_hh"]).reshape(1, 4 * H)

    kp["lfc1w"] = raw["lstm_fc1_w"].T.astype(bf16)                  # (L*H, 1024)
    kp["lfc1b"] = raw["lstm_fc1_b"].reshape(1, -1)
    kp["lfc2w"] = raw["lstm_fc2_w"].T.astype(bf16)                  # (1024, 256)
    kp["lfc2b"] = raw["lstm_fc2_b"].reshape(1, -1)

    # ---- banded (Toeplitz) conv weights: padding + im2col folded in ----
    c1 = np.asarray(raw["conv1_w"])                                 # (F, D, K0)
    W1 = np.zeros((Lp1 * D, lout1 * F), np.float32)
    for j in range(lout1):
        for k in range(K0):
            m = j + k                                    # position in padded input
            W1[m * D:(m + 1) * D, j * F:(j + 1) * F] = c1[:, :, k].T
    kp["c1w"] = jnp.asarray(W1).astype(bf16)
    kp["c1b"] = jnp.tile(raw["conv1_b"], lout1).reshape(1, -1)

    c2 = np.asarray(raw["conv2_w"])                                 # (F, F, K1)
    W2 = np.zeros((lout1 * F, lout2 * F), np.float32)
    for j in range(lout2):
        for k in range(K1):
            m = j + k - p1                               # position in conv1 output
            if 0 <= m < lout1:                           # clipped band == zero pad
                W2[m * F:(m + 1) * F, j * F:(j + 1) * F] = c2[:, :, k].T
    kp["c2w"] = jnp.asarray(W2).astype(bf16)
    kp["c2b"] = jnp.tile(raw["conv2_b"], lout2).reshape(1, -1)

    # CNN fc1: torch flatten is channel-major (f*lout2 + j); kernel layout of
    # the conv output is position-major (j*F + f) -> permute rows to match.
    w = raw["cnn_fc1_w"].T                                          # (F*lout2, 556)
    w = w.reshape(F, lout2, -1).transpose(1, 0, 2).reshape(lout2 * F, -1)
    kp["cfc1w"] = w.astype(bf16)
    kp["cfc1b"] = raw["cnn_fc1_b"].reshape(1, -1)
    kp["cfc2w"] = raw["cnn_fc2_w"].T.astype(bf16)                   # (556, 256)
    kp["cfc2b"] = raw["cnn_fc2_b"].reshape(1, -1)

    # Ensemble head: concat realised as split weight (x1 rows first).
    n_x1 = raw["lstm_fc2_w"].shape[0]
    w1 = raw["fc1_w"].T                                             # (512, 256)
    kp["hw1a"] = w1[:n_x1, :].astype(bf16)
    kp["hw1b"] = w1[n_x1:, :].astype(bf16)
    kp["hb1"] = raw["fc1_b"].reshape(1, -1)
    kp["hw2"] = raw["fc2_w"].T                                      # (256, 64)
    kp["hb2"] = raw["fc2_b"].reshape(1, -1)
    kp["hw3"] = raw["fc3_w"].T                                      # (64, 1)
    kp["hb3"] = raw["fc3_b"].reshape(1, -1)

    kp["H"], kp["pad1"] = H, p0
    return kp


# ----------------------------------------------------------------------------
# Pure-JAX reference (mirrors the PyTorch module, inference mode, f32)
# ----------------------------------------------------------------------------
def _lstm_layer_ref(inp, w_ih, w_hh, b_ih, b_hh):
    HI = jax.lax.Precision.HIGHEST
    N = inp.shape[1]
    Hh = w_hh.shape[1]

    def step(carry, x_t):
        h, c = carry
        gates = (jnp.dot(x_t, w_ih.T, precision=HI)
                 + jnp.dot(h, w_hh.T, precision=HI) + b_ih + b_hh)
        i = jax.nn.sigmoid(gates[:, 0 * Hh:1 * Hh])
        f = jax.nn.sigmoid(gates[:, 1 * Hh:2 * Hh])
        g = jnp.tanh(gates[:, 2 * Hh:3 * Hh])
        o = jax.nn.sigmoid(gates[:, 3 * Hh:4 * Hh])
        c = f * c + i * g
        h = o * jnp.tanh(c)
        return (h, c), h

    init = (jnp.zeros((N, Hh), jnp.float32), jnp.zeros((N, Hh), jnp.float32))
    _, ys = jax.lax.scan(step, init, inp)
    return ys


def _reference_forward(x, raw, cfg):
    HI = jax.lax.Precision.HIGHEST
    B = x.shape[0]

    def lin(v, w, b):
        return jnp.dot(v, w.T, precision=HI) + b

    # LSTM branch (nn.LSTM seq-major: (B, L, D) == (time, batch, feat)).
    h = x
    for layer in raw["lstm_layers"]:
        h = _lstm_layer_ref(h, layer["w_ih"], layer["w_hh"],
                            layer["b_ih"], layer["b_hh"])
    x1 = h.reshape(B, -1)
    x1 = jax.nn.relu(lin(x1, raw["lstm_fc1_w"], raw["lstm_fc1_b"]))
    x1 = lin(x1, raw["lstm_fc2_w"], raw["lstm_fc2_b"])

    # CNN branch.
    def conv(v, w, b, pad):
        out = jax.lax.conv_general_dilated(
            v, w, window_strides=(1,), padding=[(pad, pad)],
            dimension_numbers=("NCH", "OIH", "NCH"), precision=HI)
        return out + b.reshape(1, -1, 1)

    p0, p1 = cfg["padding_sizes"]
    xc = jnp.transpose(x, (0, 2, 1))
    xc = jax.nn.relu(conv(xc, raw["conv1_w"], raw["conv1_b"], p0))
    xc = jax.nn.relu(conv(xc, raw["conv2_w"], raw["conv2_b"], p1))
    x2 = xc.reshape(B, -1)
    x2 = jax.nn.relu(lin(x2, raw["cnn_fc1_w"], raw["cnn_fc1_b"]))
    x2 = lin(x2, raw["cnn_fc2_w"], raw["cnn_fc2_b"])

    # Ensemble head.
    xcat = jnp.concatenate([x1, x2], axis=1)
    y = jax.nn.relu(lin(xcat, raw["fc1_w"], raw["fc1_b"]))
    y = jax.nn.relu(lin(y, raw["fc2_w"], raw["fc2_b"]))
    y = lin(y, raw["fc3_w"], raw["fc3_b"])
    return y


# ----------------------------------------------------------------------------
if __name__ == "__main__":
    cfg = dict(
        batch_size=2,
        length_peptide_sequence=8,
        peptide_input_dim=16,
        number_of_filters=32,
        kernel_sizes=(3, 3),
        padding_sizes=(1, 1),
        dropout_rate=0.1,       # identity at inference
        hidden_size=32,
        num_layers=2,
    )

    key = jax.random.PRNGKey(0)
    k_x, k_p = jax.random.split(key)
    x = jax.random.normal(
        k_x,
        (cfg["batch_size"], cfg["length_peptide_sequence"],
         cfg["peptide_input_dim"]),
        dtype=jnp.float32)

    raw = init_raw_params(k_p, cfg)
    kp = prepare_params(raw, cfg)

    out = peptide_ensemble_forward(x, kp)
    out = jax.block_until_ready(out)

    assert out.shape == (cfg["batch_size"], 1), out.shape
    assert bool(jnp.all(jnp.isfinite(out)))

    ref = _reference_forward(x, raw, cfg)
    # Tolerance accommodates the bf16 weight storage of the large FC / conv
    # matrices (f32 MXU accumulation); real layout bugs are orders larger.
    assert bool(jnp.allclose(out, ref, rtol=2e-2, atol=3e-3)), (out, ref)

    print("KERNEL_OK")
</pallas_src>

<mosaic_0001>
module attributes {stable_mosaic.version = 11 : i64} {
  func.func @_ensemble_kernel(%arg0: memref<16x16xf32, #tpu.memory_space<vmem>>, %arg1: memref<2x160xf32, #tpu.memory_space<vmem>>, %arg2: memref<16x128xf32, #tpu.memory_space<vmem>>, %arg3: memref<32x128xf32, #tpu.memory_space<vmem>>, %arg4: memref<1x128xf32, #tpu.memory_space<vmem>>, %arg5: memref<32x128xf32, #tpu.memory_space<vmem>>, %arg6: memref<32x128xf32, #tpu.memory_space<vmem>>, %arg7: memref<1x128xf32, #tpu.memory_space<vmem>>, %arg8: memref<256x1024xbf16, #tpu.memory_space<vmem>>, %arg9: memref<1x1024xf32, #tpu.memory_space<vmem>>, %arg10: memref<1024x256xbf16, #tpu.memory_space<vmem>>, %arg11: memref<1x256xf32, #tpu.memory_space<vmem>>, %arg12: memref<160x256xbf16, #tpu.memory_space<vmem>>, %arg13: memref<1x256xf32, #tpu.memory_space<vmem>>, %arg14: memref<256x256xbf16, #tpu.memory_space<vmem>>, %arg15: memref<1x256xf32, #tpu.memory_space<vmem>>, %arg16: memref<256x556xbf16, #tpu.memory_space<vmem>>, %arg17: memref<1x556xf32, #tpu.memory_space<vmem>>, %arg18: memref<556x256xbf16, #tpu.memory_space<vmem>>, %arg19: memref<1x256xf32, #tpu.memory_space<vmem>>, %arg20: memref<256x256xbf16, #tpu.memory_space<vmem>>, %arg21: memref<256x256xbf16, #tpu.memory_space<vmem>>, %arg22: memref<1x256xf32, #tpu.memory_space<vmem>>, %arg23: memref<256x64xf32, #tpu.memory_space<vmem>>, %arg24: memref<1x64xf32, #tpu.memory_space<vmem>>, %arg25: memref<64x1xf32, #tpu.memory_space<vmem>>, %arg26: memref<1x1xf32, #tpu.memory_space<vmem>>, %arg27: memref<2x1xf32, #tpu.memory_space<vmem>>, %arg28: memref<2x256xf32, #tpu.memory_space<vmem>>) attributes {dimension_semantics = [], scalar_prefetch = 0 : i64, scratch_operands = 1 : i64, tpu.core_type = #tpu.core_type<tc>} {
    %c0 = arith.constant 0 : index
    %c0_0 = arith.constant 0 : index
    %0 = vector.load %arg0[%c0, %c0_0] : memref<16x16xf32, #tpu.memory_space<vmem>>, vector<16x16xf32>
    %c0_1 = arith.constant 0 : index
    %c0_2 = arith.constant 0 : index
    %1 = vector.load %arg2[%c0_1, %c0_2] : memref<16x128xf32, #tpu.memory_space<vmem>>, vector<16x128xf32>
    %cst = arith.constant dense<0.000000e+00> : vector<16x128xf32>
    %2 = tpu.matmul %0, %1, %cst {dimension_numbers = #tpu.dot_dimension_numbers<[1], [0], [0], [1], [0, 0, 1, 1], [], []>} : vector<16x16xf32>, vector<16x128xf32>, vector<16x128xf32> -> vector<16x128xf32>
    %c0_3 = arith.constant 0 : index
    %c0_4 = arith.constant 0 : index
    %3 = vector.load %arg3[%c0_3, %c0_4] : memref<32x128xf32, #tpu.memory_space<vmem>>, vector<32x128xf32>
    %c0_5 = arith.constant 0 : index
    %c0_6 = arith.constant 0 : index
    %4 = vector.load %arg5[%c0_5, %c0_6] : memref<32x128xf32, #tpu.memory_space<vmem>>, vector<32x128xf32>
    %c0_7 = arith.constant 0 : index
    %c0_8 = arith.constant 0 : index
    %5 = vector.load %arg6[%c0_7, %c0_8] : memref<32x128xf32, #tpu.memory_space<vmem>>, vector<32x128xf32>
    %c0_9 = arith.constant 0 : index
    %c0_10 = arith.constant 0 : index
    %6 = vector.load %arg4[%c0_9, %c0_10] : memref<1x128xf32, #tpu.memory_space<vmem>>, vector<1x128xf32>
    %c0_11 = arith.constant 0 : index
    %c0_12 = arith.constant 0 : index
    %7 = vector.load %arg7[%c0_11, %c0_12] : memref<1x128xf32, #tpu.memory_space<vmem>>, vector<1x128xf32>
    %cst_13 = arith.constant 0.000000e+00 : f32
    %8 = vector.broadcast %cst_13 : f32 to vector<8x32xf32>
    %cst_14 = arith.constant 0.000000e+00 : f32
    %9 = vector.broadcast %cst_14 : f32 to vector<8x32xf32>
    %cst_15 = arith.constant 0.000000e+00 : f32
    %10 = vector.broadcast %cst_15 : f32 to vector<8x32xf32>
    %cst_16 = arith.constant 0.000000e+00 : f32
    %11 = vector.broadcast %cst_16 : f32 to vector<8x32xf32>
    %12 = vector.extract_strided_slice %2 {offsets = [0, 0], sizes = [8, 128], strides = [1, 1]} : vector<16x128xf32> to vector<8x128xf32>
    %13 = vector.broadcast %6 : vector<1x128xf32> to vector<8x128xf32>
    %14 = arith.addf %12, %13 : vector<8x128xf32>
    %cst_17 = arith.constant dense<0.000000e+00> : vector<8x128xf32>
    %15 = tpu.matmul %8, %3, %cst_17 {dimension_numbers = #tpu.dot_dimension_numbers<[1], [0], [0], [1], [0, 0, 1, 1], [], []>} : vector<8x32xf32>, vector<32x128xf32>, vector<8x128xf32> -> vector<8x128xf32>
    %16 = arith.addf %14, %15 : vector<8x128xf32>
    %17 = vector.extract_strided_slice %16 {offsets = [0, 0], sizes = [8, 32], strides = [1, 1]} : vector<8x128xf32> to vector<8x32xf32>
    %18 = arith.negf %17 : vector<8x32xf32>
    %19 = math.exp %18 : vector<8x32xf32>
    %cst_18 = arith.constant 1.000000e+00 : f32
    %20 = vector.broadcast %cst_18 : f32 to vector<8x32xf32>
    %21 = arith.addf %20, %19 : vector<8x32xf32>
    %22 = arith.divf %20, %21 : vector<8x32xf32>
    %23 = vector.extract_strided_slice %16 {offsets = [0, 32], sizes = [8, 32], strides = [1, 1]} : vector<8x128xf32> to vector<8x32xf32>
    %24 = arith.negf %23 : vector<8x32xf32>
    %25 = math.exp %24 : vector<8x32xf32>
    %cst_19 = arith.constant 1.000000e+00 : f32
    %26 = vector.broadcast %cst_19 : f32 to vector<8x32xf32>
    %27 = arith.addf %26, %25 : vector<8x32xf32>
    %28 = arith.divf %26, %27 : vector<8x32xf32>
    %29 = vector.extract_strided_slice %16 {offsets = [0, 64], sizes = [8, 32], strides = [1, 1]} : vector<8x128xf32> to vector<8x32xf32>
    %30 = math.tanh %29 : vector<8x32xf32>
    %31 = vector.extract_strided_slice %16 {offsets = [0, 96], sizes = [8, 32], strides = [1, 1]} : vector<8x128xf32> to vector<8x32xf32>
    %32 = arith.negf %31 : vector<8x32xf32>
    %33 = math.exp %32 : vector<8x32xf32>
    %cst_20 = arith.constant 1.000000e+00 : f32
    %34 = vector.broadcast %cst_20 : f32 to vector<8x32xf32>
    %35 = arith.addf %34, %33 : vector<8x32xf32>
    %36 = arith.divf %34, %35 : vector<8x32xf32>
    %37 = arith.mulf %28, %9 : vector<8x32xf32>
    %38 = arith.mulf %22, %30 : vector<8x32xf32>
    %39 = arith.addf %37, %38 : vector<8x32xf32>
    %40 = math.tanh %39 : vector<8x32xf32>
    %41 = arith.mulf %36, %40 : vector<8x32xf32>
    %cst_21 = arith.constant dense<0.000000e+00> : vector<8x128xf32>
    %42 = tpu.matmul %41, %4, %cst_21 {dimension_numbers = #tpu.dot_dimension_numbers<[1], [0], [0], [1], [0, 0, 1, 1], [], []>} : vector<8x32xf32>, vector<32x128xf32>, vector<8x128xf32> -> vector<8x128xf32>
    %43 = vector.broadcast %7 : vector<1x128xf32> to vector<8x128xf32>
    %44 = arith.addf %42, %43 : vector<8x128xf32>
    %cst_22 = arith.constant dense<0.000000e+00> : vector<8x128xf32>
    %45 = tpu.matmul %10, %5, %cst_22 {dimension_numbers = #tpu.dot_dimension_numbers<[1], [0], [0], [1], [0, 0, 1, 1], [], []>} : vector<8x32xf32>, vector<32x128xf32>, vector<8x128xf32> -> vector<8x128xf32>
    %46 = arith.addf %44, %45 : vector<8x128xf32>
    %47 = vector.extract_strided_slice %46 {offsets = [0, 0], sizes = [8, 32], strides = [1, 1]} : vector<8x128xf32> to vector<8x32xf32>
    %48 = arith.negf %47 : vector<8x32xf32>
    %49 = math.exp %48 : vector<8x32xf32>
    %cst_23 = arith.constant 1.000000e+00 : f32
    %50 = vector.broadcast %cst_23 : f32 to vector<8x32xf32>
    %51 = arith.addf %50, %49 : vector<8x32xf32>
    %52 = arith.divf %50, %51 : vector<8x32xf32>
    %53 = vector.extract_strided_slice %46 {offsets = [0, 32], sizes = [8, 32], strides = [1, 1]} : vector<8x128xf32> to vector<8x32xf32>
    %54 = arith.negf %53 : vector<8x32xf32>
    %55 = math.exp %54 : vector<8x32xf32>
    %cst_24 = arith.constant 1.000000e+00 : f32
    %56 = vector.broadcast %cst_24 : f32 to vector<8x32xf32>
    %57 = arith.addf %56, %55 : vector<8x32xf32>
    %58 = arith.divf %56, %57 : vector<8x32xf32>
    %59 = vector.extract_strided_slice %46 {offsets = [0, 64], sizes = [8, 32], strides = [1, 1]} : vector<8x128xf32> to vector<8x32xf32>
    %60 = math.tanh %59 : vector<8x32xf32>
    %61 = vector.extract_strided_slice %46 {offsets = [0, 96], sizes = [8, 32], strides = [1, 1]} : vector<8x128xf32> to vector<8x32xf32>
    %62 = arith.negf %61 : vector<8x32xf32>
    %63 = math.exp %62 : vector<8x32xf32>
    %cst_25 = arith.constant 1.000000e+00 : f32
    %64 = vector.broadcast %cst_25 : f32 to vector<8x32xf32>
    %65 = arith.addf %64, %63 : vector<8x32xf32>
    %66 = arith.divf %64, %65 : vector<8x32xf32>
    %67 = arith.mulf %58, %11 : vector<8x32xf32>
    %68 = arith.mulf %52, %60 : vector<8x32xf32>
    %69 = arith.addf %67, %68 : vector<8x32xf32>
    %70 = math.tanh %69 : vector<8x32xf32>
    %71 = arith.mulf %66, %70 : vector<8x32xf32>
    %72 = vector.extract_strided_slice %71 {offsets = [0, 0], sizes = [1, 32], strides = [1, 1]} : vector<8x32xf32> to vector<1x32xf32>
    %c0_26 = arith.constant 0 : index
    %c0_27 = arith.constant 0 : index
    %73 = vector.load %arg28[%c0_26, %c0_27] : memref<2x256xf32, #tpu.memory_space<vmem>>, vector<1x32xf32>
    tpu.vector_store %arg28[%c0_26, %c0_27], %72 {strides = array<i32>} : memref<2x256xf32, #tpu.memory_space<vmem>>, vector<1x32xf32>,
    %74 = vector.extract_strided_slice %71 {offsets = [1, 0], sizes = [1, 32], strides = [1, 1]} : vector<8x32xf32> to vector<1x32xf32>
    %c0_28 = arith.constant 0 : index
    %c32 = arith.constant 32 : index
    %75 = vector.load %arg28[%c0_28, %c32] : memref<2x256xf32, #tpu.memory_space<vmem>>, vector<1x32xf32>
    tpu.vector_store %arg28[%c0_28, %c32], %74 {strides = array<i32>} : memref<2x256xf32, #tpu.memory_space<vmem>>, vector<1x32xf32>,
    %76 = vector.extract_strided_slice %71 {offsets = [2, 0], sizes = [1, 32], strides = [1, 1]} : vector<8x32xf32> to vector<1x32xf32>
    %c0_29 = arith.constant 0 : index
    %c64 = arith.constant 64 : index
    %77 = vector.load %arg28[%c0_29, %c64] : memref<2x256xf32, #tpu.memory_space<vmem>>, vector<1x32xf32>
    tpu.vector_store %arg28[%c0_29, %c64], %76 {strides = array<i32>} : memref<2x256xf32, #tpu.memory_space<vmem>>, vector<1x32xf32>,
    %78 = vector.extract_strided_slice %71 {offsets = [3, 0], sizes = [1, 32], strides = [1, 1]} : vector<8x32xf32> to vector<1x32xf32>
    %c0_30 = arith.constant 0 : index
    %c96 = arith.constant 96 : index
    %79 = vector.load %arg28[%c0_30, %c96] : memref<2x256xf32, #tpu.memory_space<vmem>>, vector<1x32xf32>
    tpu.vector_store %arg28[%c0_30, %c96], %78 {strides = array<i32>} : memref<2x256xf32, #tpu.memory_space<vmem>>, vector<1x32xf32>,
    %80 = vector.extract_strided_slice %71 {offsets = [4, 0], sizes = [1, 32], strides = [1, 1]} : vector<8x32xf32> to vector<1x32xf32>
    %c0_31 = arith.constant 0 : index
    %c128 = arith.constant 128 : index
    %81 = vector.load %arg28[%c0_31, %c128] : memref<2x256xf32, #tpu.memory_space<vmem>>, vector<1x32xf32>
    tpu.vector_store %arg28[%c0_31, %c128], %80 {strides = array<i32>} : memref<2x256xf32, #tpu.memory_space<vmem>>, vector<1x32xf32>,
    %82 = vector.extract_strided_slice %71 {offsets = [5, 0], sizes = [1, 32], strides = [1, 1]} : vector<8x32xf32> to vector<1x32xf32>
    %c0_32 = arith.constant 0 : index
    %c160 = arith.constant 160 : index
    %83 = vector.load %arg28[%c0_32, %c160] : memref<2x256xf32, #tpu.memory_space<vmem>>, vector<1x32xf32>
    tpu.vector_store %arg28[%c0_32, %c160], %82 {strides = array<i32>} : memref<2x256xf32, #tpu.memory_space<vmem>>, vector<1x32xf32>,
    %84 = vector.extract_strided_slice %71 {offsets = [6, 0], sizes = [1, 32], strides = [1, 1]} : vector<8x32xf32> to vector<1x32xf32>
    %c0_33 = arith.constant 0 : index
    %c192 = arith.constant 192 : index
    %85 = vector.load %arg28[%c0_33, %c192] : memref<2x256xf32, #tpu.memory_space<vmem>>, vector<1x32xf32>
    tpu.vector_store %arg28[%c0_33, %c192], %84 {strides = array<i32>} : memref<2x256xf32, #tpu.memory_space<vmem>>, vector<1x32xf32>,
    %86 = vector.extract_strided_slice %71 {offsets = [7, 0], sizes = [1, 32], strides = [1, 1]} : vector<8x32xf32> to vector<1x32xf32>
    %c0_34 = arith.constant 0 : index
    %c224 = arith.constant 224 : index
    %87 = vector.load %arg28[%c0_34, %c224] : memref<2x256xf32, #tpu.memory_space<vmem>>, vector<1x32xf32>
    tpu.vector_store %arg28[%c0_34, %c224], %86 {strides = array<i32>} : memref<2x256xf32, #tpu.memory_space<vmem>>, vector<1x32xf32>,
    %88 = vector.extract_strided_slice %2 {offsets = [8, 0], sizes = [8, 128], strides = [1, 1]} : vector<16x128xf32> to vector<8x128xf32>
    %89 = vector.broadcast %6 : vector<1x128xf32> to vector<8x128xf32>
    %90 = arith.addf %88, %89 : vector<8x128xf32>
    %cst_35 = arith.constant dense<0.000000e+00> : vector<8x128xf32>
    %91 = tpu.matmul %41, %3, %cst_35 {dimension_numbers = #tpu.dot_dimension_numbers<[1], [0], [0], [1], [0, 0, 1, 1], [], []>} : vector<8x32xf32>, vector<32x128xf32>, vector<8x128xf32> -> vector<8x128xf32>
    %92 = arith.addf %90, %91 : vector<8x128xf32>
    %93 = vector.extract_strided_slice %92 {offsets = [0, 0], sizes = [8, 32], strides = [1, 1]} : vector<8x128xf32> to vector<8x32xf32>
    %94 = arith.negf %93 : vector<8x32xf32>
    %95 = math.exp %94 : vector<8x32xf32>
    %cst_36 = arith.constant 1.000000e+00 : f32
    %96 = vector.broadcast %cst_36 : f32 to vector<8x32xf32>
    %97 = arith.addf %96, %95 : vector<8x32xf32>
    %98 = arith.divf %96, %97 : vector<8x32xf32>
    %99 = vector.extract_strided_slice %92 {offsets = [0, 32], sizes = [8, 32], strides = [1, 1]} : vector<8x128xf32> to vector<8x32xf32>
    %100 = arith.negf %99 : vector<8x32xf32>
    %101 = math.exp %100 : vector<8x32xf32>
    %cst_37 = arith.constant 1.000000e+00 : f32
    %102 = vector.broadcast %cst_37 : f32 to vector<8x32xf32>
    %103 = arith.addf %102, %101 : vector<8x32xf32>
    %104 = arith.divf %102, %103 : vector<8x32xf32>
    %105 = vector.extract_strided_slice %92 {offsets = [0, 64], sizes = [8, 32], strides = [1, 1]} : vector<8x128xf32> to vector<8x32xf32>
    %106 = math.tanh %105 : vector<8x32xf32>
    %107 = vector.extract_strided_slice %92 {offsets = [0, 96], sizes = [8, 32], strides = [1, 1]} : vector<8x128xf32> to vector<8x32xf32>
    %108 = arith.negf %107 : vector<8x32xf32>
    %109 = math.exp %108 : vector<8x32xf32>
    %cst_38 = arith.constant 1.000000e+00 : f32
    %110 = vector.broadcast %cst_38 : f32 to vector<8x32xf32>
    %111 = arith.addf %110, %109 : vector<8x32xf32>
    %112 = arith.divf %110, %111 : vector<8x32xf32>
    %113 = arith.mulf %104, %39 : vector<8x32xf32>
    %114 = arith.mulf %98, %106 : vector<8x32xf32>
    %115 = arith.addf %113, %114 : vector<8x32xf32>
    %116 = math.tanh %115 : vector<8x32xf32>
    %117 = arith.mulf %112, %116 : vector<8x32xf32>
    %cst_39 = arith.constant dense<0.000000e+00> : vector<8x128xf32>
    %118 = tpu.matmul %117, %4, %cst_39 {dimension_numbers = #tpu.dot_dimension_numbers<[1], [0], [0], [1], [0, 0, 1, 1], [], []>} : vector<8x32xf32>, vector<32x128xf32>, vector<8x128xf32> -> vector<8x128xf32>
    %119 = vector.broadcast %7 : vector<1x128xf32> to vector<8x128xf32>
    %120 = arith.addf %118, %119 : vector<8x128xf32>
    %cst_40 = arith.constant dense<0.000000e+00> : vector<8x128xf32>
    %121 = tpu.matmul %71, %5, %cst_40 {dimension_numbers = #tpu.dot_dimension_numbers<[1], [0], [0], [1], [0, 0, 1, 1], [], []>} : vector<8x32xf32>, vector<32x128xf32>, vector<8x128xf32> -> vector<8x128xf32>
    %122 = arith.addf %120, %121 : vector<8x128xf32>
    %123 = vector.extract_strided_slice %122 {offsets = [0, 0], sizes = [8, 32], strides = [1, 1]} : vector<8x128xf32> to vector<8x32xf32>
    %124 = arith.negf %123 : vector<8x32xf32>
    %125 = math.exp %124 : vector<8x32xf32>
    %cst_41 = arith.constant 1.000000e+00 : f32
    %126 = vector.broadcast %cst_41 : f32 to vector<8x32xf32>
    %127 = arith.addf %126, %125 : vector<8x32xf32>
    %128 = arith.divf %126, %127 : vector<8x32xf32>
    %129 = vector.extract_strided_slice %122 {offsets = [0, 32], sizes = [8, 32], strides = [1, 1]} : vector<8x128xf32> to vector<8x32xf32>
    %130 = arith.negf %129 : vector<8x32xf32>
    %131 = math.exp %130 : vector<8x32xf32>
    %cst_42 = arith.constant 1.000000e+00 : f32
    %132 = vector.broadcast %cst_42 : f32 to vector<8x32xf32>
    %133 = arith.addf %132, %131 : vector<8x32xf32>
    %134 = arith.divf %132, %133 : vector<8x32xf32>
    %135 = vector.extract_strided_slice %122 {offsets = [0, 64], sizes = [8, 32], strides = [1, 1]} : vector<8x128xf32> to vector<8x32xf32>
    %136 = math.tanh %135 : vector<8x32xf32>
    %137 = vector.extract_strided_slice %122 {offsets = [0, 96], sizes = [8, 32], strides = [1, 1]} : vector<8x128xf32> to vector<8x32xf32>
    %138 = arith.negf %137 : vector<8x32xf32>
    %139 = math.exp %138 : vector<8x32xf32>
    %cst_43 = arith.constant 1.000000e+00 : f32
    %140 = vector.broadcast %cst_43 : f32 to vector<8x32xf32>
    %141 = arith.addf %140, %139 : vector<8x32xf32>
    %142 = arith.divf %140, %141 : vector<8x32xf32>
    %143 = arith.mulf %134, %69 : vector<8x32xf32>
    %144 = arith.mulf %128, %136 : vector<8x32xf32>
    %145 = arith.addf %143, %144 : vector<8x32xf32>
    %146 = math.tanh %145 : vector<8x32xf32>
    %147 = arith.mulf %142, %146 : vector<8x32xf32>
    %148 = vector.extract_strided_slice %147 {offsets = [0, 0], sizes = [1, 32], strides = [1, 1]} : vector<8x32xf32> to vector<1x32xf32>
    %c1 = arith.constant 1 : index
    %c0_44 = arith.constant 0 : index
    %149 = vector.load %arg28[%c1, %c0_44] : memref<2x256xf32, #tpu.memory_space<vmem>>, vector<1x32xf32>
    tpu.vector_store %arg28[%c1, %c0_44], %148 {strides = array<i32>} : memref<2x256xf32, #tpu.memory_space<vmem>>, vector<1x32xf32>,
    %150 = vector.extract_strided_slice %147 {offsets = [1, 0], sizes = [1, 32], strides = [1, 1]} : vector<8x32xf32> to vector<1x32xf32>
    %c1_45 = arith.constant 1 : index
    %c32_46 = arith.constant 32 : index
    %151 = vector.load %arg28[%c1_45, %c32_46] : memref<2x256xf32, #tpu.memory_space<vmem>>, vector<1x32xf32>
    tpu.vector_store %arg28[%c1_45, %c32_46], %150 {strides = array<i32>} : memref<2x256xf32, #tpu.memory_space<vmem>>, vector<1x32xf32>,
    %152 = vector.extract_strided_slice %147 {offsets = [2, 0], sizes = [1, 32], strides = [1, 1]} : vector<8x32xf32> to vector<1x32xf32>
    %c1_47 = arith.constant 1 : index
    %c64_48 = arith.constant 64 : index
    %153 = vector.load %arg28[%c1_47, %c64_48] : memref<2x256xf32, #tpu.memory_space<vmem>>, vector<1x32xf32>
    tpu.vector_store %arg28[%c1_47, %c64_48], %152 {strides = array<i32>} : memref<2x256xf32, #tpu.memory_space<vmem>>, vector<1x32xf32>,
    %154 = vector.extract_strided_slice %147 {offsets = [3, 0], sizes = [1, 32], strides = [1, 1]} : vector<8x32xf32> to vector<1x32xf32>
    %c1_49 = arith.constant 1 : index
    %c96_50 = arith.constant 96 : index
    %155 = vector.load %arg28[%c1_49, %c96_50] : memref<2x256xf32, #tpu.memory_space<vmem>>, vector<1x32xf32>
    tpu.vector_store %arg28[%c1_49, %c96_50], %154 {strides = array<i32>} : memref<2x256xf32, #tpu.memory_space<vmem>>, vector<1x32xf32>,
    %156 = vector.extract_strided_slice %147 {offsets = [4, 0], sizes = [1, 32], strides = [1, 1]} : vector<8x32xf32> to vector<1x32xf32>
    %c1_51 = arith.constant 1 : index
    %c128_52 = arith.constant 128 : index
    %157 = vector.load %arg28[%c1_51, %c128_52] : memref<2x256xf32, #tpu.memory_space<vmem>>, vector<1x32xf32>
    tpu.vector_store %arg28[%c1_51, %c128_52], %156 {strides = array<i32>} : memref<2x256xf32, #tpu.memory_space<vmem>>, vector<1x32xf32>,
    %158 = vector.extract_strided_slice %147 {offsets = [5, 0], sizes = [1, 32], strides = [1, 1]} : vector<8x32xf32> to vector<1x32xf32>
    %c1_53 = arith.constant 1 : index
    %c160_54 = arith.constant 160 : index
    %159 = vector.load %arg28[%c1_53, %c160_54] : memref<2x256xf32, #tpu.memory_space<vmem>>, vector<1x32xf32>
    tpu.vector_store %arg28[%c1_53, %c160_54], %158 {strides = array<i32>} : memref<2x256xf32, #tpu.memory_space<vmem>>, vector<1x32xf32>,
    %160 = vector.extract_strided_slice %147 {offsets = [6, 0], sizes = [1, 32], strides = [1, 1]} : vector<8x32xf32> to vector<1x32xf32>
    %c1_55 = arith.constant 1 : index
    %c192_56 = arith.constant 192 : index
    %161 = vector.load %arg28[%c1_55, %c192_56] : memref<2x256xf32, #tpu.memory_space<vmem>>, vector<1x32xf32>
    tpu.vector_store %arg28[%c1_55, %c192_56], %160 {strides = array<i32>} : memref<2x256xf32, #tpu.memory_space<vmem>>, vector<1x32xf32>,
    %162 = vector.extract_strided_slice %147 {offsets = [7, 0], sizes = [1, 32], strides = [1, 1]} : vector<8x32xf32> to vector<1x32xf32>
    %c1_57 = arith.constant 1 : index
    %c224_58 = arith.constant 224 : index
    %163 = vector.load %arg28[%c1_57, %c224_58] : memref<2x256xf32, #tpu.memory_space<vmem>>, vector<1x32xf32>
    tpu.vector_store %arg28[%c1_57, %c224_58], %162 {strides = array<i32>} : memref<2x256xf32, #tpu.memory_space<vmem>>, vector<1x32xf32>,
    %c0_59 = arith.constant 0 : index
    %c0_60 = arith.constant 0 : index
    %164 = vector.load %arg28[%c0_59, %c0_60] : memref<2x256xf32, #tpu.memory_space<vmem>>, vector<2x256xf32>
    %c0_61 = arith.constant 0 : index
    %c0_62 = arith.constant 0 : index
    %165 = vector.load %arg8[%c0_61, %c0_62] : memref<256x1024xbf16, #tpu.memory_space<vmem>>, vector<256x1024xbf16>
    %166 = arith.truncf %164 : vector<2x256xf32> to vector<2x256xbf16>
    %cst_63 = arith.constant dense<0.000000e+00> : vector<2x1024xf32>
    %167 = tpu.matmul %166, %165, %cst_63 {dimension_numbers = #tpu.dot_dimension_numbers<[1], [0], [0], [1], [0, 0, 1, 1], [], []>} : vector<2x256xbf16>, vector<256x1024xbf16>, vector<2x1024xf32> -> vector<2x1024xf32>
    %c0_64 = arith.constant 0 : index
    %c0_65 = arith.constant 0 : index
    %168 = vector.load %arg9[%c0_64, %c0_65] : memref<1x1024xf32, #tpu.memory_space<vmem>>, vector<1x1024xf32>
    %169 = vector.broadcast %168 : vector<1x1024xf32> to vector<2x1024xf32>
    %170 = arith.addf %167, %169 : vector<2x1024xf32>
    %cst_66 = arith.constant 0.000000e+00 : f32
    %171 = vector.broadcast %cst_66 : f32 to vector<2x1024xf32>
    %172 = arith.maximumf %170, %171 : vector<2x1024xf32>
    %c0_67 = arith.constant 0 : index
    %c0_68 = arith.constant 0 : index
    %173 = vector.load %arg10[%c0_67, %c0_68] : memref<1024x256xbf16, #tpu.memory_space<vmem>>, vector<1024x256xbf16>
    %174 = arith.truncf %172 : vector<2x1024xf32> to vector<2x1024xbf16>
    %cst_69 = arith.constant dense<0.000000e+00> : vector<2x256xf32>
    %175 = tpu.matmul %174, %173, %cst_69 {dimension_numbers = #tpu.dot_dimension_numbers<[1], [0], [0], [1], [0, 0, 1, 1], [], []>} : vector<2x1024xbf16>, vector<1024x256xbf16>, vector<2x256xf32> -> vector<2x256xf32>
    %c0_70 = arith.constant 0 : index
    %c0_71 = arith.constant 0 : index
    %176 = vector.load %arg11[%c0_70, %c0_71] : memref<1x256xf32, #tpu.memory_space<vmem>>, vector<1x256xf32>
    %177 = vector.broadcast %176 : vector<1x256xf32> to vector<2x256xf32>
    %178 = arith.addf %175, %177 : vector<2x256xf32>
    %c0_72 = arith.constant 0 : index
    %c0_73 = arith.constant 0 : index
    %179 = vector.load %arg1[%c0_72, %c0_73] : memref<2x160xf32, #tpu.memory_space<vmem>>, vector<2x160xf32>
    %c0_74 = arith.constant 0 : index
    %c0_75 = arith.constant 0 : index
    %180 = vector.load %arg12[%c0_74, %c0_75] : memref<160x256xbf16, #tpu.memory_space<vmem>>, vector<160x256xbf16>
    %181 = arith.truncf %179 : vector<2x160xf32> to vector<2x160xbf16>
    %cst_76 = arith.constant dense<0.000000e+00> : vector<2x256xf32>
    %182 = tpu.matmul %181, %180, %cst_76 {dimension_numbers = #tpu.dot_dimension_numbers<[1], [0], [0], [1], [0, 0, 1, 1], [], []>} : vector<2x160xbf16>, vector<160x256xbf16>, vector<2x256xf32> -> vector<2x256xf32>
    %c0_77 = arith.constant 0 : index
    %c0_78 = arith.constant 0 : index
    %183 = vector.load %arg13[%c0_77, %c0_78] : memref<1x256xf32, #tpu.memory_space<vmem>>, vector<1x256xf32>
    %184 = vector.broadcast %183 : vector<1x256xf32> to vector<2x256xf32>
    %185 = arith.addf %182, %184 : vector<2x256xf32>
    %cst_79 = arith.constant 0.000000e+00 : f32
    %186 = vector.broadcast %cst_79 : f32 to vector<2x256xf32>
    %187 = arith.maximumf %185, %186 : vector<2x256xf32>
    %c0_80 = arith.constant 0 : index
    %c0_81 = arith.constant 0 : index
    %188 = vector.load %arg14[%c0_80, %c0_81] : memref<256x256xbf16, #tpu.memory_space<vmem>>, vector<256x256xbf16>
    %189 = arith.truncf %187 : vector<2x256xf32> to vector<2x256xbf16>
    %cst_82 = arith.constant dense<0.000000e+00> : vector<2x256xf32>
    %190 = tpu.matmul %189, %188, %cst_82 {dimension_numbers = #tpu.dot_dimension_numbers<[1], [0], [0], [1], [0, 0, 1, 1], [], []>} : vector<2x256xbf16>, vector<256x256xbf16>, vector<2x256xf32> -> vector<2x256xf32>
    %c0_83 = arith.constant 0 : index
    %c0_84 = arith.constant 0 : index
    %191 = vector.load %arg15[%c0_83, %c0_84] : memref<1x256xf32, #tpu.memory_space<vmem>>, vector<1x256xf32>
    %192 = vector.broadcast %191 : vector<1x256xf32> to vector<2x256xf32>
    %193 = arith.addf %190, %192 : vector<2x256xf32>
    %cst_85 = arith.constant 0.000000e+00 : f32
    %194 = vector.broadcast %cst_85 : f32 to vector<2x256xf32>
    %195 = arith.maximumf %193, %194 : vector<2x256xf32>
    %c0_86 = arith.constant 0 : index
    %c0_87 = arith.constant 0 : index
    %196 = vector.load %arg16[%c0_86, %c0_87] : memref<256x556xbf16, #tpu.memory_space<vmem>>, vector<256x556xbf16>
    %197 = arith.truncf %195 : vector<2x256xf32> to vector<2x256xbf16>
    %cst_88 = arith.constant dense<0.000000e+00> : vector<2x556xf32>
    %198 = tpu.matmul %197, %196, %cst_88 {dimension_numbers = #tpu.dot_dimension_numbers<[1], [0], [0], [1], [0, 0, 1, 1], [], []>} : vector<2x256xbf16>, vector<256x556xbf16>, vector<2x556xf32> -> vector<2x556xf32>
    %c0_89 = arith.constant 0 : index
    %c0_90 = arith.constant 0 : index
    %199 = vector.load %arg17[%c0_89, %c0_90] : memref<1x556xf32, #tpu.memory_space<vmem>>, vector<1x556xf32>
    %200 = vector.broadcast %199 : vector<1x556xf32> to vector<2x556xf32>
    %201 = arith.addf %198, %200 : vector<2x556xf32>
    %cst_91 = arith.constant 0.000000e+00 : f32
    %202 = vector.broadcast %cst_91 : f32 to vector<2x556xf32>
    %203 = arith.maximumf %201, %202 : vector<2x556xf32>
    %c0_92 = arith.constant 0 : index
    %c0_93 = arith.constant 0 : index
    %204 = vector.load %arg18[%c0_92, %c0_93] : memref<556x256xbf16, #tpu.memory_space<vmem>>, vector<556x256xbf16>
    %205 = arith.truncf %203 : vector<2x556xf32> to vector<2x556xbf16>
    %cst_94 = arith.constant dense<0.000000e+00> : vector<2x256xf32>
    %206 = tpu.matmul %205, %204, %cst_94 {dimension_numbers = #tpu.dot_dimension_numbers<[1], [0], [0], [1], [0, 0, 1, 1], [], []>} : vector<2x556xbf16>, vector<556x256xbf16>, vector<2x256xf32> -> vector<2x256xf32>
    %c0_95 = arith.constant 0 : index
    %c0_96 = arith.constant 0 : index
    %207 = vector.load %arg19[%c0_95, %c0_96] : memref<1x256xf32, #tpu.memory_space<vmem>>, vector<1x256xf32>
    %208 = vector.broadcast %207 : vector<1x256xf32> to vector<2x256xf32>
    %209 = arith.addf %206, %208 : vector<2x256xf32>
    %c0_97 = arith.constant 0 : index
    %c0_98 = arith.constant 0 : index
    %210 = vector.load %arg20[%c0_97, %c0_98] : memref<256x256xbf16, #tpu.memory_space<vmem>>, vector<256x256xbf16>
    %211 = arith.truncf %178 : vector<2x256xf32> to vector<2x256xbf16>
    %cst_99 = arith.constant dense<0.000000e+00> : vector<2x256xf32>
    %212 = tpu.matmul %211, %210, %cst_99 {dimension_numbers = #tpu.dot_dimension_numbers<[1], [0], [0], [1], [0, 0, 1, 1], [], []>} : vector<2x256xbf16>, vector<256x256xbf16>, vector<2x256xf32> -> vector<2x256xf32>
    %c0_100 = arith.constant 0 : index
    %c0_101 = arith.constant 0 : index
    %213 = vector.load %arg21[%c0_100, %c0_101] : memref<256x256xbf16, #tpu.memory_space<vmem>>, vector<256x256xbf16>
    %214 = arith.truncf %209 : vector<2x256xf32> to vector<2x256xbf16>
    %cst_102 = arith.constant dense<0.000000e+00> : vector<2x256xf32>
    %215 = tpu.matmul %214, %213, %cst_102 {dimension_numbers = #tpu.dot_dimension_numbers<[1], [0], [0], [1], [0, 0, 1, 1], [], []>} : vector<2x256xbf16>, vector<256x256xbf16>, vector<2x256xf32> -> vector<2x256xf32>
    %216 = arith.addf %212, %215 : vector<2x256xf32>
    %c0_103 = arith.constant 0 : index
    %c0_104 = arith.constant 0 : index
    %217 = vector.load %arg22[%c0_103, %c0_104] : memref<1x256xf32, #tpu.memory_space<vmem>>, vector<1x256xf32>
    %218 = vector.broadcast %217 : vector<1x256xf32> to vector<2x256xf32>
    %219 = arith.addf %216, %218 : vector<2x256xf32>
    %cst_105 = arith.constant 0.000000e+00 : f32
    %220 = vector.broadcast %cst_105 : f32 to vector<2x256xf32>
    %221 = arith.maximumf %219, %220 : vector<2x256xf32>
    %c0_106 = arith.constant 0 : index
    %c0_107 = arith.constant 0 : index
    %222 = vector.load %arg23[%c0_106, %c0_107] : memref<256x64xf32, #tpu.memory_space<vmem>>, vector<256x64xf32>
    %cst_108 = arith.constant dense<0.000000e+00> : vector<2x64xf32>
    %223 = tpu.matmul %221, %222, %cst_108 {dimension_numbers = #tpu.dot_dimension_numbers<[1], [0], [0], [1], [0, 0, 1, 1], [], []>} : vector<2x256xf32>, vector<256x64xf32>, vector<2x64xf32> -> vector<2x64xf32>
    %c0_109 = arith.constant 0 : index
    %c0_110 = arith.constant 0 : index
    %224 = vector.load %arg24[%c0_109, %c0_110] : memref<1x64xf32, #tpu.memory_space<vmem>>, vector<1x64xf32>
    %225 = vector.broadcast %224 : vector<1x64xf32> to vector<2x64xf32>
    %226 = arith.addf %223, %225 : vector<2x64xf32>
    %cst_111 = arith.constant 0.000000e+00 : f32
    %227 = vector.broadcast %cst_111 : f32 to vector<2x64xf32>
    %228 = arith.maximumf %226, %227 : vector<2x64xf32>
    %c0_112 = arith.constant 0 : index
    %c0_113 = arith.constant 0 : index
    %229 = vector.load %arg25[%c0_112, %c0_113] : memref<64x1xf32, #tpu.memory_space<vmem>>, vector<64x1xf32>
    %cst_114 = arith.constant dense<0.000000e+00> : vector<2x1xf32>
    %230 = tpu.matmul %228, %229, %cst_114 {dimension_numbers = #tpu.dot_dimension_numbers<[1], [0], [0], [1], [0, 0, 1, 1], [], []>} : vector<2x64xf32>, vector<64x1xf32>, vector<2x1xf32> -> vector<2x1xf32>
    %c0_115 = arith.constant 0 : index
    %c0_116 = arith.constant 0 : index
    %231 = vector.load %arg26[%c0_115, %c0_116] : memref<1x1xf32, #tpu.memory_space<vmem>>, vector<1x1xf32>
    %232 = vector.broadcast %231 : vector<1x1xf32> to vector<2x1xf32>
    %233 = arith.addf %230, %232 : vector<2x1xf32>
    %c0_117 = arith.constant 0 : index
    %c0_118 = arith.constant 0 : index
    %234 = vector.load %arg27[%c0_117, %c0_118] : memref<2x1xf32, #tpu.memory_space<vmem>>, vector<2x1xf32>
    tpu.vector_store %arg27[%c0_117, %c0_118], %233 {strides = array<i32>} : memref<2x1xf32, #tpu.memory_space<vmem>>, vector<2x1xf32>,
    return
  }
}

</mosaic_0001>

<bundles_post_ra>
// kernel: tpu_custom_call.1
= control target key start
LH: loop header
LB: loop body
LE: loop exit
PB: predicated region body
PF: predicated region fallthrough
CT: control target
= control target key end

     0   :  { %s8446_s0 = inlined_call_operand.vmem [shape: f32[16,16], index: 0, kind: input, shape index: {}]   ;;  %s8447_s1 = inlined_call_operand.hbm [shape: f32[2,160], index: 1, kind: input, shape index: {}]   ;;  %s8448_s2 = inlined_call_operand.hbm [shape: f32[16,128], index: 2, kind: input, shape index: {}]   ;;  %s8449_s3 = inlined_call_operand.vmem [shape: f32[32,128], index: 3, kind: input, shape index: {}]   ;;  %s8450_s4 = inlined_call_operand.vmem [shape: f32[1,128], index: 4, kind: input, shape index: {}]   ;;  %s8451_s5 = inlined_call_operand.vmem [shape: f32[32,128], index: 5, kind: input, shape index: {}]   ;;  %s8452_s6 = inlined_call_operand.hbm [shape: f32[32,128], index: 6, kind: input, shape index: {}]   ;;  %s8453_s7 = inlined_call_operand.hbm [shape: f32[1,128], index: 7, kind: input, shape index: {}]   ;;  %s8454_s8 = inlined_call_operand.vmem [shape: bf16[256,1024], index: 8, kind: input, shape index: {}]   ;;  %s8455_s9 = inlined_call_operand.hbm [shape: f32[1,1024], index: 9, kind: input, shape index: {}]   ;;  %s8456_s10 = inlined_call_operand.hbm [shape: bf16[1024,256], index: 10, kind: input, shape index: {}]   ;;  %s8457_s11 = inlined_call_operand.vmem [shape: f32[1,256], index: 11, kind: input, shape index: {}]   ;;  %s8458_s12 = inlined_call_operand.hbm [shape: bf16[160,256], index: 12, kind: input, shape index: {}]   ;;  %s8459_s13 = inlined_call_operand.hbm [shape: f32[1,256], index: 13, kind: input, shape index: {}]   ;;  %s8460_s14 = inlined_call_operand.hbm [shape: bf16[256,256], index: 14, kind: input, shape index: {}]   ;;  %s8461_s15 = inlined_call_operand.hbm [shape: f32[1,256], index: 15, kind: input, shape index: {}]   ;;  %s8462_s16 = inlined_call_operand.vmem [shape: bf16[256,556], index: 16, kind: input, shape index: {}]   ;;  %s8463_s17 = inlined_call_operand.hbm [shape: f32[1,556], index: 17, kind: input, shape index: {}]   ;;  %s8464_s18 = inlined_call_operand.vmem [shape: bf16[556,256], index: 18, kind: input, shape index: {}]   ;;  %s8465_s19 = inlined_call_operand.vmem [shape: f32[1,256], index: 19, kind: input, shape index: {}]   ;;  %s8466_s20 = inlined_call_operand.hbm [shape: bf16[256,256], index: 20, kind: input, shape index: {}]   ;;  %s8467_s21 = inlined_call_operand.hbm [shape: bf16[256,256], index: 21, kind: input, shape index: {}]   ;;  %s8468_s22 = inlined_call_operand.vmem [shape: f32[1,256], index: 22, kind: input, shape index: {}]   ;;  %s8469_s23 = inlined_call_operand.vmem [shape: f32[256,64], index: 23, kind: input, shape index: {}]   ;;  %s8470_s24 = inlined_call_operand.vmem [shape: f32[1,64], index: 24, kind: input, shape index: {}]   ;;  %s8471_s25 = inlined_call_operand.vmem [shape: f32[64,1], index: 25, kind: input, shape index: {}]   ;;  %s8472_s26 = inlined_call_operand.<no memory space> [shape: f32[1,1], index: 26, kind: input, shape index: {}]   ;;  %s8473_s27 = inlined_call_operand.vmem [shape: f32[2,1], index: 27, kind: output, shape index: {}]  }
   0x1   :  { %8478 = sst [smem:[#allocation31_spill]] %s8446_s0  ;;  %v32_v0 = vstv %s8472_s26 }
   0x2   :  { %8479 = sst [smem:[#allocation32_spill]] %s8447_s1  ;;  %33 = vst [vmem:[#allocation3] sm:$0x1] %v32_v0 }
   0x3   :  { %8480 = sst [smem:[#allocation33_spill]] %s8448_s2 }
   0x4   :  { %8481 = sst [smem:[#allocation34_spill]] %s8449_s3 }
   0x5   :  { %8482 = sst [smem:[#allocation35_spill]] %s8450_s4 }
   0x6   :  { %8483 = sst [smem:[#allocation36_spill]] %s8451_s5 }
   0x7   :  { %8484 = sst [smem:[#allocation37_spill]] %s8452_s6 }
   0x8   :  { %8485 = sst [smem:[#allocation38_spill]] %s8453_s7 }
   0x9   :  { %8486 = sst [smem:[#allocation39_spill]] %s8454_s8 }
   0xa   :  { %8487 = sst [smem:[#allocation40_spill]] %s8455_s9 }
   0xb   :  { %8488 = sst [smem:[#allocation41_spill]] %s8456_s10 }
   0xc   :  { %8489 = sst [smem:[#allocation42_spill]] %s8457_s11 }
   0xd   :  { %34 = vsyncpa [#allocation5], 0 }
   0xe   :  { %35 = vsyncpa [#allocation7], 0 }
   0xf   :  { %36 = vsyncpa [#allocation10], 0 }
  0x10   :  { %37 = vsyncpa [#allocation13], 0 }
  0x11   :  { %38 = vsyncpa [#allocation16], 0 }
  0x12   :  { %39 = vsyncpa [#allocation19], 0 }
  0x13   :  { %40 = vsyncpa [#allocation22], 0  ;;  %s6994_s8 = smov [#allocation6]  }
  0x14   :  { %s58_s30 = sshll.u32 %s6994_s8, 4  ;;  %s59_s30 = int_to_ptr.vmem [resolvable:$true] %s58_s30 }
  0x15   :  { %s6728_s9 = scalar_lea.vmem %s59_s30, 256  ;;  %p6733_p1 = scmp.lt.s32.totalorder %s59_s30, %s59_s30 }
  0x16   :  { %p6729_p0 = scmp.ne.s32.totalorder %s59_s30, %s6728_s9  ;;  %p6734_p2 = scmp.lt.s32.totalorder %s6728_s9, %s6728_s9 }
  0x18   :  { %p6735_p3 = por %p6734_p2, %p6733_p1 }
  0x1a   :  { %p6736_p4 = pnand %p6735_p3, %p6729_p0 }
  0x1c   :  { %6739 = shalt.err (!%p6736_p4)
}
  0x1d   :  { %s6995_s5 = smov 128   ;;  %s6996_s26 = smov 8  }
  0x1e   :  { %s8490_s10 = sld [smem:[#allocation33_spill]]  ;;  %s6997_s29 = smov [#allocation9]  }
  0x1f   :  { %s89_s1 = sshll.u32 %s6997_s29, 4  ;;  %s6998_s6 = smov [#allocation12]   ;;  %s90_s1 = int_to_ptr.vmem [resolvable:$true] %s89_s1 }
  0x20   :  { %s110_s11 = sshll.u32 %s6998_s6, 4  ;;  %s6748_s2 = scalar_lea.vmem %s90_s1, 16  ;;  %s111_s11 = int_to_ptr.vmem [resolvable:$true] %s110_s11 }
  0x21   :  { %p6749_p5 = scmp.ne.s32.totalorder %s90_s1, %s6748_s2  ;;  %s6752_s3 = scalar_lea.vmem %s90_s1, 32 }
  0x22   :  { %p6753_p6 = scmp.lt.s32.totalorder %s90_s1, %s90_s1  ;;  %p6754_p7 = scmp.lt.s32.totalorder %s6752_s3, %s6748_s2 }
  0x24   :  { %64 = dma.hbm_to_vmem [thread:$0]  %s8490_s10, 256, %s59_s30, [#allocation7], %s6995_s5, %s6995_s5, %s6996_s26  }
  0x25   :  { %p6755_p8 = por %p6754_p7, %p6753_p6 }
  0x27   :  { %p6756_p9 = pnand %p6755_p8, %p6749_p5 }
  0x29   :  { %6759 = shalt.err (!%p6756_p9)
}
  0x2a   :  { %s8491_s8 = sld [smem:[#allocation38_spill]]  ;;  %s6768_s9 = scalar_lea.vmem %s111_s11, 16384 }
  0x2b   :  { %p6769_p10 = scmp.ne.s32.totalorder %s111_s11, %s6768_s9  ;;  %p6773_p11 = scmp.lt.s32.totalorder %s111_s11, %s111_s11 }
  0x2c   :  { %p6774_p12 = scmp.lt.s32.totalorder %s6768_s9, %s6768_s9 }
  0x2e   :  { %p6775_p13 = por %p6774_p12, %p6773_p11 }
  0x30   :  { %92 = dma.hbm_to_vmem [thread:$0]  %s8491_s8, 16, %s90_s1, [#allocation10]  }
  0x31   :  { %p6776_p0 = pnand %p6775_p13, %p6769_p10 }
  0x33   :  { %6779 = shalt.err (!%p6776_p0)
}
  0x34   :  { %s8492_s0 = sld [smem:[#allocation41_spill]]  ;;  %s6999_s10 = smov [#allocation15]  }
  0x35   :  { %s137_s29 = sshll.u32 %s6999_s10, 4  ;;  %s7000_s6 = smov [#allocation18]   ;;  %s138_s29 = int_to_ptr.vmem [resolvable:$true] %s137_s29 }
  0x36   :  { %s159_s1 = sshll.u32 %s7000_s6, 4  ;;  %s6788_s2 = scalar_lea.vmem %s138_s29, 32  ;;  %s160_s1 = int_to_ptr.vmem [resolvable:$true] %s159_s1 }
  0x37   :  { %p6789_p1 = scmp.ne.s32.totalorder %s138_s29, %s6788_s2  ;;  %p6793_p2 = scmp.lt.s32.totalorder %s138_s29, %s138_s29 }
  0x38   :  { %p6794_p3 = scmp.lt.s32.totalorder %s6788_s2, %s6788_s2 }
  0x3a   :  { %116 = dma.hbm_to_vmem [thread:$0]  %s8492_s0, 16384, %s111_s11, [#allocation13], %s6995_s5, %s6995_s5, %s6996_s26  }
  0x3b   :  { %p6795_p4 = por %p6794_p3, %p6793_p2 }
  0x3d   :  { %p6796_p5 = pnand %p6795_p4, %p6789_p1 }
  0x3f   :  { %6799 = shalt.err (!%p6796_p5)
}
  0x40   :  { %140 = dma.hbm_to_vmem [thread:$0]  %s8459_s13, 32, %s138_s29, [#allocation16]  }
  0x41   :  { %s6808_s4 = scalar_lea.vmem %s160_s1, 32  ;;  %p6813_p7 = scmp.lt.s32.totalorder %s160_s1, %s160_s1 }
  0x42   :  { %p6809_p6 = scmp.ne.s32.totalorder %s160_s1, %s6808_s4  ;;  %p6814_p8 = scmp.lt.s32.totalorder %s6808_s4, %s6808_s4 }
  0x44   :  { %p6815_p9 = por %p6814_p8, %p6813_p7 }
  0x46   :  { %p6816_p10 = pnand %p6815_p9, %p6809_p6 }
  0x48   :  { %6819 = shalt.err (!%p6816_p10)
}
  0x49   :  { %162 = dma.hbm_to_vmem [thread:$0]  %s8461_s15, 32, %s160_s1, [#allocation19]  }
  0x4a   :  { %s7001_s9 = smov [#allocation21]   ;;  %s7002_s28 = smov [#allocation4]  }
  0x4b   :  { %s184_s30 = sshll.u32 %s7001_s9, 4  ;;  %s49_s0 = sshll.u32 %s7002_s28, 4  ;;  %s185_s30 = int_to_ptr.vmem [resolvable:$true] %s184_s30  ;;  %s50_s0 = int_to_ptr.vmem [resolvable:$true] %s49_s0 }
  0x4c   :  { %s6828_s10 = scalar_lea.vmem %s185_s30, 4096  ;;  %p6833_p12 = scmp.lt.s32.totalorder %s185_s30, %s185_s30 }
  0x4d   :  { %p6829_p11 = scmp.ne.s32.totalorder %s185_s30, %s6828_s10  ;;  %p6834_p13 = scmp.lt.s32.totalorder %s6828_s10, %s6828_s10 }
  0x4f   :  { %p6835_p0 = por %p6834_p13, %p6833_p12 }
  0x51   :  { %p6836_p1 = pnand %p6835_p0, %p6829_p11 }
  0x53   :  { %6839 = shalt.err (!%p6836_p1)
}
  0x54   :  { %190 = dma.hbm_to_vmem [thread:$0]  %s8466_s20, 4096, %s185_s30, [#allocation22], %s6995_s5, %s6995_s5, %s6996_s26  }
  0x55   :  { %s6848_s15 = scalar_lea.vmem %s50_s0, 64  ;;  %p6853_p3 = scmp.lt.s32.totalorder %s50_s0, %s50_s0 }
  0x56   :  { %p6849_p2 = scmp.ne.s32.totalorder %s50_s0, %s6848_s15  ;;  %p6854_p4 = scmp.lt.s32.totalorder %s6848_s15, %s6848_s15 }
  0x58   :  { %p6855_p5 = por %p6854_p4, %p6853_p3 }
  0x5a   :  { %p6856_p6 = pnand %p6855_p5, %p6849_p2 }
  0x5c   :  { %6859 = shalt.err (!%p6856_p6)
}
  0x5d   :  { %s8493_s2 = sld [smem:[#allocation32_spill]]  ;;  %s7003_s3 = smov [#allocation8]  }
  0x5e   :  { %s76_s7 = sshll.u32 %s7003_s3, 4  ;;  %s7004_s4 = smov [#allocation11]   ;;  %s77_s7 = int_to_ptr.vmem [resolvable:$true] %s76_s7 }
  0x5f   :  { %s101_s11 = sshll.u32 %s7004_s4, 4  ;;  %s6868_s8 = scalar_lea.vmem %s77_s7, 512  ;;  %s102_s11 = int_to_ptr.vmem [resolvable:$true] %s101_s11 }
  0x60   :  { %p6869_p7 = scmp.ne.s32.totalorder %s77_s7, %s6868_s8  ;;  %p6873_p8 = scmp.lt.s32.totalorder %s77_s7, %s77_s7 }
  0x61   :  { %p6874_p9 = scmp.lt.s32.totalorder %s6868_s8, %s6868_s8 }
  0x63   :  { %52 = dma.hbm_to_vmem [thread:$0]  %s8493_s2, 64, %s50_s0, [#allocation5]  }
  0x64   :  { %p6875_p10 = por %p6874_p9, %p6873_p8 }
  0x66   :  { %p6876_p11 = pnand %p6875_p10, %p6869_p7 }
  0x68   :  { %6879 = shalt.err (!%p6876_p11)
}
  0x69   :  { %s8494_s30 = sld [smem:[#allocation37_spill]]  ;;  %s6888_s28 = scalar_lea.vmem %s102_s11, 128 }
  0x6a   :  { %p6889_p12 = scmp.ne.s32.totalorder %s102_s11, %s6888_s28  ;;  %p6893_p13 = scmp.lt.s32.totalorder %s102_s11, %s102_s11 }
  0x6b   :  { %p6894_p0 = scmp.lt.s32.totalorder %s6888_s28, %s6888_s28 }
  0x6d   :  { %p6895_p1 = por %p6894_p0, %p6893_p13 }
  0x6f   :  { %82 = dma.hbm_to_vmem [thread:$0]  %s8494_s30, 512, %s77_s7, [#allocation7], %s6995_s5, %s6995_s5, %s6996_s26  }
  0x70   :  { %p6896_p2 = pnand %p6895_p1, %p6889_p12 }
  0x72   :  { %6899 = shalt.err (!%p6896_p2)
}
  0x73   :  { %s8495_s13 = sld [smem:[#allocation40_spill]]  ;;  %s7005_s29 = smov [#allocation14]  }
  0x74   :  { %s124_s15 = sshll.u32 %s7005_s29, 4  ;;  %s7006_s6 = smov [#allocation17]   ;;  %s125_s15 = int_to_ptr.vmem [resolvable:$true] %s124_s15 }
  0x75   :  { %s146_s1 = sshll.u32 %s7006_s6, 4  ;;  %s6908_s2 = scalar_lea.vmem %s125_s15, 2560  ;;  %s147_s1 = int_to_ptr.vmem [resolvable:$true] %s146_s1 }
  0x76   :  { %p6909_p3 = scmp.ne.s32.totalorder %s125_s15, %s6908_s2  ;;  %p6913_p4 = scmp.lt.s32.totalorder %s125_s15, %s125_s15 }
  0x77   :  { %p6914_p5 = scmp.lt.s32.totalorder %s6908_s2, %s6908_s2 }
  0x79   :  { %104 = dma.hbm_to_vmem [thread:$0]  %s8495_s13, 128, %s102_s11, [#allocation10]  }
  0x7a   :  { %p6915_p6 = por %p6914_p5, %p6913_p4 }
  0x7c   :  { %p6916_p7 = pnand %p6915_p6, %p6909_p3 }
  0x7e   :  { %6919 = shalt.err (!%p6916_p7)
}
  0x7f   :  { %130 = dma.hbm_to_vmem [thread:$0]  %s8458_s12, 2560, %s125_s15, [#allocation13], %s6995_s5, %s6995_s5, %s6996_s26  }
  0x80   :  { %s6928_s4 = scalar_lea.vmem %s147_s1, 4096  ;;  %p6933_p9 = scmp.lt.s32.totalorder %s147_s1, %s147_s1 }
  0x81   :  { %p6929_p8 = scmp.ne.s32.totalorder %s147_s1, %s6928_s4  ;;  %p6934_p10 = scmp.lt.s32.totalorder %s6928_s4, %s6928_s4 }
  0x83   :  { %p6935_p11 = por %p6934_p10, %p6933_p9 }
  0x85   :  { %p6936_p12 = pnand %p6935_p11, %p6929_p8 }
  0x87   :  { %6939 = shalt.err (!%p6936_p12)
}
  0x88   :  { %152 = dma.hbm_to_vmem [thread:$0]  %s8460_s14, 4096, %s147_s1, [#allocation16], %s6995_s5, %s6995_s5, %s6996_s26  }
  0x89   :  { %s7007_s20 = smov [#allocation20]   ;;  %s7008_s30 = smov [#allocation23]  }
  0x8a   :  { %s171_s9 = sshll.u32 %s7007_s20, 4  ;;  %s196_s12 = sshll.u32 %s7008_s30, 4  ;;  %s172_s9 = int_to_ptr.vmem [resolvable:$true] %s171_s9  ;;  %s197_s12 = int_to_ptr.vmem [resolvable:$true] %s196_s12 }
  0x8b   :  { %s6948_s28 = scalar_lea.vmem %s172_s9, 80  ;;  %s6952_s0 = scalar_lea.vmem %s172_s9, 96 }
  0x8c   :  { %p6949_p13 = scmp.ne.s32.totalorder %s172_s9, %s6948_s28  ;;  %p6953_p0 = scmp.lt.s32.totalorder %s172_s9, %s172_s9 }
  0x8d   :  { %p6954_p1 = scmp.lt.s32.totalorder %s6952_s0, %s6948_s28 }
  0x8f   :  { %p6955_p2 = por %p6954_p1, %p6953_p0 }
  0x91   :  { %p6956_p3 = pnand %p6955_p2, %p6949_p13 }
  0x93   :  { %6959 = shalt.err (!%p6956_p3)
}
  0x94   :  { %174 = dma.hbm_to_vmem [thread:$0]  %s8463_s17, 80, %s172_s9, [#allocation19]  }
  0x95   :  { %s6968_s29 = scalar_lea.vmem %s197_s12, 4096  ;;  %p6973_p5 = scmp.lt.s32.totalorder %s197_s12, %s197_s12 }
  0x96   :  { %p6969_p4 = scmp.ne.s32.totalorder %s197_s12, %s6968_s29  ;;  %p6974_p6 = scmp.lt.s32.totalorder %s6968_s29, %s6968_s29 }
  0x98   :  { %p6975_p7 = por %p6974_p6, %p6973_p5 }
  0x9a   :  { %p6976_p8 = pnand %p6975_p7, %p6969_p4 }
  0x9c   :  { %6979 = shalt.err (!%p6976_p8)
}
  0x9d   :  { %202 = dma.hbm_to_vmem [thread:$0]  %s8467_s21, 4096, %s197_s12, [#allocation22], %s6995_s5, %s6995_s5, %s6996_s26  }
  0x9e   :  { %6980 = dma.done.wait [#allocation5], 64  }
  0x9f   :  { %6981 = vsyncadd [#allocation5], 4294967232 }
  0xa0   :  { %6982 = dma.done.wait [#allocation7], 768  }
  0xa1   :  { %6983 = vsyncadd [#allocation7], 4294966528 }
  0xa2   :  { %6984 = dma.done.wait [#allocation10], 144  }
  0xa3   :  { %6985 = vsyncadd [#allocation10], 4294967152 }
  0xa4   :  { %6986 = dma.done.wait [#allocation13], 18944  }
  0xa5   :  { %6987 = vsyncadd [#allocation13], 4294948352 }
  0xa6   :  { %6988 = dma.done.wait [#allocation16], 4128  }
  0xa7   :  { %6989 = vsyncadd [#allocation16], 4294963168 }
  0xa8   :  { %6990 = dma.done.wait [#allocation19], 112  }
  0xa9   :  { %6991 = vsyncadd [#allocation19], 4294967184 }
  0xaa   :  { %6992 = dma.done.wait [#allocation22], 8192  }
  0xab   :  { %6993 = vsyncadd [#allocation22], 4294959104  ;;  %v7009_v1 = vmov 0.0   ;;  %vm7010_vm0 = vmmov 0   ;;  %v256_v2 = vld [vmem:[#allocation6 + $0x8] sm:$0xff]  ;;  %s8496_s5 = sld [smem:[#allocation34_spill]] }
  0xac   :  { %5998 = vmatprep.subr.mxu1 %v7009_v1  ;;  %6006 = vmatprep.mubr.msk.f32.mxu1 %vm7010_vm0, %v7009_v1  ;;  %v255_v4 = vld [vmem:[#allocation6] sm:$0xff]  ;;  %s8497_s3 = sld [smem:[#allocation31_spill]]  ;;  %vm257_vm1 = vcmask 130048   ;;  %s7011_s0 = smov 64   ;;  %v350_v30 = vld [vmem:[#allocation8 + $0x18] sm:$0xff]  ;;  %v348_v33 = vld [vmem:[#allocation8 + $0x8] sm:$0xff] }
  0xad   :  { %5991 = vmatprep.subr.mxu0 %v256_v2  ;;  %s8498_s28 = sld [smem:[#allocation35_spill]]  ;;  %s7012_s10 = smov 32   ;;  %v349_v31 = vld [vmem:[#allocation8 + $0x10] sm:$0xff]  ;;  %v347_v36 = vld [vmem:[#allocation8] sm:$0xff]  ;;  %vm360_vm2 = vcmask 261120   ;;  %vm646_vm3 = vcmask 253952  }
  0xae   :  { %5992 = vmatpush3.msra.mxu0 %v256_v2  ;;  %s8499_s14 = sld [smem:[#allocation36_spill]]  ;;  %v5345_v42 = vld [vmem:[#allocation9] ss:$0 sm:$0xff]  ;;  %s7014_s1 = smov 96   ;;  %vm653_vm4 = vcmask 516352   ;;  %vm659_vm5 = vcmask 778752  }
  0xaf   :  { %5993 = vmatprep.subr.mxu0 %v255_v4  ;;  %vm664_vm6 = vcmask 1041152   ;;  %s8500_s7 = sld [smem:[#allocation39_spill]]  ;;  %vm4513_vm7 = vcmask 1045504   ;;  %vm4509_vm8 = vcmask 359424   ;;  %vm5254_vm9 = vcmask 523264  }
  0xb0   :  { %5994 = vmatpush3.msra.mxu0 %v255_v4  ;;  %s8501_s11 = sld [smem:[#allocation42_spill]]  ;;  %vm5328_vm10 = vcmask 1024  }
  0xb1   :  { %v7225_v3 = vld [vmem:[%s8496_s5 + $0x18] sm:$0xff]  ;;  %v7231_v5 = vld [vmem:[%s8496_s5 + $0x10] sm:$0xff]  ;;  %v7243_v8 = vld [vmem:[%s8496_s5 + $0x8] sm:$0xff]  ;;  %6009 = vmatprep.subr.mxu0 %v7009_v1 }
  0xb2   :  { %5999 = vmatpush3.msra.mxu1 %v7225_v3  ;;  %v253_v6 = vld [vmem:[%s8497_s3] sm:$0xff]  ;;  %v254_v7 = vld [vmem:[%s8497_s3 + $0x8] sm:$0xff] }
  0xb3   :  { %6000 = vmatprep.subr.mxu1 %v7009_v1  ;;  %v7249_v9 = vld [vmem:[%s8496_s5] sm:$0xff]  ;;  %5995 = vmatprep.mubr.msk.f32.mxu0 %vm257_vm1, %v253_v6 }
  0xb4   :  { %6001 = vmatpush3.msra.mxu1 %v7231_v5  ;;  %5996 = vmatmul.mubr.msk.f32.vlgmr.msra.gmra.mxu0 %vm257_vm1, %v254_v7  ;;  %v5343_v10 = vld [vmem:[%s8498_s28] ss:$0 sm:$0xff]  ;;  %v346_v28 = vld [vmem:[%s8499_s14 + $0x18] sm:$0xff]  ;;  %v345_v29 = vld [vmem:[%s8499_s14 + $0x10] sm:$0xff] }
  0xb5   :  { %6002 = vmatprep.subr.mxu1 %v7009_v1  ;;  %6017 = vmatprep.mubr.msk.f32.mxu0 %vm7010_vm0, %v7009_v1  ;;  %v344_v32 = vld [vmem:[%s8499_s14 + $0x8] sm:$0xff]  ;;  %v343_v34 = vld [vmem:[%s8499_s14] sm:$0xff] }
  0xb6   :  { %6003 = vmatpush3.msra.mxu1 %v7243_v8  ;;  %6010 = vmatpush3.msra.mxu0 %v346_v28 }
  0xb7   :  { %6004 = vmatprep.subr.mxu1 %v7009_v1  ;;  %6011 = vmatprep.subr.mxu0 %v7009_v1 }
  0xb8   :  { %6005 = vmatpush3.msra.mxu1 %v7249_v9  ;;  %6012 = vmatpush3.msra.mxu0 %v345_v29 }
  0xb9   :  { %6007 = vmatmul.mubr.f32.vlgmr.msra.gmra.mxu1 %v7009_v1  ;;  %6020 = vmatprep.subr.mxu1 %v7009_v1 }
  0xba   :  { %6028 = vmatprep.mubr.msk.f32.mxu1 %vm7010_vm0, %v7009_v1  ;;  %6021 = vmatpush3.msra.mxu1 %v350_v30 }
  0xbb   :  { %6022 = vmatprep.subr.mxu1 %v7009_v1  ;;  %6013 = vmatprep.subr.mxu0 %v7009_v1 }
  0xbc   :  { %6023 = vmatpush3.msra.mxu1 %v349_v31  ;;  %6014 = vmatpush3.msra.mxu0 %v344_v32 }
  0xbd   :  { %6024 = vmatprep.subr.mxu1 %v7009_v1  ;;  %6015 = vmatprep.subr.mxu0 %v7009_v1 }
  0xbe   :  { %6025 = vmatpush3.msra.mxu1 %v348_v33  ;;  %6016 = vmatpush3.msra.mxu0 %v343_v34 }
  0xbf   :  { %6026 = vmatprep.subr.mxu1 %v7009_v1  ;;  %6031 = vmatprep.subr.mxu0 %v7009_v1 }
  0xc0   :  { %6027 = vmatpush3.msra.mxu1 %v347_v36 }
  0xc1   :  { %6029 = vmatmul.mubr.f32.vlgmr.msra.gmra.mxu1 %v7009_v1  ;;  %6042 = vmatprep.subr.mxu1 %v7009_v1 }
  0xc2   :  { %6043 = vmatpush3.msra.mxu1 %v346_v28  ;;  %6050 = vmatprep.mubr.msk.f32.mxu1 %vm7010_vm0, %v7009_v1 }
  0xc3   :  { %6044 = vmatprep.subr.mxu1 %v7009_v1 }
  0xc4   :  { %6045 = vmatpush3.msra.mxu1 %v345_v29 }
  0xc5   :  { %6046 = vmatprep.subr.mxu1 %v7009_v1 }
  0xc6   :  { %6047 = vmatpush3.msra.mxu1 %v344_v32 }
  0xc7   :  { %6048 = vmatprep.subr.mxu1 %v7009_v1 }
  0xc8   :  { %6049 = vmatpush3.msra.mxu1 %v343_v34 }
 0x174   :  { %v5997_v11 = vpop.f32.mrf.mxu0 }
 0x175   :  { %v7265_v12 = vadd.f32 %v5997_v11, %v5343_v10 }
 0x176   :  { %v330_v13 = vpop.f32.mrf.mxu0 }
 0x177   :  { %v359_v14 = vadd.f32 %v5343_v10, %v330_v13 }
 0x179   :  { %v430_v15 = vpop.f32.mrf.mxu1 }
 0x17a   :  { %v434_v16 = vadd.f32 %v430_v15, %v359_v14 }
 0x17b   :  { %v6008_v17 = vpop.f32.mrf.mxu1 }
 0x17c   :  { %6688 = vtanh.f32 %v434_v16  ;;  %v5344_v19 = vmul.f32 -1.442695, %v434_v16 }
 0x17e   :  { %6690 = vpow2.f32 %v5344_v19 }
 0x181   :  { %v606_v40 = vpop.f32.mrf.mxu1 }
 0x183   :  { %v6030_v41 = vpop.f32.mrf.mxu1 }
 0x189   :  { %v6689_v18 = vpop.eup %6688 }
 0x18a   :  { %444 = vrot.lane.b32.xlu0 %v6689_v18, %s7011_s0 }
 0x18b   :  { %v6691_v20 = vpop.eup %6690 }
 0x18c   :  { %v438_v21 = vadd.f32 1.0, %v6691_v20 }
 0x18e   :  { %6692 = vrcp.f32 %v438_v21 }
 0x19b   :  { %v6693_v22 = vpop.eup %6692 }
 0x19c   :  { %v442_v25 = vmul.f32 0.0, %v6693_v22 }
 0x1fc   :  { %v445_v23 = vpop.permute.xlu0 %444 }
 0x1fd   :  { %v447_v24 = vmul.f32 %v6693_v22, %v445_v23 }
 0x1ff   :  { %449 = vrot.lane.b32.xlu0 %v447_v24, %s7012_s10 }
 0x271   :  { %v450_v26 = vpop.permute.xlu0 %449 }
 0x272   :  { %v7269_v27 = vadd.f32 %v450_v26, %v442_v25  ;;  %v7013_v25 = vmov 1983009808  }
 0x273   :  { %v637_v26 = vunpack.c.l.s4 %v7013_v25  ;;  %v1038_v25 = vld [vmem:[%s8500_s7 + $0xa0] sm:$0xff] }
 0x274   :  { %6694 = vtanh.f32 %v7269_v27 }
 0x275   :  { %v638_v28 = vunpack.c.0.s8 %v637_v26  ;;  %v1035_v26 = vld [vmem:[%s8500_s7 + $0x88] sm:$0xff] }
 0x281   :  { %v6695_v35 = vpop.eup %6694 }
 0x282   :  { %455 = vrot.lane.b32.xlu1 %v6695_v35, %s7011_s0 }
 0x2f4   :  { %v456_v37 = vpop.permute.xlu1 %455 }
 0x2f5   :  { %v458_v38 = vmul.f32 %v6693_v22, %v456_v37 }
 0x2f7   :  { %466 = vrot.lane.b32.xlu1 %v458_v38, %s7012_s10 }
 0x369   :  { %v467_v39 = vpop.permute.xlu1 %466 }
 0x36a   :  { %6018 = vmatmul.mubr.msk.f32.vlgmr.msra.gmra.mxu0 %vm360_vm2, %v467_v39 }
 0x36b   :  { %6032 = vmatpush3.msra.mxu0 %v7225_v3  ;;  %6039 = vmatprep.mubr.msk.f32.mxu0 %vm7010_vm0, %v7009_v1 }
 0x36c   :  { %6033 = vmatprep.subr.mxu0 %v7009_v1 }
 0x36d   :  { %6034 = vmatpush3.msra.mxu0 %v7231_v5 }
 0x36e   :  { %6035 = vmatprep.subr.mxu0 %v7009_v1 }
 0x36f   :  { %6036 = vmatpush3.msra.mxu0 %v7243_v8 }
 0x370   :  { %6037 = vmatprep.subr.mxu0 %v7009_v1 }
 0x371   :  { %6038 = vmatpush3.msra.mxu0 %v7249_v9 }
 0x372   :  { %6040 = vmatmul.mubr.msk.f32.vlgmr.msra.gmra.mxu0 %vm360_vm2, %v467_v39  ;;  %6053 = vmatprep.subr.mxu0 %v7009_v1 }
 0x373   :  { %6054 = vmatpush3.msra.mxu0 %v350_v30  ;;  %6061 = vmatprep.mubr.msk.f32.mxu0 %vm7010_vm0, %v7009_v1 }
 0x374   :  { %6055 = vmatprep.subr.mxu0 %v7009_v1 }
 0x375   :  { %6056 = vmatpush3.msra.mxu0 %v349_v31 }
 0x376   :  { %6057 = vmatprep.subr.mxu0 %v7009_v1 }
 0x377   :  { %6058 = vmatpush3.msra.mxu0 %v348_v33 }
 0x378   :  { %6059 = vmatprep.subr.mxu0 %v7009_v1 }
 0x379   :  { %6060 = vmatpush3.msra.mxu0 %v347_v36 }
 0x42a   :  { %v536_v43 = vpop.f32.mrf.mxu0 }
 0x42b   :  { %v537_v44 = vadd.f32 %v5345_v42, %v536_v43 }
 0x42c   :  { %v6019_v45 = vpop.f32.mrf.mxu0 }
 0x42d   :  { %v610_v46 = vadd.f32 %v606_v40, %v537_v44 }
 0x42f   :  { %6696 = vtanh.f32 %v610_v46  ;;  %v5347_v52 = vmul.f32 -1.442695, %v610_v46  ;;  %v1074_v46 = vld [vmem:[%s8500_s7 + $0x1c0] sm:$0xff] }
 0x432   :  { %v760_v47 = vpop.f32.mrf.mxu0 }
 0x433   :  { %v764_v48 = vadd.f32 %v760_v47, %v7265_v12  ;;  %v1078_v47 = vld [vmem:[%s8500_s7 + $0x1e0] sm:$0xff] }
 0x434   :  { %v6041_v49 = vpop.f32.mrf.mxu0 }
 0x435   :  { %6698 = vtanh.f32 %v764_v48  ;;  %v5353_v53 = vmul.f32 -1.442695, %v764_v48  ;;  %v1075_v48 = vld [vmem:[%s8500_s7 + $0x1c8] sm:$0xff] }
 0x436   :  { %6700 = vpow2.f32 %v5347_v52  ;;  %v1079_v52 = vld [vmem:[%s8500_s7 + $0x1e8] sm:$0xff] }
 0x437   :  { %6702 = vpow2.f32 %v5353_v53  ;;  %v1066_v53 = vld [vmem:[%s8500_s7 + $0x180] sm:$0xff] }
 0x43c   :  { %v6697_v50 = vpop.eup %6696 }
 0x43d   :  { %620 = vrot.lane.b32.xlu1 %v6697_v50, %s7011_s0  ;;  %v5418_v50 = vcombine.low %v1074_v46, %v1078_v47 }
 0x442   :  { %v6699_v51 = vpop.eup %6698 }
 0x443   :  { %774 = vrot.lane.b32.xlu0 %v6699_v51, %s7011_s0  ;;  %v6701_v54 = vpop.eup %6700  ;;  %v5419_v51 = vcombine.high %v1074_v46, %v1078_v47  ;;  %v1023_v46 = vld [vmem:[%s8500_s7 + $0x28] sm:$0xff] }
 0x444   :  { %v614_v55 = vadd.f32 1.0, %v6701_v54  ;;  %v6703_v56 = vpop.eup %6702  ;;  %v1070_v54 = vld [vmem:[%s8500_s7 + $0x1a0] sm:$0xff] }
 0x445   :  { %v768_v57 = vadd.f32 1.0, %v6703_v56  ;;  %v5421_v56 = vcombine.high %v1075_v48, %v1079_v52  ;;  %1841 = vmatprep.subr.bf16.mxu1 %v5419_v51  ;;  %v1138_v51 = vld [vmem:[%s8500_s7 + $0x3c0] sm:$0xff] }
 0x446   :  { %6704 = vrcp.f32 %v614_v55  ;;  %v5420_v55 = vcombine.low %v1075_v48, %v1079_v52  ;;  %v1142_v52 = vld [vmem:[%s8500_s7 + $0x3e0] sm:$0xff] }
 0x447   :  { %6706 = vrcp.f32 %v768_v57  ;;  %v5411_v57 = vcombine.high %v1066_v53, %v1070_v54  ;;  %1882 = vmatprep.subr.bf16.mxu0 %v5421_v56 }
 0x453   :  { %v6705_v58 = vpop.eup %6704 }
 0x454   :  { %v6707_v61 = vpop.eup %6706  ;;  %v618_v0 = vmul.f32 0.0, %v6705_v58 }
 0x455   :  { %v772_v4 = vmul.f32 %v6707_v61, %v7269_v27  ;;  %v639_v27 = vlaneseq }
 0x457   :  { %v7333_v29 = vshrl.u32 %v639_v27, 7  ;;  %v1039_v27 = vld [vmem:[%s8500_s7 + $0xa8] sm:$0xff] }
 0x459   :  { %v7339_v33 = vsub.s32 %v638_v28, %v7333_v29 }
 0x4af   :  { %v621_v59 = vpop.permute.xlu1 %620 }
 0x4b0   :  { %v623_v60 = vmul.f32 %v6705_v58, %v621_v59  ;;  %v1071_v59 = vld [vmem:[%s8500_s7 + $0x1a8] sm:$0xff] }
 0x4b2   :  { %625 = vrot.lane.b32.xlu1 %v623_v60, %s7012_s10  ;;  %v1058_v60 = vld [vmem:[%s8500_s7 + $0x140] sm:$0xff] }
 0x4b5   :  { %v775_v62 = vpop.permute.xlu0 %774 }
 0x4b6   :  { %v777_v63 = vmul.f32 %v6707_v61, %v775_v62  ;;  %v1062_v62 = vld [vmem:[%s8500_s7 + $0x160] sm:$0xff] }
 0x4b8   :  { %779 = vrot.lane.b32.xlu0 %v777_v63, %s7012_s10  ;;  %v1059_v63 = vld [vmem:[%s8500_s7 + $0x148] sm:$0xff] }
 0x524   :  { %v626_v2 = vpop.permute.xlu1 %625 }
 0x525   :  { %v628_v3 = vadd.f32 %v626_v2, %v618_v0  ;;  %v1063_v0 = vld [vmem:[%s8500_s7 + $0x168] sm:$0xff]  ;;  %v5410_v2 = vcombine.low %v1066_v53, %v1070_v54 }
 0x526   :  { %v1139_v53 = vld [vmem:[%s8500_s7 + $0x3c8] sm:$0xff] }
 0x527   :  { %6708 = vtanh.f32 %v628_v3  ;;  %v1143_v54 = vld [vmem:[%s8500_s7 + $0x3e8] sm:$0xff] }
 0x52a   :  { %v780_v5 = vpop.permute.xlu0 %779 }
 0x52b   :  { %v782_v6 = vadd.f32 %v780_v5, %v772_v4  ;;  %v5403_v5 = vcombine.high %v1058_v60, %v1062_v62 }
 0x52d   :  { %6710 = vtanh.f32 %v782_v6  ;;  %v5405_v6 = vcombine.high %v1059_v63, %v1063_v0 }
 0x534   :  { %v6709_v7 = vpop.eup %6708 }
 0x535   :  { %631 = vrot.lane.b32.xlu1 %v6709_v7, %s7011_s0  ;;  %v1050_v7 = vld [vmem:[%s8500_s7 + $0x100] sm:$0xff] }
 0x53a   :  { %v6711_v8 = vpop.eup %6710 }
 0x53b   :  { %785 = vrot.lane.b32.xlu0 %v6711_v8, %s7011_s0  ;;  %v1054_v8 = vld [vmem:[%s8500_s7 + $0x120] sm:$0xff] }
 0x5a7   :  { %v632_v9 = vpop.permute.xlu1 %631 }
 0x5a8   :  { %v7325_v10 = vmul.f32 %v6705_v58, %v632_v9  ;;  %v1067_v58 = vld [vmem:[%s8500_s7 + $0x188] sm:$0xff] }
 0x5a9   :  { %v5412_v4 = vcombine.low %v1067_v58, %v1071_v59  ;;  %v1051_v9 = vld [vmem:[%s8500_s7 + $0x108] sm:$0xff] }
 0x5aa   :  { %864 = vrot.lane.b32.xlu1 %v7325_v10, %s7012_s10  ;;  %v642_v34 = vrot.slane %v7325_v10, %v7339_v33  ;;  %v666_v44 = vcombine.high %v7325_v10, %v7325_v10  ;;  %v1055_v10 = vld [vmem:[%s8500_s7 + $0x128] sm:$0xff] }
 0x5ac   :  { %v5348_v35 = vrot.slane %v642_v34, 9  ;;  %v655_v36 = vcombine.high %v642_v34, %v642_v34  ;;  %v673_v49 = vrot.slane %v666_v44, %v7339_v33  ;;  %v1022_v44 = vld [vmem:[%s8500_s7 + $0x20] sm:$0xff] }
 0x5ad   :  { %v786_v11 = vpop.permute.xlu0 %785 }
 0x5ae   :  { %v788_v12 = vmul.f32 %v6707_v61, %v786_v11  ;;  %v5413_v61 = vcombine.high %v1067_v58, %v1071_v59  ;;  %v5402_v11 = vcombine.low %v1058_v60, %v1062_v62  ;;  %v5485_v58 = vcombine.high %v1139_v53, %v1143_v54  ;;  %v1130_v59 = vld [vmem:[%s8500_s7 + $0x380] sm:$0xff]  ;;  %v1135_v62 = vld [vmem:[%s8500_s7 + $0x3a8] sm:$0xff] }
 0x5af   :  { %v1134_v60 = vld [vmem:[%s8500_s7 + $0x3a0] sm:$0xff] }
 0x5b0   :  { %790 = vrot.lane.b32.xlu0 %v788_v12, %s7012_s10  ;;  %v7406_v12 = vcombine.high %v673_v49, %v673_v49 }
 0x61c   :  { %v865_v13 = vpop.permute.xlu1 %864 }
 0x61d   :  { %6062 = vmatmul.mubr.msk.f32.vlgmr.msra.gmra.mxu0 %vm360_vm2, %v865_v13  ;;  %v5404_v13 = vcombine.low %v1059_v63, %v1063_v0  ;;  %v5482_v63 = vcombine.low %v1138_v51, %v1142_v52  ;;  %v5484_v0 = vcombine.low %v1139_v53, %v1143_v54  ;;  %v1086_v53 = vld [vmem:[%s8500_s7 + $0x220] sm:$0xff] }
 0x61e   :  { %1883 = vmatpush1.bf16.msra.mxu0 %v5420_v55 }
 0x61f   :  { %1884 = vmatprep.subr.bf16.mxu0 %v5413_v61  ;;  %v1131_v61 = vld [vmem:[%s8500_s7 + $0x388] sm:$0xff] }
 0x622   :  { %v791_v14 = vpop.permute.xlu0 %790  ;;  %1885 = vmatpush1.bf16.msra.mxu0 %v5412_v4  ;;  %v1122_v4 = vld [vmem:[%s8500_s7 + $0x340] sm:$0xff] }
 0x623   :  { %6051 = vmatmul.mubr.msk.f32.vlgmr.msra.gmra.mxu1 %vm360_vm2, %v791_v14  ;;  %v5395_v14 = vcombine.high %v1050_v7, %v1054_v8  ;;  %1886 = vmatprep.subr.bf16.mxu0 %v5405_v6  ;;  %v1123_v6 = vld [vmem:[%s8500_s7 + $0x348] sm:$0xff] }
 0x624   :  { %1842 = vmatpush1.bf16.msra.mxu1 %v5418_v50 }
 0x625   :  { %1843 = vmatprep.subr.bf16.mxu1 %v5411_v57  ;;  %v5483_v57 = vcombine.high %v1138_v51, %v1142_v52  ;;  %v1095_v51 = vld [vmem:[%s8500_s7 + $0x268] sm:$0xff]  ;;  %v1082_v52 = vld [vmem:[%s8500_s7 + $0x200] sm:$0xff] }
 0x626   :  { %1887 = vmatpush1.bf16.msra.mxu0 %v5404_v13 }
 0x628   :  { %1844 = vmatpush1.bf16.msra.mxu1 %v5410_v2  ;;  %v5475_v2 = vcombine.high %v1130_v59, %v1134_v60 }
 0x629   :  { %1845 = vmatprep.subr.bf16.mxu1 %v5403_v5  ;;  %v1126_v5 = vld [vmem:[%s8500_s7 + $0x360] sm:$0xff] }
 0x62a   :  { %v5466_v13 = vcombine.low %v1122_v4, %v1126_v5 }
 0x62c   :  { %1846 = vmatpush1.bf16.msra.mxu1 %v5402_v11 }
 0x62d   :  { %1847 = vmatprep.subr.bf16.mxu1 %v5395_v14 }
 0x6dd   :  { %v934_v15 = vpop.f32.mrf.mxu0 }
 0x6df   :  { %v6063_v16 = vpop.f32.mrf.mxu0 }
 0x6e0   :  { %v1042_v16 = vld [vmem:[%s8500_s7 + $0xc0] sm:$0xff] }
 0x6e3   :  { %v860_v17 = vpop.f32.mrf.mxu1 }
 0x6e4   :  { %v861_v18 = vadd.f32 %v5345_v42, %v860_v17  ;;  %v5349_v42 = vrot.slane %v655_v36, 9  ;;  %v1046_v17 = vld [vmem:[%s8500_s7 + $0xe0] sm:$0xff] }
 0x6e5   :  { %v6052_v19 = vpop.f32.mrf.mxu1  ;;  %v5386_v28 = vcombine.low %v1042_v16, %v1046_v17 }
 0x6e6   :  { %v938_v20 = vadd.f32 %v934_v15, %v861_v18  ;;  %v5397_v15 = vcombine.high %v1051_v9, %v1055_v10  ;;  %v1043_v18 = vld [vmem:[%s8500_s7 + $0xc8] sm:$0xff] }
 0x6e7   :  { %v1047_v19 = vld [vmem:[%s8500_s7 + $0xe8] sm:$0xff] }
 0x6e8   :  { %6712 = vtanh.f32 %v938_v20  ;;  %v5356_v22 = vmul.f32 -1.442695, %v938_v20  ;;  %v5394_v20 = vcombine.low %v1050_v7, %v1054_v8  ;;  %1888 = vmatprep.subr.bf16.mxu0 %v5397_v15  ;;  %v1127_v7 = vld [vmem:[%s8500_s7 + $0x368] sm:$0xff]  ;;  %v5474_v8 = vcombine.low %v1130_v59, %v1134_v60  ;;  %v1114_v15 = vld [vmem:[%s8500_s7 + $0x300] sm:$0xff] }
 0x6e9   :  { %v5469_v11 = vcombine.high %v1123_v6, %v1127_v7  ;;  %v5468_v14 = vcombine.low %v1123_v6, %v1127_v7  ;;  %v5427_v59 = vcombine.high %v1082_v52, %v1086_v53  ;;  %v1080_v6 = vld [vmem:[%s8500_s7 + $0x1f0] sm:$0xff]  ;;  %v1077_v7 = vld [vmem:[%s8500_s7 + $0x1d8] sm:$0xff] }
 0x6ea   :  { %6714 = vpow2.f32 %v5356_v22  ;;  %v5387_v22 = vcombine.high %v1042_v16, %v1046_v17  ;;  %1848 = vmatpush1.bf16.msra.mxu1 %v5394_v20  ;;  %v1118_v16 = vld [vmem:[%s8500_s7 + $0x320] sm:$0xff]  ;;  %v1115_v17 = vld [vmem:[%s8500_s7 + $0x308] sm:$0xff] }
 0x6eb   :  { %v5458_v20 = vcombine.low %v1114_v15, %v1118_v16 }
 0x6ec   :  { %1849 = vmatprep.subr.bf16.mxu1 %v5387_v22 }
 0x6ee   :  { %1850 = vmatpush1.bf16.msra.mxu1 %v5386_v28 }
 0x6f5   :  { %v6713_v21 = vpop.eup %6712 }
 0x6f6   :  { %948 = vrot.lane.b32.xlu0 %v6713_v21, %s7011_s0  ;;  %v5396_v21 = vcombine.low %v1051_v9, %v1055_v10  ;;  %v5476_v9 = vcombine.low %v1131_v61, %v1135_v62  ;;  %v5467_v10 = vcombine.high %v1122_v4, %v1126_v5  ;;  %v1076_v5 = vld [vmem:[%s8500_s7 + $0x1d0] sm:$0xff] }
 0x6f7   :  { %v6715_v23 = vpop.eup %6714 }
 0x6f8   :  { %v942_v24 = vadd.f32 1.0, %v6715_v23  ;;  %v5389_v23 = vcombine.high %v1043_v18, %v1047_v19  ;;  %1889 = vmatpush1.bf16.msra.mxu0 %v5396_v21 }
 0x6fa   :  { %6716 = vrcp.f32 %v942_v24  ;;  %v1034_v24 = vld [vmem:[%s8500_s7 + $0x80] sm:$0xff]  ;;  %1890 = vmatprep.subr.bf16.mxu0 %v5389_v23 }
 0x6fb   :  { %v1106_v23 = vld [vmem:[%s8500_s7 + $0x2c0] sm:$0xff] }
 0x707   :  { %v7335_v30 = vpop.eup %6716 }
 0x708   :  { %v946_v37 = vmul.f32 %v7335_v30, %v628_v3  ;;  %v5350_v3 = vrot.slane %v673_v49, 9 }
 0x768   :  { %v949_v31 = vpop.permute.xlu0 %948 }
 0x769   :  { %v951_v32 = vmul.f32 %v7335_v30, %v949_v31  ;;  %v5388_v31 = vcombine.low %v1043_v18, %v1047_v19  ;;  %v5459_v18 = vcombine.high %v1114_v15, %v1118_v16  ;;  %v1119_v19 = vld [vmem:[%s8500_s7 + $0x328] sm:$0xff] }
 0x76a   :  { %v5460_v21 = vcombine.low %v1115_v17, %v1119_v19  ;;  %v5461_v22 = vcombine.high %v1115_v17, %v1119_v19 }
 0x76b   :  { %953 = vrot.lane.b32.xlu1 %v951_v32, %s7012_s10  ;;  %v5379_v32 = vcombine.high %v1034_v24, %v1038_v25  ;;  %1891 = vmatpush1.bf16.msra.mxu0 %v5388_v31 }
 0x76d   :  { %1851 = vmatprep.subr.bf16.mxu1 %v5379_v32 }
 0x76f   :  { %643 = vrot.lane.b32.xlu1 %v642_v34, %s7012_s10  ;;  %v5381_v34 = vcombine.high %v1035_v26, %v1039_v27 }
 0x771   :  { %1892 = vmatprep.subr.bf16.mxu0 %v5381_v34 }
 0x773   :  { %650 = vrot.lane.b32.xlu1 %v5348_v35, %s7011_s0  ;;  %v1026_v35 = vld [vmem:[%s8500_s7 + $0x40] sm:$0xff] }
 0x777   :  { %656 = vrot.lane.b32.xlu1 %v655_v36, %s7014_s1  ;;  %v1030_v36 = vld [vmem:[%s8500_s7 + $0x60] sm:$0xff] }
 0x778   :  { %v5370_v47 = vcombine.low %v1026_v35, %v1030_v36 }
 0x7dd   :  { %v954_v38 = vpop.permute.xlu1 %953 }
 0x7de   :  { %v956_v39 = vadd.f32 %v954_v38, %v946_v37  ;;  %v1027_v37 = vld [vmem:[%s8500_s7 + $0x48] sm:$0xff] }
 0x7df   :  { %v1031_v38 = vld [vmem:[%s8500_s7 + $0x68] sm:$0xff] }
 0x7e0   :  { %6718 = vtanh.f32 %v956_v39  ;;  %v5378_v39 = vcombine.low %v1034_v24, %v1038_v25  ;;  %v5372_v48 = vcombine.low %v1027_v37, %v1031_v38  ;;  %v1110_v24 = vld [vmem:[%s8500_s7 + $0x2e0] sm:$0xff]  ;;  %v1107_v25 = vld [vmem:[%s8500_s7 + $0x2c8] sm:$0xff] }
 0x7e1   :  { %v644_v40 = vpop.permute.xlu1 %643  ;;  %v5450_v28 = vcombine.low %v1106_v23, %v1110_v24 }
 0x7e2   :  { %647 = vst.msk [vmem:[#allocation2] sm:$0x1] %vm646_vm3, %v644_v40  ;;  %v5380_v40 = vcombine.low %v1035_v26, %v1039_v27  ;;  %1852 = vmatpush1.bf16.msra.mxu1 %v5378_v39  ;;  %v5451_v26 = vcombine.high %v1106_v23, %v1110_v24  ;;  %v1111_v27 = vld [vmem:[%s8500_s7 + $0x2e8] sm:$0xff]  ;;  %v1068_v24 = vld [vmem:[%s8500_s7 + $0x190] sm:$0xff] }
 0x7e3   :  { %v5452_v31 = vcombine.low %v1107_v25, %v1111_v27  ;;  %v5453_v32 = vcombine.high %v1107_v25, %v1111_v27  ;;  %v1072_v25 = vld [vmem:[%s8500_s7 + $0x1b0] sm:$0xff]  ;;  %v1073_v27 = vld [vmem:[%s8500_s7 + $0x1b8] sm:$0xff] }
 0x7e4   :  { %1893 = vmatpush1.bf16.msra.mxu0 %v5380_v40  ;;  %v1103_v40 = vld [vmem:[%s8500_s7 + $0x2a8] sm:$0xff] }
 0x7e5   :  { %v651_v41 = vpop.permute.xlu1 %650 }
 0x7e6   :  { %654 = vst.msk [vmem:[#allocation2] sm:$0x1] %vm653_vm4, %v651_v41  ;;  %v5371_v41 = vcombine.high %v1026_v35, %v1030_v36  ;;  %v1098_v35 = vld [vmem:[%s8500_s7 + $0x280] sm:$0xff] }
 0x7e7   :  { %v1102_v36 = vld [vmem:[%s8500_s7 + $0x2a0] sm:$0xff] }
 0x7e8   :  { %1853 = vmatprep.subr.bf16.mxu1 %v5371_v41  ;;  %v5443_v39 = vcombine.high %v1098_v35, %v1102_v36  ;;  %v5442_v41 = vcombine.low %v1098_v35, %v1102_v36  ;;  %v1064_v36 = vld [vmem:[%s8500_s7 + $0x170] sm:$0xff] }
 0x7e9   :  { %v657_v43 = vpop.permute.xlu1 %656  ;;  %1854 = vmatpush1.bf16.msra.mxu1 %v5370_v47  ;;  %v1091_v47 = vld [vmem:[%s8500_s7 + $0x248] sm:$0xff] }
 0x7ea   :  { %660 = vst.msk [vmem:[#allocation2] sm:$0x1] %vm659_vm5, %v657_v43  ;;  %v1018_v43 = vld [vmem:[%s8500_s7] sm:$0xff] }
 0x7eb   :  { %665 = vst.msk [vmem:[#allocation2] sm:$0x1] %vm664_vm6, %v5349_v42  ;;  %v5373_v42 = vcombine.high %v1027_v37, %v1031_v38  ;;  %v5362_v55 = vcombine.low %v1018_v43, %v1022_v44  ;;  %v1099_v37 = vld [vmem:[%s8500_s7 + $0x288] sm:$0xff] }
 0x7ed   :  { %v6719_v45 = vpop.eup %6718  ;;  %1894 = vmatprep.subr.bf16.mxu0 %v5373_v42  ;;  %v5444_v42 = vcombine.low %v1099_v37, %v1103_v40 }
 0x7ee   :  { %959 = vrot.lane.b32.xlu0 %v6719_v45, %s7011_s0  ;;  %v1019_v45 = vld [vmem:[%s8500_s7 + $0x8] sm:$0xff]  ;;  %1895 = vmatpush1.bf16.msra.mxu0 %v5372_v48 }
 0x7ef   :  { %v5365_v50 = vcombine.high %v1019_v45, %v1023_v46  ;;  %v5364_v56 = vcombine.low %v1019_v45, %v1023_v46  ;;  %v1090_v46 = vld [vmem:[%s8500_s7 + $0x240] sm:$0xff] }
 0x7f1   :  { %1896 = vmatprep.subr.bf16.mxu0 %v5365_v50 }
 0x7f2   :  { %674 = vrot.lane.b32.xlu0 %v673_v49, %s7012_s10  ;;  %v5363_v49 = vcombine.high %v1018_v43, %v1022_v44  ;;  %1897 = vmatpush1.bf16.msra.mxu0 %v5364_v56  ;;  %v5445_v43 = vcombine.high %v1099_v37, %v1103_v40  ;;  %v1083_v56 = vld [vmem:[%s8500_s7 + $0x208] sm:$0xff]  ;;  %v1061_v37 = vld [vmem:[%s8500_s7 + $0x158] sm:$0xff] }
 0x7f3   :  { %1898 = vmatprep.subr.bf16.mxu0 %v5485_v58  ;;  %v5437_v58 = vcombine.high %v1091_v47, %v1095_v51 }
 0x7f4   :  { %1855 = vmatprep.subr.bf16.mxu1 %v5363_v49 }
 0x7f5   :  { %1856 = vmatpush1.bf16.msra.mxu1 %v5362_v55  ;;  %v5436_v55 = vcombine.low %v1091_v47, %v1095_v51  ;;  %v1048_v51 = vld [vmem:[%s8500_s7 + $0xf0] sm:$0xff] }
 0x7f6   :  { %680 = vrot.lane.b32.xlu0 %v5350_v3, %s7011_s0  ;;  %1857 = vmatprep.subr.bf16.mxu1 %v5483_v57  ;;  %v5477_v3 = vcombine.high %v1131_v61, %v1135_v62  ;;  %v1087_v57 = vld [vmem:[%s8500_s7 + $0x228] sm:$0xff] }
 0x7f7   :  { %1899 = vmatpush2.bf16.msra.mxu0 %v5484_v0  ;;  %v5429_v61 = vcombine.high %v1083_v56, %v1087_v57  ;;  %v5428_v0 = vcombine.low %v1083_v56, %v1087_v57 }
 0x7f8   :  { %1900 = vmatprep.subr.bf16.mxu0 %v5477_v3  ;;  %v5351_v3 = vrot.slane %v7406_v12, 9 }
 0x7f9   :  { %1858 = vmatpush2.bf16.msra.mxu1 %v5482_v63 }
 0x7fa   :  { %685 = vrot.lane.b32.xlu0 %v7406_v12, %s7014_s1  ;;  %1859 = vmatprep.subr.bf16.mxu1 %v5475_v2  ;;  %v5423_v12 = vcombine.high %v1076_v5, %v1080_v6 }
 0x7fb   :  { %1901 = vmatpush2.bf16.msra.mxu0 %v5476_v9  ;;  %v1081_v9 = vld [vmem:[%s8500_s7 + $0x1f8] sm:$0xff] }
 0x7fc   :  { %1902 = vmatprep.subr.bf16.mxu0 %v5469_v11  ;;  %v5424_v11 = vcombine.low %v1077_v7, %v1081_v9 }
 0x7fd   :  { %1860 = vmatpush2.bf16.msra.mxu1 %v5474_v8 }
 0x7fe   :  { %1861 = vmatprep.subr.bf16.mxu1 %v5467_v10  ;;  %v5422_v10 = vcombine.low %v1076_v5, %v1080_v6  ;;  %v1033_v5 = vld [vmem:[%s8500_s7 + $0x78] sm:$0xff] }
 0x7ff   :  { %1903 = vmatpush2.bf16.msra.mxu0 %v5468_v14 }
 0x800   :  { %1904 = vmatprep.subr.bf16.mxu0 %v5461_v22 }
 0x801   :  { %1862 = vmatpush2.bf16.msra.mxu1 %v5466_v13  ;;  %v5425_v13 = vcombine.high %v1077_v7, %v1081_v9  ;;  %v1020_v9 = vld [vmem:[%s8500_s7 + $0x10] sm:$0xff] }
 0x802   :  { %1863 = vmatprep.subr.bf16.mxu1 %v5459_v18 }
 0x803   :  { %1905 = vmatpush2.bf16.msra.mxu0 %v5460_v21 }
 0x804   :  { %1906 = vmatprep.subr.bf16.mxu0 %v5453_v32  ;;  %v1060_v32 = vld [vmem:[%s8500_s7 + $0x150] sm:$0xff] }
 0x805   :  { %1864 = vmatpush2.bf16.msra.mxu1 %v5458_v20 }
 0x806   :  { %1865 = vmatprep.subr.bf16.mxu1 %v5451_v26  ;;  %v1069_v26 = vld [vmem:[%s8500_s7 + $0x198] sm:$0xff] }
 0x807   :  { %1907 = vmatpush2.bf16.msra.mxu0 %v5452_v31  ;;  %v5417_v35 = vcombine.high %v1069_v26, %v1073_v27  ;;  %v5416_v40 = vcombine.low %v1069_v26, %v1073_v27  ;;  %v1132_v26 = vld [vmem:[%s8500_s7 + $0x390] sm:$0xff] }
 0x808   :  { %1908 = vmatprep.subr.bf16.mxu0 %v5445_v43  ;;  %v1052_v43 = vld [vmem:[%s8500_s7 + $0x110] sm:$0xff] }
 0x809   :  { %1866 = vmatpush2.bf16.msra.mxu1 %v5450_v28  ;;  %v1136_v27 = vld [vmem:[%s8500_s7 + $0x3b0] sm:$0xff] }
 0x80a   :  { %1867 = vmatprep.subr.bf16.mxu1 %v5443_v39  ;;  %v5414_v39 = vcombine.low %v1068_v24, %v1072_v25 }
 0x80b   :  { %1909 = vmatpush2.bf16.msra.mxu0 %v5444_v42 }
 0x80c   :  { %1910 = vmatprep.subr.bf16.mxu0 %v5437_v58  ;;  %v1036_v58 = vld [vmem:[%s8500_s7 + $0x90] sm:$0xff] }
 0x80d   :  { %1868 = vmatpush2.bf16.msra.mxu1 %v5442_v41  ;;  %v5407_v41 = vcombine.high %v1060_v32, %v1064_v36 }
 0x80f   :  { %1911 = vmatpush2.bf16.msra.mxu0 %v5436_v55 }
 0x810   :  { %1912 = vmatprep.subr.bf16.mxu0 %v5429_v61  ;;  %v1041_v61 = vld [vmem:[%s8500_s7 + $0xb8] sm:$0xff] }
 0x813   :  { %1913 = vmatpush2.bf16.msra.mxu0 %v5428_v0 }
 0x814   :  { %1964 = vmatprep.subr.bf16.mxu0 %v5425_v13  ;;  %v1025_v13 = vld [vmem:[%s8500_s7 + $0x38] sm:$0xff] }
 0x860   :  { %v960_v34 = vpop.permute.xlu0 %959 }
 0x861   :  { %v962_v38 = vmul.f32 %v7335_v30, %v960_v34  ;;  %v1094_v30 = vld [vmem:[%s8500_s7 + $0x260] sm:$0xff]  ;;  %v5415_v34 = vcombine.high %v1068_v24, %v1072_v25 }
 0x862   :  { %v5434_v49 = vcombine.low %v1090_v46, %v1094_v30  ;;  %v5435_v50 = vcombine.high %v1090_v46, %v1094_v30  ;;  %v1057_v46 = vld [vmem:[%s8500_s7 + $0x138] sm:$0xff]  ;;  %v5406_v30 = vcombine.low %v1060_v32, %v1064_v36  ;;  %v5479_v36 = vcombine.high %v1132_v26, %v1136_v27 }
 0x863   :  { %v970_v44 = vrot.slane %v962_v38, %v7339_v33  ;;  %v990_v45 = vcombine.high %v962_v38, %v962_v38  ;;  %v1065_v38 = vld [vmem:[%s8500_s7 + $0x178] sm:$0xff] }
 0x864   :  { %v675_v48 = vpop.permute.xlu0 %674  ;;  %1869 = vmatprep.subr.bf16.mxu1 %v5435_v50  ;;  %v5409_v42 = vcombine.high %v1061_v37, %v1065_v38  ;;  %v5408_v47 = vcombine.low %v1061_v37, %v1065_v38  ;;  %v1044_v50 = vld [vmem:[%s8500_s7 + $0xd0] sm:$0xff]  ;;  %v1137_v32 = vld [vmem:[%s8500_s7 + $0x3b8] sm:$0xff] }
 0x865   :  { %677 = vst.msk [vmem:[#allocation2 + $0x2] sm:$0x1] %vm646_vm3, %v675_v48  ;;  %971 = vrot.lane.b32.xlu1 %v970_v44, %s7012_s10  ;;  %v997_v54 = vrot.slane %v990_v45, %v7339_v33  ;;  %v5357_v60 = vrot.slane %v970_v44, 9  ;;  %1870 = vmatpush2.bf16.msra.mxu1 %v5434_v49  ;;  %v5426_v33 = vcombine.low %v1082_v52, %v1086_v53  ;;  %v1053_v45 = vld [vmem:[%s8500_s7 + $0x118] sm:$0xff]  ;;  %v1124_v38 = vld [vmem:[%s8500_s7 + $0x350] sm:$0xff] }
 0x866   :  { %1871 = vmatprep.subr.bf16.mxu1 %v5427_v59  ;;  %v981_v2 = vcombine.high %v970_v44, %v970_v44  ;;  %v1056_v44 = vld [vmem:[%s8500_s7 + $0x130] sm:$0xff]  ;;  %v5401_v49 = vcombine.high %v1053_v45, %v1057_v46  ;;  %v1045_v52 = vld [vmem:[%s8500_s7 + $0xd8] sm:$0xff]  ;;  %v5400_v55 = vcombine.low %v1053_v45, %v1057_v46  ;;  %v5391_v56 = vcombine.high %v1044_v50, %v1048_v51 }
 0x867   :  { %998 = vrot.lane.b32.xlu0 %v997_v54, %s7012_s10  ;;  %v5359_v63 = vrot.slane %v997_v54, 9  ;;  %v1008_v8 = vcombine.high %v997_v54, %v997_v54  ;;  %v5399_v48 = vcombine.high %v1052_v43, %v1056_v44  ;;  %v1049_v53 = vld [vmem:[%s8500_s7 + $0xf8] sm:$0xff]  ;;  %v5398_v54 = vcombine.low %v1052_v43, %v1056_v44  ;;  %v1040_v59 = vld [vmem:[%s8500_s7 + $0xb0] sm:$0xff] }
 0x868   :  { %v681_v62 = vpop.permute.xlu0 %680  ;;  %v5358_v18 = vrot.slane %v981_v2, 9  ;;  %v5393_v57 = vcombine.high %v1045_v52, %v1049_v53  ;;  %v5382_v6 = vcombine.low %v1036_v58, %v1040_v59  ;;  %v1116_v46 = vld [vmem:[%s8500_s7 + $0x310] sm:$0xff] }
 0x869   :  { %683 = vst.msk [vmem:[#allocation2 + $0x2] sm:$0x1] %vm653_vm4, %v681_v62  ;;  %977 = vrot.lane.b32.xlu1 %v5357_v60, %s7011_s0  ;;  %1872 = vmatpush2.bf16.msra.mxu1 %v5426_v33  ;;  %v5360_v20 = vrot.slane %v1008_v8, 9  ;;  %v1037_v60 = vld [vmem:[%s8500_s7 + $0x98] sm:$0xff]  ;;  %v5390_v62 = vcombine.low %v1044_v50, %v1048_v51  ;;  %v5392_v33 = vcombine.low %v1045_v52, %v1049_v53  ;;  %v1108_v53 = vld [vmem:[%s8500_s7 + $0x2d0] sm:$0xff] }
 0x86a   :  { %1923 = vmatprep.subr.bf16.mxu1 %v5423_v12  ;;  %v5385_v0 = vcombine.high %v1037_v60, %v1041_v61  ;;  %v5384_v7 = vcombine.low %v1037_v60, %v1041_v61  ;;  %v1100_v61 = vld [vmem:[%s8500_s7 + $0x290] sm:$0xff] }
 0x86b   :  { %1004 = vrot.lane.b32.xlu0 %v5359_v63, %s7011_s0  ;;  %v5383_v63 = vcombine.high %v1036_v58, %v1040_v59 }
 0x86c   :  { %v686_v4 = vpop.permute.xlu0 %685 }
 0x86d   :  { %688 = vst.msk [vmem:[#allocation2 + $0x2] sm:$0x1] %vm659_vm5, %v686_v4  ;;  %982 = vrot.lane.b32.xlu1 %v981_v2, %s7014_s1  ;;  %v1028_v2 = vld [vmem:[%s8500_s7 + $0x50] sm:$0xff]  ;;  %v1029_v4 = vld [vmem:[%s8500_s7 + $0x58] sm:$0xff] }
 0x86e   :  { %692 = vst.msk [vmem:[#allocation2 + $0x2] sm:$0x1] %vm664_vm6, %v5351_v3  ;;  %v1032_v3 = vld [vmem:[%s8500_s7 + $0x70] sm:$0xff]  ;;  %v5377_v12 = vcombine.high %v1029_v4, %v1033_v5 }
 0x86f   :  { %1009 = vrot.lane.b32.xlu0 %v1008_v8, %s7014_s1  ;;  %v5375_v8 = vcombine.high %v1028_v2, %v1032_v3 }
 0x8d7   :  { %v972_v14 = vpop.permute.xlu1 %971 }
 0x8d8   :  { %974 = vst.msk [vmem:[#allocation2 + $0x1] sm:$0x1] %vm646_vm3, %v972_v14  ;;  %v5374_v14 = vcombine.low %v1028_v2, %v1032_v3 }
 0x8d9   :  { %v999_v15 = vpop.permute.xlu0 %998 }
 0x8da   :  { %1001 = vst.msk [vmem:[#allocation2 + $0x3] sm:$0x1] %vm646_vm3, %v999_v15  ;;  %v5376_v15 = vcombine.low %v1029_v4, %v1033_v5  ;;  %v1092_v5 = vld [vmem:[%s8500_s7 + $0x250] sm:$0xff] }
 0x8db   :  { %v978_v16 = vpop.permute.xlu1 %977 }
 0x8dc   :  { %980 = vst.msk [vmem:[#allocation2 + $0x1] sm:$0x1] %vm653_vm4, %v978_v16 }
 0x8dd   :  { %v1005_v17 = vpop.permute.xlu0 %1004 }
 0x8de   :  { %1007 = vst.msk [vmem:[#allocation2 + $0x3] sm:$0x1] %vm653_vm4, %v1005_v17 }
 0x8df   :  { %v983_v19 = vpop.permute.xlu1 %982 }
 0x8e0   :  { %985 = vst.msk [vmem:[#allocation2 + $0x1] sm:$0x1] %vm659_vm5, %v983_v19  ;;  %v1144_v19 = vld [vmem:[%s8500_s7 + $0x3f0] sm:$0xff] }
 0x8e1   :  { %989 = vst.msk [vmem:[#allocation2 + $0x1] sm:$0x1] %vm664_vm6, %v5358_v18  ;;  %v1010_v21 = vpop.permute.xlu0 %1009  ;;  %v1140_v18 = vld [vmem:[%s8500_s7 + $0x3d0] sm:$0xff] }
 0x8e2   :  { %1012 = vst.msk [vmem:[#allocation2 + $0x3] sm:$0x1] %vm659_vm5, %v1010_v21  ;;  %v1145_v21 = vld [vmem:[%s8500_s7 + $0x3f8] sm:$0xff]  ;;  %v5487_v24 = vcombine.high %v1140_v18, %v1144_v19 }
 0x8e3   :  { %1016 = vst.msk [vmem:[#allocation2 + $0x3] sm:$0x1] %vm664_vm6, %v5360_v20  ;;  %v1141_v20 = vld [vmem:[%s8500_s7 + $0x3d8] sm:$0xff] }
 0x8e4   :  { %v5489_v25 = vcombine.high %v1141_v20, %v1145_v21 }
 0x8ea   :  { %v5361_v22 = vld.sshfl [vmem:[#allocation2] sm:$0x33 pattern:$0x76325410] }
 0x8eb   :  { %v1154_v23 = vcombine.high %v5361_v22, %v5361_v22  ;;  %v7600_v31 = vpack.c.bf16 %v5361_v22, %v5361_v22 }
 0x8ed   :  { %v1158_v28 = vpack.c.bf16 %v1154_v23, %v1154_v23 }
 0x8ef   :  { %1873 = vmatprep.mubr.bf16.mxu1 %v1158_v28  ;;  %1914 = vmatprep.mubr.bf16.mxu0 %v1158_v28 }
 0x8f0   :  { %1874 = vmatmul.mubr.bf16.vlgmr.msra.gmra.mxu1 %v7600_v31  ;;  %1915 = vmatmul.mubr.bf16.vlgmr.msra.gmra.mxu0 %v7600_v31 }
 0x8f1   :  { %1924 = vmatpush1.bf16.msra.mxu1 %v5422_v10  ;;  %1965 = vmatpush1.bf16.msra.mxu0 %v5424_v11  ;;  %v1024_v10 = vld [vmem:[%s8500_s7 + $0x30] sm:$0xff]  ;;  %v1021_v11 = vld [vmem:[%s8500_s7 + $0x18] sm:$0xff] }
 0x8f2   :  { %1955 = vmatprep.mubr.bf16.mxu1 %v1158_v28  ;;  %1996 = vmatprep.mubr.bf16.mxu0 %v1158_v28  ;;  %v5367_v16 = vcombine.high %v1020_v9, %v1024_v10  ;;  %v5369_v17 = vcombine.high %v1021_v11, %v1025_v13  ;;  %v5366_v22 = vcombine.low %v1020_v9, %v1024_v10  ;;  %v1133_v28 = vld [vmem:[%s8500_s7 + $0x398] sm:$0xff] }
 0x8f3   :  { %1925 = vmatprep.subr.bf16.mxu1 %v5415_v34  ;;  %1966 = vmatprep.subr.bf16.mxu0 %v5417_v35  ;;  %v5368_v23 = vcombine.low %v1021_v11, %v1025_v13  ;;  %v5486_v34 = vcombine.low %v1140_v18, %v1144_v19  ;;  %v5488_v35 = vcombine.low %v1141_v20, %v1145_v21  ;;  %v1084_v13 = vld [vmem:[%s8500_s7 + $0x210] sm:$0xff] }
 0x8f4   :  { %v5481_v37 = vcombine.high %v1133_v28, %v1137_v32  ;;  %v5480_v43 = vcombine.low %v1133_v28, %v1137_v32  ;;  %v6116_v28 = vld [vmem:[#allocation12 + $0x164] ss:$8 sps:$4 sm:$0xff]   ;;  %v6111_v32 = vld [vmem:[#allocation12 + $0x60] ss:$8 sps:$4 sm:$0xff]  }
 0x8f5   :  { %1926 = vmatpush1.bf16.msra.mxu1 %v5414_v39  ;;  %1967 = vmatpush1.bf16.msra.mxu0 %v5416_v40  ;;  %v1128_v39 = vld [vmem:[%s8500_s7 + $0x370] sm:$0xff]  ;;  %v1125_v40 = vld [vmem:[%s8500_s7 + $0x358] sm:$0xff] }
 0x8f6   :  { %1927 = vmatprep.subr.bf16.mxu1 %v5407_v41  ;;  %1968 = vmatprep.subr.bf16.mxu0 %v5409_v42  ;;  %v1129_v41 = vld [vmem:[%s8500_s7 + $0x378] sm:$0xff]  ;;  %v5478_v42 = vcombine.low %v1132_v26, %v1136_v27  ;;  %v5471_v44 = vcombine.high %v1124_v38, %v1128_v39  ;;  %v6113_v27 = vld [vmem:[#allocation12 + $0x64] ss:$8 sps:$4 sm:$0xff]  }
 0x8f7   :  { %v5473_v45 = vcombine.high %v1125_v40, %v1129_v41  ;;  %v5472_v50 = vcombine.low %v1125_v40, %v1129_v41  ;;  %v6108_v26 = vld [vmem:[#allocation12 + $0x170] ss:$8 sps:$4 sm:$0xff]   ;;  %v6128_v40 = vld [vmem:[#allocation12 + $0x144] ss:$8 sps:$4 sm:$0xff]   ;;  %v6123_v41 = vld [vmem:[#allocation12 + $0x40] ss:$8 sps:$4 sm:$0xff]  }
 0x8f9   :  { %1928 = vmatpush1.bf16.msra.mxu1 %v5406_v30  ;;  %1969 = vmatpush1.bf16.msra.mxu0 %v5408_v47  ;;  %v1120_v30 = vld [vmem:[%s8500_s7 + $0x330] sm:$0xff]  ;;  %v1117_v47 = vld [vmem:[%s8500_s7 + $0x318] sm:$0xff] }
 0x8fa   :  { %1929 = vmatprep.subr.bf16.mxu1 %v5399_v48  ;;  %1970 = vmatprep.subr.bf16.mxu0 %v5401_v49  ;;  %v1121_v48 = vld [vmem:[%s8500_s7 + $0x338] sm:$0xff]  ;;  %v5470_v49 = vcombine.low %v1124_v38, %v1128_v39  ;;  %v5463_v51 = vcombine.high %v1116_v46, %v1120_v30  ;;  %v6125_v39 = vld [vmem:[#allocation12 + $0x44] ss:$8 sps:$4 sm:$0xff]  }
 0x8fb   :  { %v5465_v52 = vcombine.high %v1117_v47, %v1121_v48  ;;  %v5464_v58 = vcombine.low %v1117_v47, %v1121_v48  ;;  %v6120_v38 = vld [vmem:[#allocation12 + $0x150] ss:$8 sps:$4 sm:$0xff]   ;;  %v6135_v47 = vld [vmem:[#allocation12 + $0x20] ss:$8 sps:$4 sm:$0xff]  }
 0x8fc   :  { %v6138_v48 = vld [vmem:[#allocation12 + $0x120] ss:$8 sps:$4 sm:$0xff]  }
 0x8fd   :  { %1930 = vmatpush1.bf16.msra.mxu1 %v5398_v54  ;;  %1971 = vmatpush1.bf16.msra.mxu0 %v5400_v55  ;;  %v1112_v54 = vld [vmem:[%s8500_s7 + $0x2f0] sm:$0xff]  ;;  %v1109_v55 = vld [vmem:[%s8500_s7 + $0x2d8] sm:$0xff] }
 0x8fe   :  { %1931 = vmatprep.subr.bf16.mxu1 %v5391_v56  ;;  %1972 = vmatprep.subr.bf16.mxu0 %v5393_v57  ;;  %v1113_v56 = vld [vmem:[%s8500_s7 + $0x2f8] sm:$0xff]  ;;  %v5462_v57 = vcombine.low %v1116_v46, %v1120_v30  ;;  %v5455_v59 = vcombine.high %v1108_v53, %v1112_v54  ;;  %v6137_v46 = vld [vmem:[#allocation12 + $0x24] ss:$8 sps:$4 sm:$0xff]  }
 0x8ff   :  { %v5457_v60 = vcombine.high %v1109_v55, %v1113_v56  ;;  %v5456_v2 = vcombine.low %v1109_v55, %v1113_v56  ;;  %v6140_v30 = vld [vmem:[#allocation12 + $0x124] ss:$8 sps:$4 sm:$0xff]   ;;  %v6147_v55 = vld [vmem:[#allocation12] ss:$8 sps:$4 sm:$0xff]  }
 0x900   :  { %v6150_v56 = vld [vmem:[#allocation12 + $0x100] ss:$8 sps:$4 sm:$0xff]  }
 0x901   :  { %1932 = vmatpush1.bf16.msra.mxu1 %v5390_v62  ;;  %1973 = vmatpush1.bf16.msra.mxu0 %v5392_v33  ;;  %v1104_v62 = vld [vmem:[%s8500_s7 + $0x2b0] sm:$0xff]  ;;  %v1101_v33 = vld [vmem:[%s8500_s7 + $0x298] sm:$0xff] }
 0x902   :  { %1933 = vmatprep.subr.bf16.mxu1 %v5383_v63  ;;  %1974 = vmatprep.subr.bf16.mxu0 %v5385_v0  ;;  %v1105_v63 = vld [vmem:[%s8500_s7 + $0x2b8] sm:$0xff]  ;;  %v5454_v0 = vcombine.low %v1108_v53, %v1112_v54  ;;  %v5447_v3 = vcombine.high %v1100_v61, %v1104_v62  ;;  %v6149_v53 = vld [vmem:[#allocation12 + $0x4] ss:$8 sps:$4 sm:$0xff]  }
 0x903   :  { %v5449_v4 = vcombine.high %v1101_v33, %v1105_v63  ;;  %v5448_v9 = vcombine.low %v1101_v33, %v1105_v63  ;;  %v6152_v54 = vld [vmem:[#allocation12 + $0x104] ss:$8 sps:$4 sm:$0xff]   ;;  %v6159_v33 = vld [vmem:[#allocation12 + $0xe0] ss:$8 sps:$4 sm:$0xff]  }
 0x904   :  { %v6162_v63 = vld [vmem:[#allocation12 + $0x1e0] ss:$8 sps:$4 sm:$0xff]  }
 0x905   :  { %1934 = vmatpush1.bf16.msra.mxu1 %v5382_v6  ;;  %1975 = vmatpush1.bf16.msra.mxu0 %v5384_v7  ;;  %v1096_v6 = vld [vmem:[%s8500_s7 + $0x270] sm:$0xff]  ;;  %v1093_v7 = vld [vmem:[%s8500_s7 + $0x258] sm:$0xff] }
 0x906   :  { %1935 = vmatprep.subr.bf16.mxu1 %v5375_v8  ;;  %1976 = vmatprep.subr.bf16.mxu0 %v5377_v12  ;;  %v1097_v8 = vld [vmem:[%s8500_s7 + $0x278] sm:$0xff]  ;;  %v5446_v12 = vcombine.low %v1100_v61, %v1104_v62  ;;  %v5439_v10 = vcombine.high %v1092_v5, %v1096_v6  ;;  %v6161_v61 = vld [vmem:[#allocation12 + $0xe4] ss:$8 sps:$4 sm:$0xff]  }
 0x907   :  { %v5441_v11 = vcombine.high %v1093_v7, %v1097_v8  ;;  %v5440_v18 = vcombine.low %v1093_v7, %v1097_v8  ;;  %v6164_v62 = vld [vmem:[#allocation12 + $0x1e4] ss:$8 sps:$4 sm:$0xff]   ;;  %v6171_v7 = vld [vmem:[#allocation12 + $0xc0] ss:$8 sps:$4 sm:$0xff]  }
 0x908   :  { %v6174_v8 = vld [vmem:[#allocation12 + $0x1c0] ss:$8 sps:$4 sm:$0xff]  }
 0x909   :  { %1936 = vmatpush1.bf16.msra.mxu1 %v5374_v14  ;;  %1977 = vmatpush1.bf16.msra.mxu0 %v5376_v15  ;;  %v1088_v14 = vld [vmem:[%s8500_s7 + $0x230] sm:$0xff]  ;;  %v1085_v15 = vld [vmem:[%s8500_s7 + $0x218] sm:$0xff] }
 0x90a   :  { %1937 = vmatprep.subr.bf16.mxu1 %v5367_v16  ;;  %1978 = vmatprep.subr.bf16.mxu0 %v5369_v17  ;;  %v1089_v16 = vld [vmem:[%s8500_s7 + $0x238] sm:$0xff]  ;;  %v5438_v17 = vcombine.low %v1092_v5, %v1096_v6  ;;  %v5431_v19 = vcombine.high %v1084_v13, %v1088_v14  ;;  %v5430_v21 = vcombine.low %v1084_v13, %v1088_v14  ;;  %v6173_v5 = vld [vmem:[#allocation12 + $0xc4] ss:$8 sps:$4 sm:$0xff]  }
 0x90b   :  { %v5433_v20 = vcombine.high %v1085_v15, %v1089_v16  ;;  %v6176_v6 = vld [vmem:[#allocation12 + $0x1c4] ss:$8 sps:$4 sm:$0xff]  }
 0x90c   :  { %v6185_v13 = vld [vmem:[#allocation12 + $0xa4] ss:$8 sps:$4 sm:$0xff]  }
 0x90d   :  { %1938 = vmatpush1.bf16.msra.mxu1 %v5366_v22  ;;  %1979 = vmatpush1.bf16.msra.mxu0 %v5368_v23  ;;  %v5432_v22 = vcombine.low %v1085_v15, %v1089_v16  ;;  %v6107_v23 = vld [vmem:[#allocation12 + $0x74] ss:$8 sps:$4 sm:$0xff]   ;;  %v6188_v14 = vld [vmem:[#allocation12 + $0x1a4] ss:$8 sps:$4 sm:$0xff]   ;;  %v6183_v15 = vld [vmem:[#allocation12 + $0xa0] ss:$8 sps:$4 sm:$0xff]  }
 0x90e   :  { %1939 = vmatprep.subr.bf16.mxu1 %v5487_v24  ;;  %1980 = vmatprep.subr.bf16.mxu0 %v5489_v25  ;;  %v6110_v24 = vld [vmem:[#allocation12 + $0x174] ss:$8 sps:$4 sm:$0xff]   ;;  %v6105_v25 = vld [vmem:[#allocation12 + $0x70] ss:$8 sps:$4 sm:$0xff]   ;;  %v6186_v16 = vld [vmem:[#allocation12 + $0x1a0] ss:$8 sps:$4 sm:$0xff]  }
 0x911   :  { %1940 = vmatpush2.bf16.msra.mxu1 %v5486_v34  ;;  %1981 = vmatpush2.bf16.msra.mxu0 %v5488_v35  ;;  %v6114_v34 = vld [vmem:[#allocation12 + $0x160] ss:$8 sps:$4 sm:$0xff]   ;;  %v6119_v35 = vld [vmem:[#allocation12 + $0x54] ss:$8 sps:$4 sm:$0xff]  }
 0x912   :  { %1941 = vmatprep.subr.bf16.mxu1 %v5479_v36  ;;  %1982 = vmatprep.subr.bf16.mxu0 %v5481_v37  ;;  %v6122_v36 = vld [vmem:[#allocation12 + $0x154] ss:$8 sps:$4 sm:$0xff]   ;;  %v6117_v37 = vld [vmem:[#allocation12 + $0x50] ss:$8 sps:$4 sm:$0xff]  }
 0x915   :  { %1942 = vmatpush2.bf16.msra.mxu1 %v5478_v42  ;;  %1983 = vmatpush2.bf16.msra.mxu0 %v5480_v43  ;;  %v6131_v42 = vld [vmem:[#allocation12 + $0x34] ss:$8 sps:$4 sm:$0xff]  }
 0x916   :  { %1943 = vmatprep.subr.bf16.mxu1 %v5471_v44  ;;  %1984 = vmatprep.subr.bf16.mxu0 %v5473_v45  ;;  %v6134_v43 = vld [vmem:[#allocation12 + $0x134] ss:$8 sps:$4 sm:$0xff]   ;;  %v6129_v44 = vld [vmem:[#allocation12 + $0x30] ss:$8 sps:$4 sm:$0xff]  }
 0x917   :  { %v6132_v45 = vld [vmem:[#allocation12 + $0x130] ss:$8 sps:$4 sm:$0xff]  }
 0x919   :  { %1944 = vmatpush2.bf16.msra.mxu1 %v5470_v49  ;;  %1985 = vmatpush2.bf16.msra.mxu0 %v5472_v50  ;;  %v6143_v49 = vld [vmem:[#allocation12 + $0x14] ss:$8 sps:$4 sm:$0xff]  }
 0x91a   :  { %1945 = vmatprep.subr.bf16.mxu1 %v5463_v51  ;;  %1986 = vmatprep.subr.bf16.mxu0 %v5465_v52  ;;  %v6146_v50 = vld [vmem:[#allocation12 + $0x114] ss:$8 sps:$4 sm:$0xff]   ;;  %v6141_v51 = vld [vmem:[#allocation12 + $0x10] ss:$8 sps:$4 sm:$0xff]  }
 0x91b   :  { %v6144_v52 = vld [vmem:[#allocation12 + $0x110] ss:$8 sps:$4 sm:$0xff]  }
 0x91d   :  { %1946 = vmatpush2.bf16.msra.mxu1 %v5462_v57  ;;  %1987 = vmatpush2.bf16.msra.mxu0 %v5464_v58  ;;  %v6155_v57 = vld [vmem:[#allocation12 + $0xf4] ss:$8 sps:$4 sm:$0xff]  }
 0x91e   :  { %1947 = vmatprep.subr.bf16.mxu1 %v5455_v59  ;;  %1988 = vmatprep.subr.bf16.mxu0 %v5457_v60  ;;  %v6158_v58 = vld [vmem:[#allocation12 + $0x1f4] ss:$8 sps:$4 sm:$0xff]   ;;  %v6153_v59 = vld [vmem:[#allocation12 + $0xf0] ss:$8 sps:$4 sm:$0xff]  }
 0x91f   :  { %v6156_v60 = vld [vmem:[#allocation12 + $0x1f0] ss:$8 sps:$4 sm:$0xff]  }
 0x921   :  { %1948 = vmatpush2.bf16.msra.mxu1 %v5454_v0  ;;  %1989 = vmatpush2.bf16.msra.mxu0 %v5456_v2  ;;  %v6167_v0 = vld [vmem:[#allocation12 + $0xd4] ss:$8 sps:$4 sm:$0xff]  }
 0x922   :  { %1949 = vmatprep.subr.bf16.mxu1 %v5447_v3  ;;  %1990 = vmatprep.subr.bf16.mxu0 %v5449_v4  ;;  %v6170_v2 = vld [vmem:[#allocation12 + $0x1d4] ss:$8 sps:$4 sm:$0xff]   ;;  %v6165_v3 = vld [vmem:[#allocation12 + $0xd0] ss:$8 sps:$4 sm:$0xff]  }
 0x923   :  { %v6168_v4 = vld [vmem:[#allocation12 + $0x1d0] ss:$8 sps:$4 sm:$0xff]  }
 0x925   :  { %1950 = vmatpush2.bf16.msra.mxu1 %v5446_v12  ;;  %1991 = vmatpush2.bf16.msra.mxu0 %v5448_v9  ;;  %v6179_v12 = vld [vmem:[#allocation12 + $0xb4] ss:$8 sps:$4 sm:$0xff]  }
 0x926   :  { %1951 = vmatprep.subr.bf16.mxu1 %v5439_v10  ;;  %1992 = vmatprep.subr.bf16.mxu0 %v5441_v11  ;;  %v6182_v9 = vld [vmem:[#allocation12 + $0x1b4] ss:$8 sps:$4 sm:$0xff]   ;;  %v6177_v10 = vld [vmem:[#allocation12 + $0xb0] ss:$8 sps:$4 sm:$0xff]  }
 0x927   :  { %v6180_v11 = vld [vmem:[#allocation12 + $0x1b0] ss:$8 sps:$4 sm:$0xff]  }
 0x929   :  { %1952 = vmatpush2.bf16.msra.mxu1 %v5438_v17  ;;  %1993 = vmatpush2.bf16.msra.mxu0 %v5440_v18  ;;  %v6191_v17 = vld [vmem:[#allocation12 + $0x94] ss:$8 sps:$4 sm:$0xff]  }
 0x92a   :  { %1953 = vmatprep.subr.bf16.mxu1 %v5431_v19  ;;  %1994 = vmatprep.subr.bf16.mxu0 %v5433_v20  ;;  %v6194_v18 = vld [vmem:[#allocation12 + $0x194] ss:$8 sps:$4 sm:$0xff]   ;;  %v6189_v19 = vld [vmem:[#allocation12 + $0x90] ss:$8 sps:$4 sm:$0xff]  }
 0x92b   :  { %v6192_v20 = vld [vmem:[#allocation12 + $0x190] ss:$8 sps:$4 sm:$0xff]  }
 0x92d   :  { %1954 = vmatpush2.bf16.msra.mxu1 %v5430_v21  ;;  %1995 = vmatpush2.bf16.msra.mxu0 %v5432_v22  ;;  %v6197_v21 = vld [vmem:[#allocation12 + $0x84] ss:$8 sps:$4 sm:$0xff]  }
 0x92e   :  { %2801 = vmatprep.subr.bf16.mxu1 %v6107_v23  ;;  %2842 = vmatprep.subr.bf16.mxu0 %v6110_v24  ;;  %v6200_v22 = vld [vmem:[#allocation12 + $0x184] ss:$8 sps:$4 sm:$0xff]   ;;  %v6195_v23 = vld [vmem:[#allocation12 + $0x80] ss:$8 sps:$4 sm:$0xff]  }
 0x92f   :  { %v6198_v24 = vld [vmem:[#allocation12 + $0x180] ss:$8 sps:$4 sm:$0xff]  }
 0x930   :  { %1956 = vmatmul.mubr.bf16.vlgmr.msra.gmra.mxu1 %v7600_v31  ;;  %1997 = vmatmul.mubr.bf16.vlgmr.msra.gmra.mxu0 %v7600_v31  ;;  %v6126_v31 = vld [vmem:[#allocation12 + $0x140] ss:$8 sps:$4 sm:$0xff]  }
 0x931   :  { %2802 = vmatpush1.bf16.msra.mxu1 %v6105_v25  ;;  %2843 = vmatpush1.bf16.msra.mxu0 %v6108_v26  ;;  %v6203_v25 = vld [vmem:[#allocation12 + $0x274] ss:$8 sps:$4 sm:$0xff]  }
 0x932   :  { %2803 = vmatprep.subr.bf16.mxu1 %v6113_v27  ;;  %2844 = vmatprep.subr.bf16.mxu0 %v6116_v28  ;;  %v6206_v26 = vld [vmem:[#allocation12 + $0x374] ss:$8 sps:$4 sm:$0xff]   ;;  %v7775_v27 = vsub.s32 0, %v7333_v29  ;;  %v1171_v28 = vsub.s32 2, %v7333_v29 }
 0x935   :  { %2804 = vmatpush1.bf16.msra.mxu1 %v6111_v32  ;;  %2845 = vmatpush1.bf16.msra.mxu0 %v6114_v34  ;;  %v7778_v32 = vld [vmem:[#allocation11] sm:$0xff]  ;;  %v7781_v34 = vsub.s32 1, %v7333_v29 }
 0x936   :  { %2805 = vmatprep.subr.bf16.mxu1 %v6119_v35  ;;  %2846 = vmatprep.subr.bf16.mxu0 %v6122_v36  ;;  %v1175_v35 = vsub.s32 3, %v7333_v29  ;;  %v1164_v36 = vrot.slane %v7778_v32, %v7775_v27 }
 0x939   :  { %2806 = vmatpush1.bf16.msra.mxu1 %v6117_v37  ;;  %2847 = vmatpush1.bf16.msra.mxu0 %v6120_v38  ;;  %v1172_v37 = vrot.slane %v7778_v32, %v1171_v28  ;;  %v1168_v38 = vrot.slane %v7778_v32, %v7781_v34 }
 0x93a   :  { %2807 = vmatprep.subr.bf16.mxu1 %v6125_v39  ;;  %2848 = vmatprep.subr.bf16.mxu0 %v6128_v40  ;;  %v1176_v39 = vrot.slane %v7778_v32, %v1175_v35 }
 0x93d   :  { %2808 = vmatpush1.bf16.msra.mxu1 %v6123_v41  ;;  %2849 = vmatpush1.bf16.msra.mxu0 %v6126_v31 }
 0x93e   :  { %2809 = vmatprep.subr.bf16.mxu1 %v6131_v42  ;;  %2850 = vmatprep.subr.bf16.mxu0 %v6134_v43 }
 0x941   :  { %2810 = vmatpush1.bf16.msra.mxu1 %v6129_v44  ;;  %2851 = vmatpush1.bf16.msra.mxu0 %v6132_v45 }
 0x942   :  { %2811 = vmatprep.subr.bf16.mxu1 %v6137_v46  ;;  %2852 = vmatprep.subr.bf16.mxu0 %v6140_v30 }
 0x945   :  { %2812 = vmatpush1.bf16.msra.mxu1 %v6135_v47  ;;  %2853 = vmatpush1.bf16.msra.mxu0 %v6138_v48 }
 0x946   :  { %2813 = vmatprep.subr.bf16.mxu1 %v6143_v49  ;;  %2854 = vmatprep.subr.bf16.mxu0 %v6146_v50 }
 0x949   :  { %2814 = vmatpush1.bf16.msra.mxu1 %v6141_v51  ;;  %2855 = vmatpush1.bf16.msra.mxu0 %v6144_v52 }
 0x94a   :  { %2815 = vmatprep.subr.bf16.mxu1 %v6149_v53  ;;  %2856 = vmatprep.subr.bf16.mxu0 %v6152_v54 }
 0x94d   :  { %2816 = vmatpush1.bf16.msra.mxu1 %v6147_v55  ;;  %2857 = vmatpush1.bf16.msra.mxu0 %v6150_v56  ;;  %v6201_v56 = vld [vmem:[#allocation12 + $0x270] ss:$8 sps:$4 sm:$0xff]  }
 0x94e   :  { %2817 = vmatprep.subr.bf16.mxu1 %v6155_v57  ;;  %2858 = vmatprep.subr.bf16.mxu0 %v6158_v58  ;;  %v6204_v57 = vld [vmem:[#allocation12 + $0x370] ss:$8 sps:$4 sm:$0xff]  }
 0x951   :  { %2818 = vmatpush2.bf16.msra.mxu1 %v6153_v59  ;;  %2859 = vmatpush2.bf16.msra.mxu0 %v6156_v60  ;;  %v6209_v60 = vld [vmem:[#allocation12 + $0x264] ss:$8 sps:$4 sm:$0xff]  }
 0x952   :  { %2819 = vmatprep.subr.bf16.mxu1 %v6161_v61  ;;  %2860 = vmatprep.subr.bf16.mxu0 %v6164_v62  ;;  %v6212_v61 = vld [vmem:[#allocation12 + $0x364] ss:$8 sps:$4 sm:$0xff]   ;;  %v6207_v62 = vld [vmem:[#allocation12 + $0x260] ss:$8 sps:$4 sm:$0xff]  }
 0x955   :  { %2820 = vmatpush2.bf16.msra.mxu1 %v6159_v33  ;;  %2861 = vmatpush2.bf16.msra.mxu0 %v6162_v63  ;;  %v6210_v33 = vld [vmem:[#allocation12 + $0x360] ss:$8 sps:$4 sm:$0xff]   ;;  %v6215_v63 = vld [vmem:[#allocation12 + $0x254] ss:$8 sps:$4 sm:$0xff]  }
 0x956   :  { %2821 = vmatprep.subr.bf16.mxu1 %v6167_v0  ;;  %2862 = vmatprep.subr.bf16.mxu0 %v6170_v2  ;;  %v6218_v0 = vld [vmem:[#allocation12 + $0x354] ss:$8 sps:$4 sm:$0xff]   ;;  %v6213_v2 = vld [vmem:[#allocation12 + $0x250] ss:$8 sps:$4 sm:$0xff]  }
 0x959   :  { %2822 = vmatpush2.bf16.msra.mxu1 %v6165_v3  ;;  %2863 = vmatpush2.bf16.msra.mxu0 %v6168_v4  ;;  %v6216_v3 = vld [vmem:[#allocation12 + $0x350] ss:$8 sps:$4 sm:$0xff]   ;;  %v6221_v4 = vld [vmem:[#allocation12 + $0x244] ss:$8 sps:$4 sm:$0xff]  }
 0x95a   :  { %2823 = vmatprep.subr.bf16.mxu1 %v6173_v5  ;;  %2864 = vmatprep.subr.bf16.mxu0 %v6176_v6  ;;  %v6224_v5 = vld [vmem:[#allocation12 + $0x344] ss:$8 sps:$4 sm:$0xff]   ;;  %v6219_v6 = vld [vmem:[#allocation12 + $0x240] ss:$8 sps:$4 sm:$0xff]  }
 0x95d   :  { %2824 = vmatpush2.bf16.msra.mxu1 %v6171_v7  ;;  %2865 = vmatpush2.bf16.msra.mxu0 %v6174_v8  ;;  %v6222_v7 = vld [vmem:[#allocation12 + $0x340] ss:$8 sps:$4 sm:$0xff]   ;;  %v6227_v8 = vld [vmem:[#allocation12 + $0x234] ss:$8 sps:$4 sm:$0xff]  }
 0x95e   :  { %2825 = vmatprep.subr.bf16.mxu1 %v6179_v12  ;;  %2866 = vmatprep.subr.bf16.mxu0 %v6182_v9  ;;  %v6230_v12 = vld [vmem:[#allocation12 + $0x334] ss:$8 sps:$4 sm:$0xff]   ;;  %v6225_v9 = vld [vmem:[#allocation12 + $0x230] ss:$8 sps:$4 sm:$0xff]  }
 0x961   :  { %2826 = vmatpush2.bf16.msra.mxu1 %v6177_v10  ;;  %2867 = vmatpush2.bf16.msra.mxu0 %v6180_v11  ;;  %v6228_v10 = vld [vmem:[#allocation12 + $0x330] ss:$8 sps:$4 sm:$0xff]   ;;  %v6233_v11 = vld [vmem:[#allocation12 + $0x224] ss:$8 sps:$4 sm:$0xff]  }
 0x962   :  { %2827 = vmatprep.subr.bf16.mxu1 %v6185_v13  ;;  %2868 = vmatprep.subr.bf16.mxu0 %v6188_v14  ;;  %v6236_v13 = vld [vmem:[#allocation12 + $0x324] ss:$8 sps:$4 sm:$0xff]   ;;  %v6231_v14 = vld [vmem:[#allocation12 + $0x220] ss:$8 sps:$4 sm:$0xff]  }
 0x965   :  { %2828 = vmatpush2.bf16.msra.mxu1 %v6183_v15  ;;  %2869 = vmatpush2.bf16.msra.mxu0 %v6186_v16  ;;  %v6234_v15 = vld [vmem:[#allocation12 + $0x320] ss:$8 sps:$4 sm:$0xff]   ;;  %v6239_v16 = vld [vmem:[#allocation12 + $0x214] ss:$8 sps:$4 sm:$0xff]  }
 0x966   :  { %2829 = vmatprep.subr.bf16.mxu1 %v6191_v17  ;;  %2870 = vmatprep.subr.bf16.mxu0 %v6194_v18  ;;  %v6242_v17 = vld [vmem:[#allocation12 + $0x314] ss:$8 sps:$4 sm:$0xff]   ;;  %v6237_v18 = vld [vmem:[#allocation12 + $0x210] ss:$8 sps:$4 sm:$0xff]  }
 0x969   :  { %2830 = vmatpush2.bf16.msra.mxu1 %v6189_v19  ;;  %2871 = vmatpush2.bf16.msra.mxu0 %v6192_v20  ;;  %v6240_v19 = vld [vmem:[#allocation12 + $0x310] ss:$8 sps:$4 sm:$0xff]   ;;  %v6245_v20 = vld [vmem:[#allocation12 + $0x204] ss:$8 sps:$4 sm:$0xff]  }
 0x96a   :  { %2831 = vmatprep.subr.bf16.mxu1 %v6197_v21  ;;  %2872 = vmatprep.subr.bf16.mxu0 %v6200_v22  ;;  %v6248_v21 = vld [vmem:[#allocation12 + $0x304] ss:$8 sps:$4 sm:$0xff]   ;;  %v6243_v22 = vld [vmem:[#allocation12 + $0x200] ss:$8 sps:$4 sm:$0xff]  }
 0x96d   :  { %2832 = vmatpush2.bf16.msra.mxu1 %v6195_v23  ;;  %2873 = vmatpush2.bf16.msra.mxu0 %v6198_v24  ;;  %v6246_v23 = vld [vmem:[#allocation12 + $0x300] ss:$8 sps:$4 sm:$0xff]   ;;  %v6251_v24 = vld [vmem:[#allocation12 + $0x2f4] ss:$8 sps:$4 sm:$0xff]  }
 0x96e   :  { %2883 = vmatprep.subr.bf16.mxu1 %v6203_v25  ;;  %2924 = vmatprep.subr.bf16.mxu0 %v6206_v26  ;;  %v6254_v25 = vld [vmem:[#allocation12 + $0x3f4] ss:$8 sps:$4 sm:$0xff]   ;;  %v6249_v26 = vld [vmem:[#allocation12 + $0x2f0] ss:$8 sps:$4 sm:$0xff]  }
 0x9b0   :  { %v1875_v40 = vpop.f32.mrf.mxu1  ;;  %v1916_v41 = vpop.f32.mrf.mxu0 }
 0x9b1   :  { %v1876_v31 = vadd.f32 %v1875_v40, %v1164_v36  ;;  %v1917_v42 = vadd.f32 %v1916_v41, %v1172_v37  ;;  %v6252_v36 = vld [vmem:[#allocation12 + $0x3f0] ss:$8 sps:$4 sm:$0xff]   ;;  %v6257_v37 = vld [vmem:[#allocation12 + $0x2e4] ss:$8 sps:$4 sm:$0xff]   ;;  %v6258_v40 = vld [vmem:[#allocation12 + $0x3e0] ss:$8 sps:$4 sm:$0xff]  }
 0x9b2   :  { %v1877_v43 = vpop.f32.mrf.mxu1  ;;  %v1918_v44 = vpop.f32.mrf.mxu0  ;;  %v6263_v41 = vld [vmem:[#allocation12 + $0x2d4] ss:$8 sps:$4 sm:$0xff]  }
 0x9b3   :  { %v1878_v45 = vadd.f32 %v1877_v43, %v1168_v38  ;;  %v1919_v46 = vadd.f32 %v1918_v44, %v1176_v39  ;;  %v2005_v30 = vmax.f32 %v1876_v31, 0.0  ;;  %v2007_v47 = vmax.f32 %v1917_v42, 0.0  ;;  %v6260_v38 = vld [vmem:[#allocation12 + $0x3e4] ss:$8 sps:$4 sm:$0xff]   ;;  %v6255_v39 = vld [vmem:[#allocation12 + $0x2e0] ss:$8 sps:$4 sm:$0xff]  }
 0x9b4   :  { %v1879_v48 = vpop.f32.mrf.mxu1  ;;  %v1920_v49 = vpop.f32.mrf.mxu0  ;;  %v6266_v31 = vld [vmem:[#allocation12 + $0x3d4] ss:$8 sps:$4 sm:$0xff]   ;;  %v6261_v42 = vld [vmem:[#allocation12 + $0x2d0] ss:$8 sps:$4 sm:$0xff]   ;;  %v6269_v44 = vld [vmem:[#allocation12 + $0x2c4] ss:$8 sps:$4 sm:$0xff]  }
 0x9b5   :  { %v2006_v50 = vmax.f32 %v1878_v45, 0.0  ;;  %v2008_v51 = vmax.f32 %v1919_v46, 0.0  ;;  %v2141_v58 = vpack.c.bf16 %v2005_v30, %v2005_v30  ;;  %v2143_v59 = vpack.c.bf16 %v2007_v47, %v2007_v47  ;;  %v6264_v43 = vld [vmem:[#allocation12 + $0x3d0] ss:$8 sps:$4 sm:$0xff]   ;;  %v6272_v45 = vld [vmem:[#allocation12 + $0x3c4] ss:$8 sps:$4 sm:$0xff]  }
 0x9b6   :  { %v1880_v52 = vpop.f32.mrf.mxu1  ;;  %v1921_v53 = vpop.f32.mrf.mxu0  ;;  %v6267_v46 = vld [vmem:[#allocation12 + $0x2c0] ss:$8 sps:$4 sm:$0xff]   ;;  %v6275_v47 = vld [vmem:[#allocation12 + $0x2b4] ss:$8 sps:$4 sm:$0xff]   ;;  %v6273_v49 = vld [vmem:[#allocation12 + $0x2b0] ss:$8 sps:$4 sm:$0xff]  }
 0x9b7   :  { %v2142_v54 = vpack.c.bf16 %v2006_v50, %v2006_v50  ;;  %v2144_v55 = vpack.c.bf16 %v2008_v51, %v2008_v51  ;;  %v6270_v30 = vld [vmem:[#allocation12 + $0x3c0] ss:$8 sps:$4 sm:$0xff]   ;;  %v6278_v48 = vld [vmem:[#allocation12 + $0x3b4] ss:$8 sps:$4 sm:$0xff]   ;;  %v6276_v50 = vld [vmem:[#allocation12 + $0x3b0] ss:$8 sps:$4 sm:$0xff]  }
 0x9b8   :  { %v6281_v51 = vld [vmem:[#allocation12 + $0x2a4] ss:$8 sps:$4 sm:$0xff]   ;;  %v1179_v53 = vsub.s32 4, %v7333_v29 }
 0x9b9   :  { %2833 = vmatprep.mubr.bf16.mxu1 %v2142_v54  ;;  %2874 = vmatprep.mubr.bf16.mxu0 %v2144_v55  ;;  %v6284_v52 = vld [vmem:[#allocation12 + $0x3a4] ss:$8 sps:$4 sm:$0xff]   ;;  %v1187_v54 = vsub.s32 6, %v7333_v29  ;;  %v6279_v55 = vld [vmem:[#allocation12 + $0x2a0] ss:$8 sps:$4 sm:$0xff]  }
 0x9ba   :  { %2834 = vmatmul.mubr.bf16.vlgmr.msra.gmra.mxu1 %v2141_v58  ;;  %2875 = vmatmul.mubr.bf16.vlgmr.msra.gmra.mxu0 %v2143_v59  ;;  %v1191_v58 = vsub.s32 7, %v7333_v29  ;;  %v6287_v59 = vld [vmem:[#allocation12 + $0x294] ss:$8 sps:$4 sm:$0xff]  }
 0x9bb   :  { %2884 = vmatpush1.bf16.msra.mxu1 %v6201_v56  ;;  %2925 = vmatpush1.bf16.msra.mxu0 %v6204_v57  ;;  %v6282_v56 = vld [vmem:[#allocation12 + $0x3a0] ss:$8 sps:$4 sm:$0xff]   ;;  %v1183_v57 = vsub.s32 5, %v7333_v29 }
 0x9bc   :  { %2885 = vmatprep.subr.bf16.mxu1 %v6209_v60  ;;  %2926 = vmatprep.subr.bf16.mxu0 %v6212_v61  ;;  %v6290_v60 = vld [vmem:[#allocation12 + $0x394] ss:$8 sps:$4 sm:$0xff]   ;;  %v1180_v61 = vrot.slane %v7778_v32, %v1179_v53 }
 0x9bd   :  { %v6600_v29 = vld [vmem:[#allocation21 + $0x54] ss:$8 sps:$4 sm:$0xff]  }
 0x9bf   :  { %2886 = vmatpush1.bf16.msra.mxu1 %v6207_v62  ;;  %2927 = vmatpush1.bf16.msra.mxu0 %v6210_v33  ;;  %v1188_v62 = vrot.slane %v7778_v32, %v1187_v54  ;;  %v1184_v33 = vrot.slane %v7778_v32, %v1183_v57  ;;  %v6338_v54 = vld [vmem:[#allocation17 + $0x44] ss:$8 sps:$4 sm:$0xff]   ;;  %v6317_v57 = vld [vmem:[#allocation14 + $0x14] ss:$8 sps:$4 sm:$0xff]  }
 0x9c0   :  { %2887 = vmatprep.subr.bf16.mxu1 %v6215_v63  ;;  %2928 = vmatprep.subr.bf16.mxu0 %v6218_v0  ;;  %v1192_v63 = vrot.slane %v7778_v32, %v1191_v58  ;;  %v6285_v0 = vld [vmem:[#allocation12 + $0x290] ss:$8 sps:$4 sm:$0xff]   ;;  %v6294_v32 = vld [vmem:[#allocation12 + $0x380] ss:$8 sps:$4 sm:$0xff]  }
 0x9c1   :  { %v6315_v58 = vld [vmem:[#allocation14 + $0x10] ss:$8 sps:$4 sm:$0xff]  }
 0x9c3   :  { %2888 = vmatpush1.bf16.msra.mxu1 %v6213_v2  ;;  %2929 = vmatpush1.bf16.msra.mxu0 %v6216_v3  ;;  %v6288_v2 = vld [vmem:[#allocation12 + $0x390] ss:$8 sps:$4 sm:$0xff]   ;;  %v6293_v3 = vld [vmem:[#allocation12 + $0x284] ss:$8 sps:$4 sm:$0xff]  }
 0x9c4   :  { %2889 = vmatprep.subr.bf16.mxu1 %v6221_v4  ;;  %2930 = vmatprep.subr.bf16.mxu0 %v6224_v5 }
 0x9c7   :  { %2890 = vmatpush1.bf16.msra.mxu1 %v6219_v6  ;;  %2931 = vmatpush1.bf16.msra.mxu0 %v6222_v7  ;;  %v6296_v6 = vld [vmem:[#allocation12 + $0x384] ss:$8 sps:$4 sm:$0xff]  }
 0x9c8   :  { %2891 = vmatprep.subr.bf16.mxu1 %v6227_v8  ;;  %2932 = vmatprep.subr.bf16.mxu0 %v6230_v12  ;;  %v7804_v7 = vld.sshfl [vmem:[#allocation4] sm:$0x33 pattern:$0x76325410] }
 0x9cb   :  { %2892 = vmatpush1.bf16.msra.mxu1 %v6225_v9  ;;  %2933 = vmatpush1.bf16.msra.mxu0 %v6228_v10 }
 0x9cc   :  { %2893 = vmatprep.subr.bf16.mxu1 %v6233_v11  ;;  %2934 = vmatprep.subr.bf16.mxu0 %v6236_v13 }
 0x9cf   :  { %2894 = vmatpush1.bf16.msra.mxu1 %v6231_v14  ;;  %2935 = vmatpush1.bf16.msra.mxu0 %v6234_v15  ;;  %v6291_v14 = vld [vmem:[#allocation12 + $0x280] ss:$8 sps:$4 sm:$0xff]   ;;  %v2994_v15 = vcombine.high %v7804_v7, %v7804_v7 }
 0x9d0   :  { %2895 = vmatprep.subr.bf16.mxu1 %v6239_v16  ;;  %2936 = vmatprep.subr.bf16.mxu0 %v6242_v17 }
 0x9d3   :  { %2896 = vmatpush1.bf16.msra.mxu1 %v6237_v18  ;;  %2937 = vmatpush1.bf16.msra.mxu0 %v6240_v19 }
 0x9d4   :  { %2897 = vmatprep.subr.bf16.mxu1 %v6245_v20  ;;  %2938 = vmatprep.subr.bf16.mxu0 %v6248_v21  ;;  %v6299_v20 = vld [vmem:[#allocation14 + $0x74] ss:$8 sps:$4 sm:$0xff]  }
 0x9d7   :  { %2898 = vmatpush1.bf16.msra.mxu1 %v6243_v22  ;;  %2939 = vmatpush1.bf16.msra.mxu0 %v6246_v23 }
 0x9d8   :  { %2899 = vmatprep.subr.bf16.mxu1 %v6251_v24  ;;  %2940 = vmatprep.subr.bf16.mxu0 %v6254_v25 }
 0x9db   :  { %2900 = vmatpush2.bf16.msra.mxu1 %v6249_v26  ;;  %2941 = vmatpush2.bf16.msra.mxu0 %v6252_v36  ;;  %v6297_v36 = vld [vmem:[#allocation14 + $0x70] ss:$8 sps:$4 sm:$0xff]  }
 0x9dc   :  { %2901 = vmatprep.subr.bf16.mxu1 %v6257_v37  ;;  %2942 = vmatprep.subr.bf16.mxu0 %v6260_v38  ;;  %v2998_v37 = vpack.c.bf16 %v2994_v15, %v2994_v15  ;;  %v6362_v15 = vld [vmem:[#allocation17 + $0xc4] ss:$8 sps:$4 sm:$0xff]  }
 0x9df   :  { %2902 = vmatpush2.bf16.msra.mxu1 %v6255_v39  ;;  %2943 = vmatpush2.bf16.msra.mxu0 %v6258_v40  ;;  %v6302_v40 = vld [vmem:[#allocation14 + $0x64] ss:$8 sps:$4 sm:$0xff]  }
 0x9e0   :  { %2903 = vmatprep.subr.bf16.mxu1 %v6263_v41  ;;  %2944 = vmatprep.subr.bf16.mxu0 %v6266_v31  ;;  %v6300_v41 = vld [vmem:[#allocation14 + $0x60] ss:$8 sps:$4 sm:$0xff]   ;;  %v6305_v31 = vld [vmem:[#allocation14 + $0x54] ss:$8 sps:$4 sm:$0xff]  }
 0x9e3   :  { %2904 = vmatpush2.bf16.msra.mxu1 %v6261_v42  ;;  %2945 = vmatpush2.bf16.msra.mxu0 %v6264_v43  ;;  %v6303_v42 = vld [vmem:[#allocation14 + $0x50] ss:$8 sps:$4 sm:$0xff]   ;;  %v6308_v43 = vld [vmem:[#allocation14 + $0x44] ss:$8 sps:$4 sm:$0xff]  }
 0x9e4   :  { %2905 = vmatprep.subr.bf16.mxu1 %v6269_v44  ;;  %2946 = vmatprep.subr.bf16.mxu0 %v6272_v45  ;;  %v6327_v44 = vld [vmem:[#allocation17 + $0x70] ss:$8 sps:$4 sm:$0xff]   ;;  %v6329_v45 = vld [vmem:[#allocation17 + $0x74] ss:$8 sps:$4 sm:$0xff]  }
 0x9e7   :  { %2906 = vmatpush2.bf16.msra.mxu1 %v6267_v46  ;;  %2947 = vmatpush2.bf16.msra.mxu0 %v6270_v30  ;;  %v6332_v46 = vld [vmem:[#allocation17 + $0x64] ss:$8 sps:$4 sm:$0xff]  }
 0x9e8   :  { %2907 = vmatprep.subr.bf16.mxu1 %v6275_v47  ;;  %2948 = vmatprep.subr.bf16.mxu0 %v6278_v48  ;;  %v6306_v30 = vld [vmem:[#allocation14 + $0x40] ss:$8 sps:$4 sm:$0xff]   ;;  %v6311_v48 = vld [vmem:[#allocation14 + $0x34] ss:$8 sps:$4 sm:$0xff]  }
 0x9e9   :  { %v6330_v47 = vld [vmem:[#allocation17 + $0x60] ss:$8 sps:$4 sm:$0xff]  }
 0x9eb   :  { %2908 = vmatpush2.bf16.msra.mxu1 %v6273_v49  ;;  %2949 = vmatpush2.bf16.msra.mxu0 %v6276_v50  ;;  %v6335_v49 = vld [vmem:[#allocation17 + $0x54] ss:$8 sps:$4 sm:$0xff]  }
 0x9ec   :  { %2909 = vmatprep.subr.bf16.mxu1 %v6281_v51  ;;  %2950 = vmatprep.subr.bf16.mxu0 %v6284_v52  ;;  %v6309_v50 = vld [vmem:[#allocation14 + $0x30] ss:$8 sps:$4 sm:$0xff]   ;;  %v6314_v52 = vld [vmem:[#allocation14 + $0x24] ss:$8 sps:$4 sm:$0xff]  }
 0x9ed   :  { %v6333_v51 = vld [vmem:[#allocation17 + $0x50] ss:$8 sps:$4 sm:$0xff]  }
 0x9ef   :  { %2910 = vmatpush2.bf16.msra.mxu1 %v6279_v55  ;;  %2951 = vmatpush2.bf16.msra.mxu0 %v6282_v56  ;;  %v6312_v55 = vld [vmem:[#allocation14 + $0x20] ss:$8 sps:$4 sm:$0xff]  }
 0x9f0   :  { %v1957_v4 = vpop.f32.mrf.mxu1  ;;  %v1998_v5 = vpop.f32.mrf.mxu0  ;;  %2911 = vmatprep.subr.bf16.mxu1 %v6287_v59  ;;  %2952 = vmatprep.subr.bf16.mxu0 %v6290_v60  ;;  %v6336_v56 = vld [vmem:[#allocation17 + $0x40] ss:$8 sps:$4 sm:$0xff]  }
 0x9f1   :  { %v1958_v8 = vadd.f32 %v1957_v4, %v1180_v61  ;;  %v1999_v12 = vadd.f32 %v1998_v5, %v1188_v62  ;;  %v6320_v59 = vld [vmem:[#allocation14 + $0x4] ss:$8 sps:$4 sm:$0xff]   ;;  %v6318_v60 = vld [vmem:[#allocation14] ss:$8 sps:$4 sm:$0xff]   ;;  %v6323_v61 = vld [vmem:[#allocation14 + $0x94] ss:$8 sps:$4 sm:$0xff]  }
 0x9f2   :  { %v1959_v9 = vpop.f32.mrf.mxu1  ;;  %v2000_v10 = vpop.f32.mrf.mxu0  ;;  %v6321_v62 = vld [vmem:[#allocation14 + $0x90] ss:$8 sps:$4 sm:$0xff]   ;;  %v6342_v5 = vld [vmem:[#allocation17 + $0x20] ss:$8 sps:$4 sm:$0xff]  }
 0x9f3   :  { %v1960_v11 = vadd.f32 %v1959_v9, %v1184_v33  ;;  %v2001_v13 = vadd.f32 %v2000_v10, %v1192_v63  ;;  %2912 = vmatpush2.bf16.msra.mxu1 %v6285_v0  ;;  %2953 = vmatpush2.bf16.msra.mxu0 %v6288_v2  ;;  %v2009_v16 = vmax.f32 %v1958_v8, 0.0  ;;  %v2011_v17 = vmax.f32 %v1999_v12, 0.0  ;;  %v6326_v33 = vld [vmem:[#allocation14 + $0x84] ss:$8 sps:$4 sm:$0xff]   ;;  %v6324_v63 = vld [vmem:[#allocation14 + $0x80] ss:$8 sps:$4 sm:$0xff]  }
 0x9f4   :  { %v1961_v18 = vpop.f32.mrf.mxu1  ;;  %v2002_v19 = vpop.f32.mrf.mxu0  ;;  %2913 = vmatprep.subr.bf16.mxu1 %v6293_v3  ;;  %2954 = vmatprep.subr.bf16.mxu0 %v6296_v6  ;;  %v2997_v0 = vpack.c.bf16 %v7804_v7, %v7804_v7  ;;  %v6341_v2 = vld [vmem:[#allocation17 + $0x34] ss:$8 sps:$4 sm:$0xff]   ;;  %v6339_v3 = vld [vmem:[#allocation17 + $0x30] ss:$8 sps:$4 sm:$0xff]   ;;  %v6344_v4 = vld [vmem:[#allocation17 + $0x24] ss:$8 sps:$4 sm:$0xff]  }
 0x9f5   :  { %v2010_v21 = vmax.f32 %v1960_v11, 0.0  ;;  %v2012_v22 = vmax.f32 %v2001_v13, 0.0  ;;  %v2145_v38 = vpack.c.bf16 %v2009_v16, %v2009_v16  ;;  %v2147_v39 = vpack.c.bf16 %v2011_v17, %v2011_v17  ;;  %v6345_v6 = vld [vmem:[#allocation17 + $0x10] ss:$8 sps:$4 sm:$0xff]   ;;  %v6347_v8 = vld [vmem:[#allocation17 + $0x14] ss:$8 sps:$4 sm:$0xff]  }
 0x9f6   :  { %v1962_v23 = vpop.f32.mrf.mxu1  ;;  %v2003_v24 = vpop.f32.mrf.mxu0  ;;  %v6350_v12 = vld [vmem:[#allocation17 + $0x4] ss:$8 sps:$4 sm:$0xff]   ;;  %v6348_v9 = vld [vmem:[#allocation17] ss:$8 sps:$4 sm:$0xff]   ;;  %v6353_v10 = vld [vmem:[#allocation17 + $0xf4] ss:$8 sps:$4 sm:$0xff]  }
 0x9f7   :  { %v2146_v25 = vpack.c.bf16 %v2010_v21, %v2010_v21  ;;  %v2148_v26 = vpack.c.bf16 %v2012_v22, %v2012_v22  ;;  %2914 = vmatpush2.bf16.msra.mxu1 %v6291_v14  ;;  %2955 = vmatpush2.bf16.msra.mxu0 %v6294_v32  ;;  %v6351_v7 = vld [vmem:[#allocation17 + $0xf0] ss:$8 sps:$4 sm:$0xff]   ;;  %v6356_v11 = vld [vmem:[#allocation17 + $0xe4] ss:$8 sps:$4 sm:$0xff]   ;;  %v6354_v13 = vld [vmem:[#allocation17 + $0xe0] ss:$8 sps:$4 sm:$0xff]  }
 0x9f8   :  { %3114 = vmatprep.subr.bf16.mxu1 %v6299_v20  ;;  %3363 = vmatprep.subr.bf16.mxu0 %v6329_v45  ;;  %v6359_v14 = vld [vmem:[#allocation17 + $0xd4] ss:$8 sps:$4 sm:$0xff]   ;;  %v6357_v32 = vld [vmem:[#allocation17 + $0xd0] ss:$8 sps:$4 sm:$0xff]   ;;  %v6360_v16 = vld [vmem:[#allocation17 + $0xc0] ss:$8 sps:$4 sm:$0xff]  }
 0x9f9   :  { %2915 = vmatprep.mubr.bf16.mxu1 %v2146_v25  ;;  %2956 = vmatprep.mubr.bf16.mxu0 %v2148_v26  ;;  %v6365_v17 = vld [vmem:[#allocation17 + $0xb4] ss:$8 sps:$4 sm:$0xff]   ;;  %v6363_v18 = vld [vmem:[#allocation17 + $0xb0] ss:$8 sps:$4 sm:$0xff]   ;;  %v6368_v19 = vld [vmem:[#allocation17 + $0xa4] ss:$8 sps:$4 sm:$0xff]  }
 0x9fa   :  { %2916 = vmatmul.mubr.bf16.vlgmr.msra.gmra.mxu1 %v2145_v38  ;;  %2957 = vmatmul.mubr.bf16.vlgmr.msra.gmra.mxu0 %v2147_v39  ;;  %v6366_v20 = vld [vmem:[#allocation17 + $0xa0] ss:$8 sps:$4 sm:$0xff]   ;;  %v6371_v21 = vld [vmem:[#allocation17 + $0x94] ss:$8 sps:$4 sm:$0xff]   ;;  %v6369_v22 = vld [vmem:[#allocation17 + $0x90] ss:$8 sps:$4 sm:$0xff]  }
 0x9fb   :  { %3115 = vmatpush1.bf16.msra.mxu1 %v6297_v36  ;;  %5639 = vmatprep.mubr.msk.bf16.mxu1 %vm360_vm2, %v2998_v37  ;;  %v6374_v23 = vld [vmem:[#allocation17 + $0x84] ss:$8 sps:$4 sm:$0xff]   ;;  %v6372_v24 = vld [vmem:[#allocation17 + $0x80] ss:$8 sps:$4 sm:$0xff]  }
 0x9fc   :  { %3116 = vmatprep.subr.bf16.mxu1 %v6302_v40  ;;  %3364 = vmatpush1.bf16.msra.mxu0 %v6327_v44  ;;  %v6375_v25 = vld [vmem:[%s8462_s16 + $0x118] ss:$20 sps:$4 sm:$0xff]   ;;  %v6377_v26 = vld [vmem:[%s8462_s16 + $0x11c] ss:$20 sps:$4 sm:$0xff]   ;;  %v6383_v37 = vld [vmem:[%s8462_s16 + $0xf4] ss:$20 sps:$4 sm:$0xff]  }
 0x9fd   :  { %3365 = vmatprep.subr.bf16.mxu0 %v6332_v46  ;;  %v6380_v36 = vld [vmem:[%s8462_s16 + $0x124] ss:$20 sps:$4 sm:$0xff]   ;;  %v6389_v39 = vld [vmem:[%s8462_s16 + $0xcc] ss:$20 sps:$4 sm:$0xff]   ;;  %v6387_v40 = vld [vmem:[%s8462_s16 + $0xc8] ss:$20 sps:$4 sm:$0xff]  }
 0x9fe   :  { %v6381_v38 = vld [vmem:[%s8462_s16 + $0xf0] ss:$20 sps:$4 sm:$0xff]  }
 0x9ff   :  { %3117 = vmatpush1.bf16.msra.mxu1 %v6300_v41  ;;  %v2149_v41 = vld [vmem:[%s8501_s11] sm:$0x3]  ;;  %v6401_v45 = vld [vmem:[%s8462_s16 + $0x7c] ss:$20 sps:$4 sm:$0xff]  }
 0xa00   :  { %3118 = vmatprep.subr.bf16.mxu1 %v6305_v31  ;;  %3366 = vmatpush1.bf16.msra.mxu0 %v6330_v47  ;;  %v6395_v31 = vld [vmem:[%s8462_s16 + $0xa4] ss:$20 sps:$4 sm:$0xff]   ;;  %v2158_v44 = vrot.slane %v2149_v41, %v7781_v34 }
 0xa01   :  { %3367 = vmatprep.subr.bf16.mxu0 %v6335_v49 }
 0xa03   :  { %3119 = vmatpush1.bf16.msra.mxu1 %v6303_v42  ;;  %v2154_v42 = vrot.slane %v2149_v41, %v7775_v27 }
 0xa04   :  { %3120 = vmatprep.subr.bf16.mxu1 %v6308_v43  ;;  %3368 = vmatpush1.bf16.msra.mxu0 %v6333_v51  ;;  %v6393_v43 = vld [vmem:[%s8462_s16 + $0xa0] ss:$20 sps:$4 sm:$0xff]  }
 0xa05   :  { %3369 = vmatprep.subr.bf16.mxu0 %v6338_v54  ;;  %v6407_v54 = vld [vmem:[%s8462_s16 + $0x54] ss:$20 sps:$4 sm:$0xff]  }
 0xa07   :  { %3121 = vmatpush1.bf16.msra.mxu1 %v6306_v30 }
 0xa08   :  { %3122 = vmatprep.subr.bf16.mxu1 %v6311_v48  ;;  %3370 = vmatpush1.bf16.msra.mxu0 %v6336_v56  ;;  %v6399_v48 = vld [vmem:[%s8462_s16 + $0x78] ss:$20 sps:$4 sm:$0xff]  }
 0xa09   :  { %3371 = vmatprep.subr.bf16.mxu0 %v6341_v2  ;;  %v6423_v2 = vld [vmem:[%s8462_s16 + $0x258] ss:$20 sps:$4 sm:$0xff]  }
 0xa0b   :  { %3123 = vmatpush1.bf16.msra.mxu1 %v6309_v50 }
 0xa0c   :  { %3124 = vmatprep.subr.bf16.mxu1 %v6314_v52  ;;  %3372 = vmatpush1.bf16.msra.mxu0 %v6339_v3  ;;  %v6431_v3 = vld [vmem:[%s8462_s16 + $0x234] ss:$20 sps:$4 sm:$0xff]  }
 0xa0d   :  { %3373 = vmatprep.subr.bf16.mxu0 %v6344_v4  ;;  %v6429_v4 = vld [vmem:[%s8462_s16 + $0x230] ss:$20 sps:$4 sm:$0xff]  }
 0xa0f   :  { %3125 = vmatpush1.bf16.msra.mxu1 %v6312_v55 }
 0xa10   :  { %3126 = vmatprep.subr.bf16.mxu1 %v6317_v57  ;;  %3374 = vmatpush1.bf16.msra.mxu0 %v6342_v5  ;;  %v6437_v5 = vld [vmem:[%s8462_s16 + $0x20c] ss:$20 sps:$4 sm:$0xff]  }
 0xa11   :  { %3375 = vmatprep.subr.bf16.mxu0 %v6347_v8  ;;  %v6443_v8 = vld [vmem:[%s8462_s16 + $0x1e4] ss:$20 sps:$4 sm:$0xff]  }
 0xa13   :  { %3127 = vmatpush1.bf16.msra.mxu1 %v6315_v58  ;;  %v6405_v58 = vld [vmem:[%s8462_s16 + $0x50] ss:$20 sps:$4 sm:$0xff]  }
 0xa14   :  { %3128 = vmatprep.subr.bf16.mxu1 %v6320_v59  ;;  %3376 = vmatpush1.bf16.msra.mxu0 %v6345_v6  ;;  %v6435_v6 = vld [vmem:[%s8462_s16 + $0x208] ss:$20 sps:$4 sm:$0xff]  }
 0xa15   :  { %3377 = vmatprep.subr.bf16.mxu0 %v6350_v12  ;;  %v6441_v12 = vld [vmem:[%s8462_s16 + $0x1e0] ss:$20 sps:$4 sm:$0xff]  }
 0xa17   :  { %3129 = vmatpush1.bf16.msra.mxu1 %v6318_v60 }
 0xa18   :  { %3142 = vmatprep.subr.bf16.mxu1 %v6323_v61  ;;  %3378 = vmatpush1.bf16.msra.mxu0 %v6348_v9  ;;  %v6413_v61 = vld [vmem:[%s8462_s16 + $0x2c] ss:$20 sps:$4 sm:$0xff]   ;;  %v6449_v9 = vld [vmem:[%s8462_s16 + $0x1bc] ss:$20 sps:$4 sm:$0xff]  }
 0xa19   :  { %3379 = vmatprep.subr.bf16.mxu0 %v6353_v10  ;;  %v6447_v10 = vld [vmem:[%s8462_s16 + $0x1b8] ss:$20 sps:$4 sm:$0xff]  }
 0xa1b   :  { %3143 = vmatpush2.bf16.msra.mxu1 %v6321_v62  ;;  %v6411_v62 = vld [vmem:[%s8462_s16 + $0x28] ss:$20 sps:$4 sm:$0xff]  }
 0xa1c   :  { %3144 = vmatprep.subr.bf16.mxu1 %v6326_v33  ;;  %3380 = vmatpush2.bf16.msra.mxu0 %v6351_v7  ;;  %v6419_v33 = vld [vmem:[%s8462_s16 + $0x4] ss:$20 sps:$4 sm:$0xff]   ;;  %v6455_v7 = vld [vmem:[%s8462_s16 + $0x194] ss:$20 sps:$4 sm:$0xff]  }
 0xa1d   :  { %3381 = vmatprep.subr.bf16.mxu0 %v6356_v11  ;;  %v6453_v11 = vld [vmem:[%s8462_s16 + $0x190] ss:$20 sps:$4 sm:$0xff]  }
 0xa1f   :  { %3145 = vmatpush2.bf16.msra.mxu1 %v6324_v63  ;;  %v6417_v63 = vld [vmem:[%s8462_s16] ss:$20 sps:$4 sm:$0xff]  }
 0xa20   :  { %3382 = vmatpush2.bf16.msra.mxu0 %v6354_v13  ;;  %3947 = vmatprep.subr.bf16.mxu1 %v6377_v26 }
 0xa21   :  { %3383 = vmatprep.subr.bf16.mxu0 %v6359_v14 }
 0xa22   :  { %3147 = vmatmul.mubr.bf16.vlgmr.msra.gmra.mxu1 %v2997_v0  ;;  %v6425_v0 = vld [vmem:[%s8462_s16 + $0x25c] ss:$20 sps:$4 sm:$0xff]  }
 0xa23   :  { %3948 = vmatpush1.bf16.msra.mxu1 %v6375_v25 }
 0xa24   :  { %3384 = vmatpush2.bf16.msra.mxu0 %v6357_v32  ;;  %3949 = vmatprep.subr.bf16.mxu1 %v6383_v37 }
 0xa25   :  { %3385 = vmatprep.subr.bf16.mxu0 %v6362_v15 }
 0xa27   :  { %3950 = vmatpush1.bf16.msra.mxu1 %v6381_v38 }
 0xa28   :  { %3386 = vmatpush2.bf16.msra.mxu0 %v6360_v16  ;;  %3951 = vmatprep.subr.bf16.mxu1 %v6389_v39 }
 0xa29   :  { %3387 = vmatprep.subr.bf16.mxu0 %v6365_v17 }
 0xa2b   :  { %3952 = vmatpush1.bf16.msra.mxu1 %v6387_v40 }
 0xa2c   :  { %3388 = vmatpush2.bf16.msra.mxu0 %v6363_v18  ;;  %3953 = vmatprep.subr.bf16.mxu1 %v6395_v31 }
 0xa2d   :  { %3389 = vmatprep.subr.bf16.mxu0 %v6368_v19 }
 0xa2f   :  { %3954 = vmatpush1.bf16.msra.mxu1 %v6393_v43 }
 0xa30   :  { %3390 = vmatpush2.bf16.msra.mxu0 %v6366_v20  ;;  %3955 = vmatprep.subr.bf16.mxu1 %v6401_v45 }
 0xa31   :  { %3391 = vmatprep.subr.bf16.mxu0 %v6371_v21 }
 0xa33   :  { %3956 = vmatpush1.bf16.msra.mxu1 %v6399_v48  ;;  %v6390_v48 = vld [vmem:[%s8462_s16 + $0xd0] ss:$20 sps:$4 sm:$0xff]  }
 0xa34   :  { %3392 = vmatpush2.bf16.msra.mxu0 %v6369_v22  ;;  %3957 = vmatprep.subr.bf16.mxu1 %v6407_v54  ;;  %v6410_v54 = vld [vmem:[%s8462_s16 + $0x5c] ss:$20 sps:$4 sm:$0xff]  }
 0xa35   :  { %3393 = vmatprep.subr.bf16.mxu0 %v6374_v23 }
 0xa37   :  { %3958 = vmatpush1.bf16.msra.mxu1 %v6405_v58  ;;  %v6422_v58 = vld [vmem:[%s8462_s16 + $0xc] ss:$20 sps:$4 sm:$0xff]  }
 0xa38   :  { %3394 = vmatpush2.bf16.msra.mxu0 %v6372_v24  ;;  %3959 = vmatprep.subr.bf16.mxu1 %v6413_v61  ;;  %v2999_v24 = vld [vmem:[#allocation15] sm:$0x3] }
 0xa39   :  { %3988 = vmatprep.subr.bf16.mxu0 %v6380_v36  ;;  %v3004_v25 = vrot.slane %v2999_v24, %v7775_v27  ;;  %v3008_v26 = vrot.slane %v2999_v24, %v7781_v34  ;;  %v6426_v61 = vld [vmem:[%s8462_s16 + $0x260] ss:$20 sps:$4 sm:$0xff]  }
 0xa3b   :  { %3960 = vmatpush1.bf16.msra.mxu1 %v6411_v62  ;;  %v6434_v62 = vld [vmem:[%s8462_s16 + $0x23c] ss:$20 sps:$4 sm:$0xff]  }
 0xa3c   :  { %3961 = vmatprep.subr.bf16.mxu1 %v6419_v33  ;;  %v6432_v33 = vld [vmem:[%s8462_s16 + $0x238] ss:$20 sps:$4 sm:$0xff]  }
 0xa3f   :  { %3962 = vmatpush1.bf16.msra.mxu1 %v6417_v63  ;;  %v6440_v63 = vld [vmem:[%s8462_s16 + $0x214] ss:$20 sps:$4 sm:$0xff]  }
 0xa40   :  { %3963 = vmatprep.subr.bf16.mxu1 %v6425_v0  ;;  %v6438_v0 = vld [vmem:[%s8462_s16 + $0x210] ss:$20 sps:$4 sm:$0xff]  }
 0xa43   :  { %3964 = vmatpush2.bf16.msra.mxu1 %v6423_v2  ;;  %v6446_v2 = vld [vmem:[%s8462_s16 + $0x1ec] ss:$20 sps:$4 sm:$0xff]  }
 0xa44   :  { %3965 = vmatprep.subr.bf16.mxu1 %v6431_v3  ;;  %v6444_v3 = vld [vmem:[%s8462_s16 + $0x1e8] ss:$20 sps:$4 sm:$0xff]  }
 0xa47   :  { %3966 = vmatpush2.bf16.msra.mxu1 %v6429_v4  ;;  %v6452_v4 = vld [vmem:[%s8462_s16 + $0x1c4] ss:$20 sps:$4 sm:$0xff]  }
 0xa48   :  { %3967 = vmatprep.subr.bf16.mxu1 %v6437_v5  ;;  %v6450_v5 = vld [vmem:[%s8462_s16 + $0x1c0] ss:$20 sps:$4 sm:$0xff]  }
 0xa4b   :  { %3968 = vmatpush2.bf16.msra.mxu1 %v6435_v6  ;;  %v6458_v6 = vld [vmem:[%s8462_s16 + $0x19c] ss:$20 sps:$4 sm:$0xff]  }
 0xa4c   :  { %3969 = vmatprep.subr.bf16.mxu1 %v6443_v8  ;;  %v6456_v8 = vld [vmem:[%s8462_s16 + $0x198] ss:$20 sps:$4 sm:$0xff]  }
 0xa4f   :  { %3970 = vmatpush2.bf16.msra.mxu1 %v6441_v12  ;;  %v6461_v12 = vld [vmem:[%s8462_s16 + $0x16c] ss:$20 sps:$4 sm:$0xff]  }
 0xa50   :  { %3971 = vmatprep.subr.bf16.mxu1 %v6449_v9  ;;  %v6459_v9 = vld [vmem:[%s8462_s16 + $0x168] ss:$20 sps:$4 sm:$0xff]  }
 0xa53   :  { %3972 = vmatpush2.bf16.msra.mxu1 %v6447_v10  ;;  %v6464_v10 = vld [vmem:[%s8462_s16 + $0x174] ss:$20 sps:$4 sm:$0xff]  }
 0xa54   :  { %3973 = vmatprep.subr.bf16.mxu1 %v6455_v7  ;;  %v6462_v7 = vld [vmem:[%s8462_s16 + $0x170] ss:$20 sps:$4 sm:$0xff]  }
 0xa57   :  { %3974 = vmatpush2.bf16.msra.mxu1 %v6453_v11  ;;  %v6467_v11 = vld [vmem:[%s8462_s16 + $0x144] ss:$20 sps:$4 sm:$0xff]  }
 0xa58   :  { %3975 = vmatprep.subr.bf16.mxu1 %v6461_v12  ;;  %v6490_v12 = vld [vmem:[%s8464_s18 + $0x170] ss:$8 sps:$4 sm:$0xff]  }
 0xa5b   :  { %3976 = vmatpush2.bf16.msra.mxu1 %v6459_v9  ;;  %v6498_v9 = vld [vmem:[%s8464_s18 + $0x164] ss:$8 sps:$4 sm:$0xff]  }
 0xa5c   :  { %3977 = vmatprep.subr.bf16.mxu1 %v6467_v11  ;;  %v6496_v11 = vld [vmem:[%s8464_s18 + $0x160] ss:$8 sps:$4 sm:$0xff]  }
 0xa7a   :  { %v2835_v46 = vpop.f32.mrf.mxu1  ;;  %v2876_v30 = vpop.f32.mrf.mxu0 }
 0xa7b   :  { %v2836_v47 = vadd.f32 %v2835_v46, %v2154_v42  ;;  %v6386_v46 = vld [vmem:[%s8462_s16 + $0xfc] ss:$20 sps:$4 sm:$0xff]  }
 0xa7c   :  { %v2837_v49 = vpop.f32.mrf.mxu1  ;;  %v2878_v50 = vpop.f32.mrf.mxu0 }
 0xa7d   :  { %v2877_v51 = vadd.f32 %v2876_v30, %v2836_v47  ;;  %v2838_v52 = vadd.f32 %v2837_v49, %v2158_v44  ;;  %v6378_v44 = vld [vmem:[%s8462_s16 + $0x120] ss:$20 sps:$4 sm:$0xff]   ;;  %v6384_v30 = vld [vmem:[%s8462_s16 + $0xf8] ss:$20 sps:$4 sm:$0xff]  }
 0xa7e   :  { %v2839_v55 = vpop.f32.mrf.mxu1  ;;  %v2880_v56 = vpop.f32.mrf.mxu0  ;;  %v6392_v47 = vld [vmem:[%s8462_s16 + $0xd4] ss:$20 sps:$4 sm:$0xff]   ;;  %v6398_v49 = vld [vmem:[%s8462_s16 + $0xac] ss:$20 sps:$4 sm:$0xff]  }
 0xa7f   :  { %v2879_v57 = vadd.f32 %v2878_v50, %v2838_v52  ;;  %v6396_v50 = vld [vmem:[%s8462_s16 + $0xa8] ss:$20 sps:$4 sm:$0xff]   ;;  %v6402_v52 = vld [vmem:[%s8462_s16 + $0x80] ss:$20 sps:$4 sm:$0xff]   ;;  %v6408_v55 = vld [vmem:[%s8462_s16 + $0x58] ss:$20 sps:$4 sm:$0xff]  }
 0xa80   :  { %v2840_v59 = vpop.f32.mrf.mxu1  ;;  %v2881_v60 = vpop.f32.mrf.mxu0  ;;  %v6416_v56 = vld [vmem:[%s8462_s16 + $0x34] ss:$20 sps:$4 sm:$0xff]  }
 0xa81   :  { %v6420_v59 = vld [vmem:[%s8462_s16 + $0x8] ss:$20 sps:$4 sm:$0xff]   ;;  %v6428_v60 = vld [vmem:[%s8462_s16 + $0x264] ss:$20 sps:$4 sm:$0xff]  }
 0xaba   :  { %v2917_v13 = vpop.f32.mrf.mxu1  ;;  %v2958_v14 = vpop.f32.mrf.mxu0 }
 0xabb   :  { %v2918_v32 = vadd.f32 %v2917_v13, %v2877_v51  ;;  %v6404_v51 = vld [vmem:[%s8462_s16 + $0x84] ss:$20 sps:$4 sm:$0xff]   ;;  %v6465_v13 = vld [vmem:[%s8462_s16 + $0x140] ss:$20 sps:$4 sm:$0xff]  }
 0xabc   :  { %v2919_v15 = vpop.f32.mrf.mxu1  ;;  %v2960_v16 = vpop.f32.mrf.mxu0  ;;  %3978 = vmatpush2.bf16.msra.mxu1 %v6465_v13  ;;  %v6504_v13 = vld [vmem:[%s8464_s18 + $0x154] ss:$8 sps:$4 sm:$0xff]  }
 0xabd   :  { %v7903_v17 = vadd.f32 %v2958_v14, %v2918_v32  ;;  %v2920_v18 = vadd.f32 %v2919_v15, %v2879_v57  ;;  %v6414_v57 = vld [vmem:[%s8462_s16 + $0x30] ss:$20 sps:$4 sm:$0xff]   ;;  %v6470_v14 = vld [vmem:[%s8462_s16 + $0x14c] ss:$20 sps:$4 sm:$0xff]   ;;  %v6468_v32 = vld [vmem:[%s8462_s16 + $0x148] ss:$20 sps:$4 sm:$0xff]  }
 0xabe   :  { %v2921_v19 = vpop.f32.mrf.mxu1  ;;  %v2962_v20 = vpop.f32.mrf.mxu0  ;;  %v6471_v15 = vld [vmem:[%s8462_s16 + $0x268] ss:$20 sps:$4 sm:$0xff]  }
 0xabf   :  { %v7905_v21 = vadd.f32 %v2960_v16, %v2920_v18  ;;  %5925 = vmatprep.subr.bf16.mxu1 %v6471_v15  ;;  %v6489_v16 = vld [vmem:[%s8464_s18 + $0x74] ss:$8 sps:$4 sm:$0xff]   ;;  %v3191_v18 = vld [vmem:[#allocation18] sm:$0x3]  ;;  %v6502_v15 = vld [vmem:[%s8464_s18 + $0x150] ss:$8 sps:$4 sm:$0xff]  }
 0xac0   :  { %v2922_v22 = vpop.f32.mrf.mxu1  ;;  %v2963_v23 = vpop.f32.mrf.mxu0  ;;  %v3196_v19 = vrot.slane %v3191_v18, %v7775_v27  ;;  %v3200_v20 = vrot.slane %v3191_v18, %v7781_v34  ;;  %v6547_v18 = vld [vmem:[%s8464_s18 + $0xd0] ss:$8 sps:$4 sm:$0xff]  }
 0xae2   :  { %v3148_v36 = vpop.f32.mrf.mxu1 }
 0xae3   :  { %v3149_v37 = vadd.f32 %v3148_v36, %v3004_v25 }
 0xae4   :  { %v3150_v38 = vpop.f32.mrf.mxu1 }
 0xae5   :  { %v3151_v39 = vadd.f32 %v3150_v38, %v3008_v26  ;;  %v3155_v40 = vmax.f32 %v3149_v37, 0.0 }
 0xae6   :  { %v3152_v41 = vpop.f32.mrf.mxu1 }
 0xae7   :  { %v3156_v31 = vmax.f32 %v3151_v39, 0.0  ;;  %v3189_v45 = vpack.c.bf16 %v3155_v40, %v3155_v40  ;;  %v6472_v40 = vld [vmem:[%s8462_s16 + $0x128] ss:$20 sps:$4 sm:$0xff]  }
 0xae8   :  { %v3153_v42 = vpop.f32.mrf.mxu1 }
 0xae9   :  { %v3190_v43 = vpack.c.bf16 %v3156_v31, %v3156_v31  ;;  %v6473_v31 = vld [vmem:[%s8462_s16 + $0x240] ss:$20 sps:$4 sm:$0xff]   ;;  %v6487_v42 = vld [vmem:[%s8464_s18 + $0x70] ss:$8 sps:$4 sm:$0xff]  }
 0xaeb   :  { %3395 = vmatprep.mubr.bf16.mxu0 %v3190_v43  ;;  %v6495_v43 = vld [vmem:[%s8464_s18 + $0x64] ss:$8 sps:$4 sm:$0xff]  }
 0xaec   :  { %3396 = vmatmul.mubr.bf16.vlgmr.msra.gmra.mxu0 %v3189_v45  ;;  %v6475_v45 = vld [vmem:[%s8462_s16 + $0x218] ss:$20 sps:$4 sm:$0xff]  }
 0xaed   :  { %3989 = vmatpush1.bf16.msra.mxu0 %v6378_v44  ;;  %v6474_v44 = vld [vmem:[%s8462_s16 + $0x100] ss:$20 sps:$4 sm:$0xff]  }
 0xaee   :  { %3990 = vmatprep.subr.bf16.mxu0 %v6386_v46  ;;  %v6493_v46 = vld [vmem:[%s8464_s18 + $0x60] ss:$8 sps:$4 sm:$0xff]  }
 0xaf1   :  { %3991 = vmatpush1.bf16.msra.mxu0 %v6384_v30  ;;  %v6501_v30 = vld [vmem:[%s8464_s18 + $0x54] ss:$8 sps:$4 sm:$0xff]  }
 0xaf2   :  { %3992 = vmatprep.subr.bf16.mxu0 %v6392_v47  ;;  %v6476_v47 = vld [vmem:[%s8462_s16 + $0xd8] ss:$20 sps:$4 sm:$0xff]  }
 0xaf5   :  { %3993 = vmatpush1.bf16.msra.mxu0 %v6390_v48  ;;  %v6477_v48 = vld [vmem:[%s8462_s16 + $0x1f0] ss:$20 sps:$4 sm:$0xff]  }
 0xaf6   :  { %3994 = vmatprep.subr.bf16.mxu0 %v6398_v49  ;;  %v6499_v49 = vld [vmem:[%s8464_s18 + $0x50] ss:$8 sps:$4 sm:$0xff]  }
 0xaf9   :  { %3995 = vmatpush1.bf16.msra.mxu0 %v6396_v50  ;;  %v6507_v50 = vld [vmem:[%s8464_s18 + $0x44] ss:$8 sps:$4 sm:$0xff]  }
 0xafa   :  { %3996 = vmatprep.subr.bf16.mxu0 %v6404_v51  ;;  %v6478_v51 = vld [vmem:[%s8462_s16 + $0xb0] ss:$20 sps:$4 sm:$0xff]  }
 0xafd   :  { %3997 = vmatpush1.bf16.msra.mxu0 %v6402_v52  ;;  %v6479_v52 = vld [vmem:[%s8462_s16 + $0x1c8] ss:$20 sps:$4 sm:$0xff]  }
 0xafe   :  { %3998 = vmatprep.subr.bf16.mxu0 %v6410_v54  ;;  %v6505_v54 = vld [vmem:[%s8464_s18 + $0x40] ss:$8 sps:$4 sm:$0xff]  }
 0xb01   :  { %3999 = vmatpush1.bf16.msra.mxu0 %v6408_v55  ;;  %v6513_v55 = vld [vmem:[%s8464_s18 + $0x34] ss:$8 sps:$4 sm:$0xff]  }
 0xb02   :  { %4000 = vmatprep.subr.bf16.mxu0 %v6416_v56  ;;  %v6480_v56 = vld [vmem:[%s8462_s16 + $0x88] ss:$20 sps:$4 sm:$0xff]  }
 0xb05   :  { %4001 = vmatpush1.bf16.msra.mxu0 %v6414_v57  ;;  %v6481_v57 = vld [vmem:[%s8462_s16 + $0x1a0] ss:$20 sps:$4 sm:$0xff]  }
 0xb06   :  { %4002 = vmatprep.subr.bf16.mxu0 %v6422_v58  ;;  %v6511_v58 = vld [vmem:[%s8464_s18 + $0x30] ss:$8 sps:$4 sm:$0xff]  }
 0xb09   :  { %4003 = vmatpush1.bf16.msra.mxu0 %v6420_v59  ;;  %v6519_v59 = vld [vmem:[%s8464_s18 + $0x24] ss:$8 sps:$4 sm:$0xff]  }
 0xb0a   :  { %4004 = vmatprep.subr.bf16.mxu0 %v6428_v60  ;;  %v6482_v60 = vld [vmem:[%s8462_s16 + $0x60] ss:$20 sps:$4 sm:$0xff]  }
 0xb0d   :  { %4005 = vmatpush2.bf16.msra.mxu0 %v6426_v61  ;;  %v6483_v61 = vld [vmem:[%s8462_s16 + $0x178] ss:$20 sps:$4 sm:$0xff]  }
 0xb0e   :  { %4006 = vmatprep.subr.bf16.mxu0 %v6434_v62  ;;  %v6517_v62 = vld [vmem:[%s8464_s18 + $0x20] ss:$8 sps:$4 sm:$0xff]  }
 0xb11   :  { %4007 = vmatpush2.bf16.msra.mxu0 %v6432_v33  ;;  %v6525_v33 = vld [vmem:[%s8464_s18 + $0x14] ss:$8 sps:$4 sm:$0xff]  }
 0xb12   :  { %4008 = vmatprep.subr.bf16.mxu0 %v6440_v63  ;;  %v6484_v63 = vld [vmem:[%s8462_s16 + $0x38] ss:$20 sps:$4 sm:$0xff]  }
 0xb15   :  { %4009 = vmatpush2.bf16.msra.mxu0 %v6438_v0  ;;  %v6485_v0 = vld [vmem:[%s8462_s16 + $0x150] ss:$20 sps:$4 sm:$0xff]  }
 0xb16   :  { %4010 = vmatprep.subr.bf16.mxu0 %v6446_v2  ;;  %v6523_v2 = vld [vmem:[%s8464_s18 + $0x10] ss:$8 sps:$4 sm:$0xff]  }
 0xb19   :  { %4011 = vmatpush2.bf16.msra.mxu0 %v6444_v3  ;;  %v6531_v3 = vld [vmem:[%s8464_s18 + $0x4] ss:$8 sps:$4 sm:$0xff]  }
 0xb1a   :  { %4012 = vmatprep.subr.bf16.mxu0 %v6452_v4  ;;  %v6486_v4 = vld [vmem:[%s8462_s16 + $0x10] ss:$20 sps:$4 sm:$0xff]  }
 0xb1d   :  { %4013 = vmatpush2.bf16.msra.mxu0 %v6450_v5  ;;  %v6492_v5 = vld [vmem:[%s8464_s18 + $0x174] ss:$8 sps:$4 sm:$0xff]  }
 0xb1e   :  { %4014 = vmatprep.subr.bf16.mxu0 %v6458_v6  ;;  %v6529_v6 = vld [vmem:[%s8464_s18] ss:$8 sps:$4 sm:$0xff]  }
 0xb21   :  { %4015 = vmatpush2.bf16.msra.mxu0 %v6456_v8  ;;  %v6537_v8 = vld [vmem:[%s8464_s18 + $0xf4] ss:$8 sps:$4 sm:$0xff]  }
 0xb22   :  { %4016 = vmatprep.subr.bf16.mxu0 %v6464_v10  ;;  %v6535_v10 = vld [vmem:[%s8464_s18 + $0xf0] ss:$8 sps:$4 sm:$0xff]  }
 0xb25   :  { %4017 = vmatpush2.bf16.msra.mxu0 %v6462_v7  ;;  %v6543_v7 = vld [vmem:[%s8464_s18 + $0xe4] ss:$8 sps:$4 sm:$0xff]  }
 0xb26   :  { %4018 = vmatprep.subr.bf16.mxu0 %v6470_v14  ;;  %v6541_v14 = vld [vmem:[%s8464_s18 + $0xe0] ss:$8 sps:$4 sm:$0xff]  }
 0xb29   :  { %4019 = vmatpush2.bf16.msra.mxu0 %v6468_v32  ;;  %v6549_v32 = vld [vmem:[%s8464_s18 + $0xd4] ss:$8 sps:$4 sm:$0xff]  }
 0xb2a   :  { %4520 = vmatprep.subr.bf16.mxu0 %v6489_v16  ;;  %v6510_v16 = vld [vmem:[%s8464_s18 + $0x144] ss:$8 sps:$4 sm:$0xff]  }
 0xbac   :  { %v3397_v22 = vpop.f32.mrf.mxu0 }
 0xbad   :  { %v3398_v23 = vadd.f32 %v3397_v22, %v3196_v19  ;;  %v6555_v19 = vld [vmem:[%s8464_s18 + $0xc4] ss:$8 sps:$4 sm:$0xff]   ;;  %v6516_v22 = vld [vmem:[%s8464_s18 + $0x134] ss:$8 sps:$4 sm:$0xff]  }
 0xbae   :  { %v3399_v24 = vpop.f32.mrf.mxu0 }
 0xbaf   :  { %v3400_v25 = vadd.f32 %v3399_v24, %v3200_v20  ;;  %v3404_v26 = vmax.f32 %v3398_v23, 0.0  ;;  %v6508_v20 = vld [vmem:[%s8464_s18 + $0x140] ss:$8 sps:$4 sm:$0xff]   ;;  %v6561_v24 = vld [vmem:[%s8464_s18 + $0xb4] ss:$8 sps:$4 sm:$0xff]  }
 0xbb0   :  { %v3401_v36 = vpop.f32.mrf.mxu0  ;;  %v6553_v23 = vld [vmem:[%s8464_s18 + $0xc0] ss:$8 sps:$4 sm:$0xff]  }
 0xbb1   :  { %v3405_v37 = vmax.f32 %v3400_v25, 0.0  ;;  %v8025_v41 = vpack.c.bf16 %v3404_v26, %v3404_v26  ;;  %v6514_v25 = vld [vmem:[%s8464_s18 + $0x130] ss:$8 sps:$4 sm:$0xff]   ;;  %v6522_v26 = vld [vmem:[%s8464_s18 + $0x124] ss:$8 sps:$4 sm:$0xff]  }
 0xbb2   :  { %v3402_v38 = vpop.f32.mrf.mxu0  ;;  %v6559_v36 = vld [vmem:[%s8464_s18 + $0xb0] ss:$8 sps:$4 sm:$0xff]  }
 0xbb3   :  { %v3503_v39 = vpack.c.bf16 %v3405_v37, %v3405_v37  ;;  %v6567_v37 = vld [vmem:[%s8464_s18 + $0xa4] ss:$8 sps:$4 sm:$0xff]   ;;  %v6520_v38 = vld [vmem:[%s8464_s18 + $0x120] ss:$8 sps:$4 sm:$0xff]  }
 0xbb5   :  { %3979 = vmatprep.mubr.bf16.mxu1 %v3503_v39  ;;  %4020 = vmatprep.mubr.bf16.mxu0 %v3503_v39 }
 0xbb6   :  { %3980 = vmatmul.mubr.bf16.vlgmr.msra.gmra.mxu1 %v8025_v41  ;;  %4021 = vmatmul.mubr.bf16.vlgmr.msra.gmra.mxu0 %v8025_v41 }
 0xbb7   :  { %5926 = vmatpush3.bf16.msra.mxu1 %v6472_v40  ;;  %4061 = vmatprep.mubr.bf16.mxu1 %v3503_v39  ;;  %v6528_v39 = vld [vmem:[%s8464_s18 + $0x114] ss:$8 sps:$4 sm:$0xff]   ;;  %v6565_v40 = vld [vmem:[%s8464_s18 + $0xa0] ss:$8 sps:$4 sm:$0xff]  }
 0xbb8   :  { %5927 = vmatprep.subr.bf16.mxu1 %v6473_v31  ;;  %4521 = vmatpush1.bf16.msra.mxu0 %v6487_v42  ;;  %v6534_v31 = vld [vmem:[%s8464_s18 + $0x104] ss:$8 sps:$4 sm:$0xff]   ;;  %v6532_v42 = vld [vmem:[%s8464_s18 + $0x100] ss:$8 sps:$4 sm:$0xff]  }
 0xbb9   :  { %4522 = vmatprep.subr.bf16.mxu0 %v6495_v43  ;;  %v6540_v43 = vld [vmem:[%s8464_s18 + $0x1f4] ss:$8 sps:$4 sm:$0xff]  }
 0xbbb   :  { %5928 = vmatpush3.bf16.msra.mxu1 %v6474_v44  ;;  %v6538_v44 = vld [vmem:[%s8464_s18 + $0x1f0] ss:$8 sps:$4 sm:$0xff]  }
 0xbbc   :  { %5929 = vmatprep.subr.bf16.mxu1 %v6475_v45  ;;  %4523 = vmatpush1.bf16.msra.mxu0 %v6493_v46  ;;  %v6546_v45 = vld [vmem:[%s8464_s18 + $0x1e4] ss:$8 sps:$4 sm:$0xff]   ;;  %v6544_v46 = vld [vmem:[%s8464_s18 + $0x1e0] ss:$8 sps:$4 sm:$0xff]  }
 0xbbd   :  { %4524 = vmatprep.subr.bf16.mxu0 %v6501_v30  ;;  %v6573_v30 = vld [vmem:[%s8464_s18 + $0x94] ss:$8 sps:$4 sm:$0xff]  }
 0xbbf   :  { %5930 = vmatpush3.bf16.msra.mxu1 %v6476_v47  ;;  %v6552_v47 = vld [vmem:[%s8464_s18 + $0x1d4] ss:$8 sps:$4 sm:$0xff]  }
 0xbc0   :  { %5931 = vmatprep.subr.bf16.mxu1 %v6477_v48  ;;  %4525 = vmatpush1.bf16.msra.mxu0 %v6499_v49  ;;  %v6571_v48 = vld [vmem:[%s8464_s18 + $0x90] ss:$8 sps:$4 sm:$0xff]  }
 0xbc1   :  { %4526 = vmatprep.subr.bf16.mxu0 %v6507_v50  ;;  %v6550_v49 = vld [vmem:[%s8464_s18 + $0x1d0] ss:$8 sps:$4 sm:$0xff]   ;;  %v6579_v50 = vld [vmem:[%s8464_s18 + $0x84] ss:$8 sps:$4 sm:$0xff]  }
 0xbc3   :  { %5932 = vmatpush3.bf16.msra.mxu1 %v6478_v51  ;;  %v6558_v51 = vld [vmem:[%s8464_s18 + $0x1c4] ss:$8 sps:$4 sm:$0xff]  }
 0xbc4   :  { %5933 = vmatprep.subr.bf16.mxu1 %v6479_v52  ;;  %4527 = vmatpush1.bf16.msra.mxu0 %v6505_v54  ;;  %v6577_v52 = vld [vmem:[%s8464_s18 + $0x80] ss:$8 sps:$4 sm:$0xff]  }
 0xbc5   :  { %4528 = vmatprep.subr.bf16.mxu0 %v6513_v55  ;;  %v6556_v54 = vld [vmem:[%s8464_s18 + $0x1c0] ss:$8 sps:$4 sm:$0xff]   ;;  %v6564_v55 = vld [vmem:[%s8464_s18 + $0x1b4] ss:$8 sps:$4 sm:$0xff]  }
 0xbc7   :  { %5934 = vmatpush3.bf16.msra.mxu1 %v6480_v56  ;;  %v6583_v56 = vld [vmem:[%s8464_s18 + $0x224] ss:$8 sps:$4 sm:$0x3f]  }
 0xbc8   :  { %5935 = vmatprep.subr.bf16.mxu1 %v6481_v57  ;;  %4529 = vmatpush1.bf16.msra.mxu0 %v6511_v58  ;;  %v6562_v57 = vld [vmem:[%s8464_s18 + $0x1b0] ss:$8 sps:$4 sm:$0xff]   ;;  %v6570_v58 = vld [vmem:[%s8464_s18 + $0x1a4] ss:$8 sps:$4 sm:$0xff]  }
 0xbc9   :  { %4530 = vmatprep.subr.bf16.mxu0 %v6519_v59  ;;  %v6568_v59 = vld [vmem:[%s8464_s18 + $0x1a0] ss:$8 sps:$4 sm:$0xff]  }
 0xbcb   :  { %5936 = vmatpush3.bf16.msra.mxu1 %v6482_v60  ;;  %v6576_v60 = vld [vmem:[%s8464_s18 + $0x194] ss:$8 sps:$4 sm:$0xff]  }
 0xbcc   :  { %5937 = vmatprep.subr.bf16.mxu1 %v6483_v61  ;;  %4531 = vmatpush1.bf16.msra.mxu0 %v6517_v62  ;;  %v6574_v61 = vld [vmem:[%s8464_s18 + $0x190] ss:$8 sps:$4 sm:$0xff]   ;;  %v6582_v62 = vld [vmem:[%s8464_s18 + $0x184] ss:$8 sps:$4 sm:$0xff]  }
 0xbcd   :  { %4532 = vmatprep.subr.bf16.mxu0 %v6525_v33  ;;  %v6580_v33 = vld [vmem:[%s8464_s18 + $0x180] ss:$8 sps:$4 sm:$0xff]  }
 0xbcf   :  { %5938 = vmatpush3.bf16.msra.mxu1 %v6484_v63  ;;  %v6642_v63 = vld [vmem:[#allocation23 + $0x74] ss:$8 sps:$4 sm:$0xff]  }
 0xbd0   :  { %5939 = vmatprep.subr.bf16.mxu1 %v6485_v0  ;;  %4533 = vmatpush1.bf16.msra.mxu0 %v6523_v2  ;;  %v8265_v0 = vld [vmem:[#allocation20] sm:$0x1f] }
 0xbd1   :  { %4534 = vmatprep.subr.bf16.mxu0 %v6531_v3  ;;  %v3509_v2 = vrot.slane %v8265_v0, %v7775_v27  ;;  %v3517_v3 = vrot.slane %v8265_v0, %v1171_v28  ;;  %v6585_v28 = vld [vmem:[%s8464_s18 + $0x220] ss:$8 sps:$4 sm:$0x3f]  }
 0xbd3   :  { %5940 = vmatpush3.bf16.msra.mxu1 %v6486_v4  ;;  %v3513_v4 = vrot.slane %v8265_v0, %v7781_v34 }
 0xbd4   :  { %4561 = vmatprep.subr.bf16.mxu1 %v6492_v5  ;;  %4535 = vmatpush1.bf16.msra.mxu0 %v6529_v6  ;;  %v3521_v5 = vrot.slane %v8265_v0, %v1175_v35 }
 0xbd5   :  { %4536 = vmatprep.subr.bf16.mxu0 %v6537_v8 }
 0xbd6   :  { %4062 = vmatmul.mubr.bf16.vlgmr.msra.gmra.mxu1 %v8025_v41  ;;  %v6526_v41 = vld [vmem:[%s8464_s18 + $0x110] ss:$8 sps:$4 sm:$0xff]  }
 0xbd7   :  { %4562 = vmatpush1.bf16.msra.mxu1 %v6490_v12 }
 0xbd8   :  { %4563 = vmatprep.subr.bf16.mxu1 %v6498_v9  ;;  %4537 = vmatpush2.bf16.msra.mxu0 %v6535_v10 }
 0xbd9   :  { %4538 = vmatprep.subr.bf16.mxu0 %v6543_v7 }
 0xbdb   :  { %4564 = vmatpush1.bf16.msra.mxu1 %v6496_v11 }
 0xbdc   :  { %4565 = vmatprep.subr.bf16.mxu1 %v6504_v13  ;;  %4539 = vmatpush2.bf16.msra.mxu0 %v6541_v14 }
 0xbdd   :  { %4540 = vmatprep.subr.bf16.mxu0 %v6549_v32 }
 0xbdf   :  { %4566 = vmatpush1.bf16.msra.mxu1 %v6502_v15 }
 0xbe0   :  { %4567 = vmatprep.subr.bf16.mxu1 %v6510_v16  ;;  %4541 = vmatpush2.bf16.msra.mxu0 %v6547_v18 }
 0xbe1   :  { %4542 = vmatprep.subr.bf16.mxu0 %v6555_v19 }
 0xbe3   :  { %4568 = vmatpush1.bf16.msra.mxu1 %v6508_v20 }
 0xbe4   :  { %4569 = vmatprep.subr.bf16.mxu1 %v6516_v22  ;;  %4543 = vmatpush2.bf16.msra.mxu0 %v6553_v23 }
 0xbe5   :  { %4544 = vmatprep.subr.bf16.mxu0 %v6561_v24 }
 0xbe7   :  { %4570 = vmatpush1.bf16.msra.mxu1 %v6514_v25 }
 0xbe8   :  { %4571 = vmatprep.subr.bf16.mxu1 %v6522_v26  ;;  %4545 = vmatpush2.bf16.msra.mxu0 %v6559_v36  ;;  %v4515_v26 = vsel %vm4513_vm7, %v6585_v28, 0  ;;  %v6588_v36 = vld [vmem:[%s8464_s18 + $0x214] ss:$8 sps:$4 sm:$0xff]  }
 0xbe9   :  { %4546 = vmatprep.subr.bf16.mxu0 %v6567_v37  ;;  %v6640_v37 = vld [vmem:[#allocation23 + $0x70] ss:$8 sps:$4 sm:$0xff]   ;;  %v6661_v28 = vld [vmem:[#allocation23] ss:$8 sps:$4 sm:$0xff]  }
 0xbeb   :  { %4572 = vmatpush1.bf16.msra.mxu1 %v6520_v38  ;;  %v6645_v38 = vld [vmem:[#allocation23 + $0x64] ss:$8 sps:$4 sm:$0xff]  }
 0xbec   :  { %4573 = vmatprep.subr.bf16.mxu1 %v6528_v39  ;;  %4547 = vmatpush2.bf16.msra.mxu0 %v6565_v40  ;;  %v6586_v39 = vld [vmem:[%s8464_s18 + $0x210] ss:$8 sps:$4 sm:$0xff]   ;;  %v7015_v40 = vmov 0  }
 0xbed   :  { %4548 = vmatprep.subr.bf16.mxu0 %v6573_v30  ;;  %v6649_v30 = vld [vmem:[#allocation23 + $0x40] ss:$8 sps:$4 sm:$0xff]  }
 0xbef   :  { %4574 = vmatpush1.bf16.msra.mxu1 %v6526_v41  ;;  %v6591_v41 = vld [vmem:[%s8464_s18 + $0x204] ss:$8 sps:$4 sm:$0xff]  }
 0xbf0   :  { %4575 = vmatprep.subr.bf16.mxu1 %v6534_v31  ;;  %4549 = vmatpush2.bf16.msra.mxu0 %v6571_v48  ;;  %v6643_v31 = vld [vmem:[#allocation23 + $0x60] ss:$8 sps:$4 sm:$0xff]   ;;  %v6652_v48 = vld [vmem:[#allocation23 + $0x30] ss:$8 sps:$4 sm:$0xff]  }
 0xbf1   :  { %4550 = vmatprep.subr.bf16.mxu0 %v6579_v50  ;;  %v6655_v50 = vld [vmem:[#allocation23 + $0x20] ss:$8 sps:$4 sm:$0xff]  }
 0xbf3   :  { %4576 = vmatpush1.bf16.msra.mxu1 %v6532_v42  ;;  %v6648_v42 = vld [vmem:[#allocation23 + $0x54] ss:$8 sps:$4 sm:$0xff]  }
 0xbf4   :  { %4577 = vmatprep.subr.bf16.mxu1 %v6540_v43  ;;  %4551 = vmatpush2.bf16.msra.mxu0 %v6577_v52  ;;  %v6589_v43 = vld [vmem:[%s8464_s18 + $0x200] ss:$8 sps:$4 sm:$0xff]   ;;  %v3525_v52 = vrot.slane %v8265_v0, %v1179_v53  ;;  %v6603_v0 = vld [vmem:[#allocation21 + $0x44] ss:$8 sps:$4 sm:$0xff]  }
 0xbf5   :  { %5822 = vmatprep.subr.msk.bf16.mxu0 %vm4513_vm7, %v6583_v56  ;;  %v6598_v53 = vld [vmem:[#allocation21 + $0x50] ss:$8 sps:$4 sm:$0xff]  }
 0xbf7   :  { %4578 = vmatpush2.bf16.msra.mxu1 %v6538_v44  ;;  %v6594_v44 = vld [vmem:[#allocation21 + $0x74] ss:$8 sps:$4 sm:$0xff]  }
 0xbf8   :  { %4579 = vmatprep.subr.bf16.mxu1 %v6546_v45  ;;  %v6646_v45 = vld [vmem:[#allocation23 + $0x50] ss:$8 sps:$4 sm:$0xff]  }
 0xbfb   :  { %4580 = vmatpush2.bf16.msra.mxu1 %v6544_v46  ;;  %v6651_v46 = vld [vmem:[#allocation23 + $0x44] ss:$8 sps:$4 sm:$0xff]  }
 0xbfc   :  { %4581 = vmatprep.subr.bf16.mxu1 %v6552_v47  ;;  %v6654_v47 = vld [vmem:[#allocation23 + $0x34] ss:$8 sps:$4 sm:$0xff]  }
 0xbff   :  { %4582 = vmatpush2.bf16.msra.mxu1 %v6550_v49  ;;  %v6657_v49 = vld [vmem:[#allocation23 + $0x24] ss:$8 sps:$4 sm:$0xff]  }
 0xc00   :  { %4583 = vmatprep.subr.bf16.mxu1 %v6558_v51 }
 0xc03   :  { %4584 = vmatpush2.bf16.msra.mxu1 %v6556_v54 }
 0xc04   :  { %4585 = vmatprep.subr.bf16.mxu1 %v6564_v55 }
 0xc07   :  { %4586 = vmatpush2.bf16.msra.mxu1 %v6562_v57 }
 0xc08   :  { %4587 = vmatprep.subr.bf16.mxu1 %v6570_v58 }
 0xc0b   :  { %4588 = vmatpush2.bf16.msra.mxu1 %v6568_v59 }
 0xc0c   :  { %4589 = vmatprep.subr.bf16.mxu1 %v6576_v60  ;;  %v6592_v60 = vld [vmem:[#allocation21 + $0x70] ss:$8 sps:$4 sm:$0xff]  }
 0xc0f   :  { %4590 = vmatpush2.bf16.msra.mxu1 %v6574_v61 }
 0xc10   :  { %4591 = vmatprep.subr.bf16.mxu1 %v6582_v62  ;;  %v6597_v62 = vld [vmem:[#allocation21 + $0x64] ss:$8 sps:$4 sm:$0xff]  }
 0xc13   :  { %4592 = vmatpush2.bf16.msra.mxu1 %v6580_v33  ;;  %v4676_v33 = vpack.c.bf16 %v7905_v21, %v7905_v21  ;;  %v6607_v21 = vld [vmem:[#allocation21 + $0x20] ss:$8 sps:$4 sm:$0xff]  }
 0xc14   :  { %4871 = vmatprep.subr.bf16.mxu1 %v6642_v63  ;;  %v6595_v63 = vld [vmem:[#allocation21 + $0x60] ss:$8 sps:$4 sm:$0xff]  }
 0xc76   :  { %v3981_v6 = vpop.f32.mrf.mxu1  ;;  %v4022_v8 = vpop.f32.mrf.mxu0 }
 0xc77   :  { %v3982_v12 = vadd.f32 %v3981_v6, %v3509_v2  ;;  %v4023_v9 = vadd.f32 %v4022_v8, %v3517_v3  ;;  %v6601_v2 = vld [vmem:[#allocation21 + $0x40] ss:$8 sps:$4 sm:$0xff]   ;;  %v6606_v3 = vld [vmem:[#allocation21 + $0x34] ss:$8 sps:$4 sm:$0xff]   ;;  %v6610_v8 = vld [vmem:[#allocation21 + $0x10] ss:$8 sps:$4 sm:$0xff]  }
 0xc78   :  { %v3983_v10 = vpop.f32.mrf.mxu1  ;;  %v4024_v7 = vpop.f32.mrf.mxu0  ;;  %v6612_v6 = vld [vmem:[#allocation21 + $0x14] ss:$8 sps:$4 sm:$0xff]  }
 0xc79   :  { %v3984_v11 = vadd.f32 %v3983_v10, %v3513_v4  ;;  %v4025_v13 = vadd.f32 %v4024_v7, %v3521_v5  ;;  %v4069_v14 = vmax.f32 %v3982_v12, 0.0  ;;  %v4071_v32 = vmax.f32 %v4023_v9, 0.0  ;;  %v6604_v4 = vld [vmem:[#allocation21 + $0x30] ss:$8 sps:$4 sm:$0xff]   ;;  %v6609_v5 = vld [vmem:[#allocation21 + $0x24] ss:$8 sps:$4 sm:$0xff]  }
 0xc7a   :  { %v3985_v15 = vpop.f32.mrf.mxu1  ;;  %v4026_v16 = vpop.f32.mrf.mxu0  ;;  %v6615_v12 = vld [vmem:[#allocation21 + $0x4] ss:$8 sps:$4 sm:$0xff]   ;;  %v6613_v9 = vld [vmem:[#allocation21] ss:$8 sps:$4 sm:$0xff]   ;;  %v6618_v10 = vld [vmem:[#allocation21 + $0xf4] ss:$8 sps:$4 sm:$0xff]  }
 0xc7b   :  { %v4070_v18 = vmax.f32 %v3984_v11, 0.0  ;;  %v4072_v19 = vmax.f32 %v4025_v13, 0.0  ;;  %v4144_v24 = vpack.c.bf16 %v4069_v14, %v4069_v14  ;;  %v4146_v25 = vpack.c.bf16 %v4071_v32, %v4071_v32  ;;  %v6616_v7 = vld [vmem:[#allocation21 + $0xf0] ss:$8 sps:$4 sm:$0xff]   ;;  %v6621_v11 = vld [vmem:[#allocation21 + $0xe4] ss:$8 sps:$4 sm:$0xff]  }
 0xc7c   :  { %v3986_v20 = vpop.f32.mrf.mxu1  ;;  %v4027_v35 = vpop.f32.mrf.mxu0  ;;  %v6660_v13 = vld [vmem:[#allocation23 + $0x14] ss:$8 sps:$4 sm:$0xff]   ;;  %v6658_v14 = vld [vmem:[#allocation23 + $0x10] ss:$8 sps:$4 sm:$0xff]   ;;  %v6619_v32 = vld [vmem:[#allocation21 + $0xe0] ss:$8 sps:$4 sm:$0xff]  }
 0xc7d   :  { %v4145_v22 = vpack.c.bf16 %v4070_v18, %v4070_v18  ;;  %v4147_v23 = vpack.c.bf16 %v4072_v19, %v4072_v19  ;;  %v6624_v15 = vld [vmem:[#allocation21 + $0xd4] ss:$8 sps:$4 sm:$0xff]   ;;  %v6663_v16 = vld [vmem:[#allocation23 + $0x4] ss:$8 sps:$4 sm:$0xff]   ;;  %v6622_v18 = vld [vmem:[#allocation21 + $0xd0] ss:$8 sps:$4 sm:$0xff]  }
 0xc7e   :  { %v6666_v19 = vld [vmem:[#allocation23 + $0xf4] ss:$8 sps:$4 sm:$0xff]   ;;  %v6627_v20 = vld [vmem:[#allocation21 + $0xc4] ss:$8 sps:$4 sm:$0xff]   ;;  %v6664_v35 = vld [vmem:[#allocation23 + $0xf0] ss:$8 sps:$4 sm:$0xff]  }
 0xc7f   :  { %4552 = vmatprep.mubr.bf16.mxu0 %v4145_v22  ;;  %4593 = vmatprep.mubr.bf16.mxu1 %v4147_v23  ;;  %v6669_v22 = vld [vmem:[#allocation23 + $0xe4] ss:$8 sps:$4 sm:$0xff]   ;;  %v6625_v23 = vld [vmem:[#allocation21 + $0xc0] ss:$8 sps:$4 sm:$0xff]  }
 0xc80   :  { %4553 = vmatmul.mubr.bf16.vlgmr.msra.gmra.mxu0 %v4144_v24  ;;  %4594 = vmatmul.mubr.bf16.vlgmr.msra.gmra.mxu1 %v4146_v25  ;;  %v6630_v24 = vld [vmem:[#allocation21 + $0xb4] ss:$8 sps:$4 sm:$0xff]   ;;  %v6667_v25 = vld [vmem:[#allocation23 + $0xe0] ss:$8 sps:$4 sm:$0xff]  }
 0xc81   :  { %4613 = vmatpush1.bf16.msra.mxu0 %v4515_v26  ;;  %4634 = vmatprep.mubr.bf16.mxu0 %v7015_v40  ;;  %v6672_v26 = vld [vmem:[#allocation23 + $0xd4] ss:$8 sps:$4 sm:$0xff]   ;;  %v6631_v40 = vld [vmem:[#allocation21 + $0xa0] ss:$8 sps:$4 sm:$0xff]  }
 0xc82   :  { %4614 = vmatprep.subr.bf16.mxu0 %v6588_v36  ;;  %4872 = vmatpush1.bf16.msra.mxu1 %v6640_v37  ;;  %v6628_v36 = vld [vmem:[#allocation21 + $0xb0] ss:$8 sps:$4 sm:$0xff]   ;;  %v6633_v37 = vld [vmem:[#allocation21 + $0xa4] ss:$8 sps:$4 sm:$0xff]  }
 0xc83   :  { %4873 = vmatprep.subr.bf16.mxu1 %v6645_v38  ;;  %v6670_v38 = vld [vmem:[#allocation23 + $0xd0] ss:$8 sps:$4 sm:$0xff]  }
 0xc85   :  { %4615 = vmatpush1.bf16.msra.mxu0 %v6586_v39  ;;  %v6675_v39 = vld [vmem:[#allocation23 + $0xc4] ss:$8 sps:$4 sm:$0xff]  }
 0xc86   :  { %4616 = vmatprep.subr.bf16.mxu0 %v6591_v41  ;;  %4874 = vmatpush1.bf16.msra.mxu1 %v6643_v31  ;;  %v6636_v41 = vld [vmem:[#allocation21 + $0x94] ss:$8 sps:$4 sm:$0xff]   ;;  %v6673_v31 = vld [vmem:[#allocation23 + $0xc0] ss:$8 sps:$4 sm:$0xff]  }
 0xc87   :  { %4875 = vmatprep.subr.bf16.mxu1 %v6648_v42  ;;  %v6678_v42 = vld [vmem:[#allocation23 + $0xb4] ss:$8 sps:$4 sm:$0xff]  }
 0xc89   :  { %4617 = vmatpush1.bf16.msra.mxu0 %v6589_v43  ;;  %v6634_v43 = vld [vmem:[#allocation21 + $0x90] ss:$8 sps:$4 sm:$0xff]  }
 0xc8a   :  { %5072 = vmatprep.subr.bf16.mxu0 %v6594_v44  ;;  %4876 = vmatpush1.bf16.msra.mxu1 %v6646_v45  ;;  %v6639_v44 = vld [vmem:[#allocation21 + $0x84] ss:$8 sps:$4 sm:$0xff]   ;;  %v6676_v45 = vld [vmem:[#allocation23 + $0xb0] ss:$8 sps:$4 sm:$0xff]  }
 0xc8b   :  { %4877 = vmatprep.subr.bf16.mxu1 %v6651_v46  ;;  %v6681_v46 = vld [vmem:[#allocation23 + $0xa4] ss:$8 sps:$4 sm:$0xff]  }
 0xc8e   :  { %4878 = vmatpush1.bf16.msra.mxu1 %v6649_v30  ;;  %v6637_v30 = vld [vmem:[#allocation21 + $0x80] ss:$8 sps:$4 sm:$0xff]  }
 0xc8f   :  { %4879 = vmatprep.subr.bf16.mxu1 %v6654_v47  ;;  %v6679_v47 = vld [vmem:[#allocation23 + $0xa0] ss:$8 sps:$4 sm:$0xff]  }
 0xc92   :  { %4880 = vmatpush1.bf16.msra.mxu1 %v6652_v48  ;;  %v4675_v48 = vpack.c.bf16 %v7903_v17, %v7903_v17 }
 0xc93   :  { %4881 = vmatprep.subr.bf16.mxu1 %v6657_v49  ;;  %v6684_v49 = vld [vmem:[#allocation23 + $0x94] ss:$8 sps:$4 sm:$0xff]  }
 0xc96   :  { %v5941_v51 = vpop.f32.mrf.mxu1  ;;  %4882 = vmatpush1.bf16.msra.mxu1 %v6655_v50  ;;  %v6682_v50 = vld [vmem:[#allocation23 + $0x90] ss:$8 sps:$4 sm:$0xff]  }
 0xc97   :  { %4883 = vmatprep.subr.bf16.mxu1 %v6660_v13  ;;  %v5158_v13 = vld [vmem:[%s8469_s23 + $0xe8] sm:$0xff] }
 0xc98   :  { %v5942_v54 = vpop.f32.mrf.mxu1 }
 0xc99   :  { %v5943_v55 = vadd.f32 %v5942_v54, %v5941_v51  ;;  %v6687_v51 = vld [vmem:[#allocation23 + $0x84] ss:$8 sps:$4 sm:$0xff]  }
 0xc9a   :  { %v5944_v56 = vpop.f32.mrf.mxu1  ;;  %4884 = vmatpush1.bf16.msra.mxu1 %v6658_v14  ;;  %v5160_v54 = vld [vmem:[%s8469_s23 + $0xf8] sm:$0xff]  ;;  %v5142_v14 = vld [vmem:[%s8469_s23 + $0x68] sm:$0xff] }
 0xc9b   :  { %v4064_v57 = vadd.f32 %v5943_v55, %v3525_v52  ;;  %4885 = vmatprep.subr.bf16.mxu1 %v6663_v16  ;;  %v6685_v52 = vld [vmem:[#allocation23 + $0x80] ss:$8 sps:$4 sm:$0xff]  }
 0xc9c   :  { %v5945_v58 = vpop.f32.mrf.mxu1  ;;  %v5156_v16 = vld [vmem:[%s8469_s23 + $0xd8] sm:$0xff] }
 0xc9d   :  { %v4073_v59 = vmax.f32 %v4064_v57, 0.0 }
 0xc9e   :  { %4886 = vmatpush1.bf16.msra.mxu1 %v6661_v28  ;;  %v5140_v28 = vld [vmem:[%s8469_s23 + $0x58] sm:$0xff] }
 0xc9f   :  { %v4148_v61 = vpack.c.bf16 %v4073_v59, %v4073_v59  ;;  %4887 = vmatprep.subr.bf16.mxu1 %v6666_v19  ;;  %v5139_v19 = vld [vmem:[%s8469_s23 + $0x50] sm:$0xff] }
 0xca1   :  { %5823 = vmatmul.mubr.msk.bf16.vlgmr.msra.gmra.mxu0 %vm4509_vm8, %v4148_v61 }
 0xca2   :  { %5073 = vmatpush1.bf16.msra.mxu0 %v6592_v60  ;;  %5104 = vmatprep.mubr.bf16.mxu0 %v4676_v33 }
 0xca3   :  { %5074 = vmatprep.subr.bf16.mxu0 %v6597_v62  ;;  %4888 = vmatpush2.bf16.msra.mxu1 %v6664_v35  ;;  %v4149_v62 = vld [vmem:[%s8465_s19] sm:$0x3]  ;;  %v5138_v35 = vld [vmem:[%s8469_s23 + $0x48] sm:$0xff] }
 0xca4   :  { %4889 = vmatprep.subr.bf16.mxu1 %v6669_v22  ;;  %v4154_v33 = vrot.slane %v4149_v62, %v7775_v27  ;;  %v5153_v22 = vld [vmem:[%s8469_s23 + $0xc0] sm:$0xff] }
 0xca6   :  { %5075 = vmatpush1.bf16.msra.mxu0 %v6595_v63  ;;  %v4158_v63 = vrot.slane %v4149_v62, %v7781_v34 }
 0xca7   :  { %5076 = vmatprep.subr.bf16.mxu0 %v6600_v29  ;;  %4890 = vmatpush2.bf16.msra.mxu1 %v6667_v25  ;;  %v5136_v25 = vld [vmem:[%s8469_s23 + $0x38] sm:$0xff] }
 0xca8   :  { %4891 = vmatprep.subr.bf16.mxu1 %v6672_v26  ;;  %v5151_v26 = vld [vmem:[%s8469_s23 + $0xb0] sm:$0xff] }
 0xcaa   :  { %5077 = vmatpush1.bf16.msra.mxu0 %v6598_v53 }
 0xcab   :  { %5078 = vmatprep.subr.bf16.mxu0 %v6603_v0  ;;  %4892 = vmatpush2.bf16.msra.mxu1 %v6670_v38  ;;  %v5134_v38 = vld [vmem:[%s8469_s23 + $0x28] sm:$0xff] }
 0xcac   :  { %4893 = vmatprep.subr.bf16.mxu1 %v6675_v39 }
 0xcae   :  { %5079 = vmatpush1.bf16.msra.mxu0 %v6601_v2 }
 0xcaf   :  { %5080 = vmatprep.subr.bf16.mxu0 %v6606_v3  ;;  %4894 = vmatpush2.bf16.msra.mxu1 %v6673_v31 }
 0xcb0   :  { %4895 = vmatprep.subr.bf16.mxu1 %v6678_v42  ;;  %v5149_v42 = vld [vmem:[%s8469_s23 + $0xa0] sm:$0xff] }
 0xcb2   :  { %5081 = vmatpush1.bf16.msra.mxu0 %v6604_v4 }
 0xcb3   :  { %5082 = vmatprep.subr.bf16.mxu0 %v6609_v5  ;;  %4896 = vmatpush2.bf16.msra.mxu1 %v6676_v45  ;;  %v5132_v45 = vld [vmem:[%s8469_s23 + $0x18] sm:$0xff] }
 0xcb4   :  { %4897 = vmatprep.subr.bf16.mxu1 %v6681_v46  ;;  %v5147_v46 = vld [vmem:[%s8469_s23 + $0x90] sm:$0xff] }
 0xcb6   :  { %5083 = vmatpush1.bf16.msra.mxu0 %v6607_v21 }
 0xcb7   :  { %5084 = vmatprep.subr.bf16.mxu0 %v6612_v6  ;;  %4898 = vmatpush2.bf16.msra.mxu1 %v6679_v47  ;;  %v5146_v47 = vld [vmem:[%s8469_s23 + $0x88] sm:$0xff] }
 0xcb8   :  { %4899 = vmatprep.subr.bf16.mxu1 %v6684_v49  ;;  %v5145_v49 = vld [vmem:[%s8469_s23 + $0x80] sm:$0xff] }
 0xcba   :  { %5085 = vmatpush1.bf16.msra.mxu0 %v6610_v8 }
 0xcbb   :  { %5086 = vmatprep.subr.bf16.mxu0 %v6615_v12  ;;  %4900 = vmatpush2.bf16.msra.mxu1 %v6682_v50  ;;  %v5129_v50 = vld [vmem:[%s8469_s23] sm:$0xff] }
 0xcbc   :  { %4901 = vmatprep.subr.bf16.mxu1 %v6687_v51  ;;  %v5246_v51 = vld [vmem:[%s8471_s25 + $0x38] sm:$0xff] }
 0xcbe   :  { %5087 = vmatpush1.bf16.msra.mxu0 %v6613_v9 }
 0xcbf   :  { %5088 = vmatprep.subr.bf16.mxu0 %v6618_v10  ;;  %4902 = vmatpush2.bf16.msra.mxu1 %v6685_v52  ;;  %v5144_v10 = vld [vmem:[%s8469_s23 + $0x78] sm:$0xff]  ;;  %v5245_v52 = vld [vmem:[%s8471_s25 + $0x30] sm:$0xff] }
 0xcc0   :  { %5947 = vmatprep.subr.mxu1 %v5160_v54  ;;  %v5244_v54 = vld [vmem:[%s8471_s25 + $0x28] sm:$0xff] }
 0xcc2   :  { %5089 = vmatpush2.bf16.msra.mxu0 %v6616_v7  ;;  %v5159_v7 = vld [vmem:[%s8469_s23 + $0xf0] sm:$0xff] }
 0xcc3   :  { %5090 = vmatprep.subr.bf16.mxu0 %v6621_v11  ;;  %v5143_v11 = vld [vmem:[%s8469_s23 + $0x70] sm:$0xff] }
 0xcc6   :  { %5091 = vmatpush2.bf16.msra.mxu0 %v6619_v32  ;;  %v5157_v32 = vld [vmem:[%s8469_s23 + $0xe0] sm:$0xff] }
 0xcc7   :  { %5092 = vmatprep.subr.bf16.mxu0 %v6624_v15  ;;  %v5141_v15 = vld [vmem:[%s8469_s23 + $0x60] sm:$0xff] }
 0xcca   :  { %5093 = vmatpush2.bf16.msra.mxu0 %v6622_v18  ;;  %v5155_v18 = vld [vmem:[%s8469_s23 + $0xd0] sm:$0xff] }
 0xccb   :  { %5094 = vmatprep.subr.bf16.mxu0 %v6627_v20  ;;  %v5154_v20 = vld [vmem:[%s8469_s23 + $0xc8] sm:$0xff] }
 0xcce   :  { %5095 = vmatpush2.bf16.msra.mxu0 %v6625_v23  ;;  %v5137_v23 = vld [vmem:[%s8469_s23 + $0x40] sm:$0xff] }
 0xccf   :  { %5096 = vmatprep.subr.bf16.mxu0 %v6630_v24  ;;  %v5152_v24 = vld [vmem:[%s8469_s23 + $0xb8] sm:$0xff] }
 0xcd2   :  { %5097 = vmatpush2.bf16.msra.mxu0 %v6628_v36  ;;  %v5135_v36 = vld [vmem:[%s8469_s23 + $0x30] sm:$0xff] }
 0xcd3   :  { %5098 = vmatprep.subr.bf16.mxu0 %v6633_v37  ;;  %v5150_v37 = vld [vmem:[%s8469_s23 + $0xa8] sm:$0xff] }
 0xcd6   :  { %5099 = vmatpush2.bf16.msra.mxu0 %v6631_v40 }
 0xcd7   :  { %5100 = vmatprep.subr.bf16.mxu0 %v6636_v41 }
 0xcda   :  { %5101 = vmatpush2.bf16.msra.mxu0 %v6634_v43  ;;  %v5133_v43 = vld [vmem:[%s8469_s23 + $0x20] sm:$0xff] }
 0xcdb   :  { %5102 = vmatprep.subr.bf16.mxu0 %v6639_v44  ;;  %v5148_v44 = vld [vmem:[%s8469_s23 + $0x98] sm:$0xff] }
 0xcde   :  { %5103 = vmatpush2.bf16.msra.mxu0 %v6637_v30  ;;  %v5131_v30 = vld [vmem:[%s8469_s23 + $0x10] sm:$0xff] }
 0xcdf   :  { %6064 = vmatprep.subr.mxu0 %v7009_v1 }
 0xce1   :  { %5105 = vmatmul.mubr.bf16.vlgmr.msra.gmra.mxu0 %v4675_v48  ;;  %v5130_v48 = vld [vmem:[%s8469_s23 + $0x8] sm:$0xff] }
 0xce2   :  { %6080 = vmatprep.mubr.msk.f32.mxu0 %vm7010_vm0, %v7009_v1  ;;  %6065 = vmatpush3.msra.mxu0 %v5246_v51 }
 0xce3   :  { %6066 = vmatprep.subr.mxu0 %v7009_v1 }
 0xce4   :  { %6067 = vmatpush3.msra.mxu0 %v5245_v52 }
 0xce5   :  { %6068 = vmatprep.subr.mxu0 %v7009_v1 }
 0xce6   :  { %6069 = vmatpush3.msra.mxu0 %v5244_v54 }
 0xce7   :  { %6070 = vmatprep.subr.mxu0 %v7009_v1 }
 0xd40   :  { %v4554_v17 = vpop.f32.mrf.mxu0  ;;  %v4595_v55 = vpop.f32.mrf.mxu1 }
 0xd41   :  { %v4555_v29 = vadd.f32 %v4554_v17, %v4154_v33  ;;  %v5113_v17 = vld [vmem:[%s8468_s22] sm:$0x3] }
 0xd42   :  { %v4556_v56 = vpop.f32.mrf.mxu0  ;;  %v4597_v57 = vpop.f32.mrf.mxu1 }
 0xd43   :  { %v4557_v53 = vadd.f32 %v4556_v56, %v4158_v63  ;;  %v4596_v0 = vadd.f32 %v4595_v55, %v4555_v29  ;;  %v5118_v56 = vrot.slane %v5113_v17, %v7775_v27  ;;  %v5242_v27 = vld [vmem:[%s8471_s25 + $0x18] sm:$0xff] }
 0xd44   :  { %v4558_v58 = vpop.f32.mrf.mxu0  ;;  %v4599_v59 = vpop.f32.mrf.mxu1 }
 0xd45   :  { %v4598_v3 = vadd.f32 %v4597_v57, %v4557_v53  ;;  %v5122_v58 = vrot.slane %v5113_v17, %v7781_v34  ;;  %v5241_v34 = vld [vmem:[%s8471_s25 + $0x10] sm:$0xff] }
 0xd46   :  { %v4559_v60 = vpop.f32.mrf.mxu0  ;;  %v4600_v61 = vpop.f32.mrf.mxu1 }
 0xd61   :  { %v4636_v2 = vpop.f32.mrf.mxu0 }
 0xd62   :  { %v4637_v4 = vadd.f32 %v4636_v2, %v4596_v0  ;;  %v5243_v0 = vld [vmem:[%s8471_s25 + $0x20] sm:$0xff]  ;;  %v5240_v2 = vld [vmem:[%s8471_s25 + $0x8] sm:$0xff] }
 0xd63   :  { %v4638_v5 = vpop.f32.mrf.mxu0  ;;  %6071 = vmatpush3.msra.mxu0 %v5243_v0 }
 0xd64   :  { %v4639_v21 = vadd.f32 %v4638_v5, %v4598_v3  ;;  %v4709_v12 = vpack.c.bf16 %v4637_v4, %v4637_v4  ;;  %6072 = vmatprep.subr.mxu0 %v7009_v1  ;;  %v5239_v3 = vld [vmem:[%s8471_s25] sm:$0xff] }
 0xd65   :  { %v4640_v6 = vpop.f32.mrf.mxu0  ;;  %6073 = vmatpush3.msra.mxu0 %v5242_v27  ;;  %v5888_v5 = vld [vmem:[%s8470_s24] ss:$0 sm:$0xff] }
 0xd66   :  { %v4710_v8 = vpack.c.bf16 %v4639_v21, %v4639_v21  ;;  %6074 = vmatprep.subr.mxu0 %v7009_v1 }
 0xd67   :  { %v4641_v9 = vpop.f32.mrf.mxu0  ;;  %6075 = vmatpush3.msra.mxu0 %v5241_v34 }
 0xd68   :  { %4903 = vmatprep.mubr.bf16.mxu1 %v4710_v8  ;;  %6076 = vmatprep.subr.mxu0 %v7009_v1  ;;  %v5889_v9 = vld [vmem:[#allocation3] ss:$0 sm:$0xff] }
 0xd69   :  { %4904 = vmatmul.mubr.bf16.vlgmr.msra.gmra.mxu1 %v4709_v12  ;;  %6077 = vmatpush3.msra.mxu0 %v5240_v2 }
 0xd6a   :  { %5948 = vmatpush3.msra.mxu1 %v5144_v10  ;;  %6078 = vmatprep.subr.mxu0 %v7009_v1 }
 0xd6b   :  { %5949 = vmatprep.subr.mxu1 %v5159_v7  ;;  %6079 = vmatpush3.msra.mxu0 %v5239_v3 }
 0xd6c   :  { %5950 = vmatpush3.msra.mxu1 %v5143_v11 }
 0xd6d   :  { %5951 = vmatprep.subr.mxu1 %v5158_v13 }
 0xd6e   :  { %5952 = vmatpush3.msra.mxu1 %v5142_v14 }
 0xd6f   :  { %5953 = vmatprep.subr.mxu1 %v5157_v32 }
 0xd70   :  { %5954 = vmatpush3.msra.mxu1 %v5141_v15 }
 0xd71   :  { %5955 = vmatprep.subr.mxu1 %v5156_v16 }
 0xd72   :  { %5956 = vmatpush3.msra.mxu1 %v5140_v28 }
 0xd73   :  { %5957 = vmatprep.subr.mxu1 %v5155_v18 }
 0xd74   :  { %5958 = vmatpush3.msra.mxu1 %v5139_v19 }
 0xd75   :  { %5959 = vmatprep.subr.mxu1 %v5154_v20 }
 0xd76   :  { %5960 = vmatpush3.msra.mxu1 %v5138_v35 }
 0xd77   :  { %5961 = vmatprep.subr.mxu1 %v5153_v22 }
 0xd78   :  { %5962 = vmatpush3.msra.mxu1 %v5137_v23 }
 0xd79   :  { %5963 = vmatprep.subr.mxu1 %v5152_v24 }
 0xd7a   :  { %5964 = vmatpush3.msra.mxu1 %v5136_v25 }
 0xd7b   :  { %5965 = vmatprep.subr.mxu1 %v5151_v26 }
 0xd7c   :  { %5966 = vmatpush3.msra.mxu1 %v5135_v36 }
 0xd7d   :  { %5967 = vmatprep.subr.mxu1 %v5150_v37 }
 0xd7e   :  { %5968 = vmatpush3.msra.mxu1 %v5134_v38 }
 0xd7f   :  { %5969 = vmatprep.subr.mxu1 %v5149_v42 }
 0xd80   :  { %5970 = vmatpush3.msra.mxu1 %v5133_v43 }
 0xd81   :  { %5971 = vmatprep.subr.mxu1 %v5148_v44 }
 0xd82   :  { %5972 = vmatpush3.msra.mxu1 %v5132_v45 }
 0xd83   :  { %5973 = vmatprep.subr.mxu1 %v5147_v46 }
 0xd84   :  { %5974 = vmatpush3.msra.mxu1 %v5131_v30 }
 0xd85   :  { %5975 = vmatprep.subr.mxu1 %v5146_v47 }
 0xd86   :  { %5976 = vmatpush3.msra.mxu1 %v5130_v48 }
 0xd87   :  { %5977 = vmatprep.subr.mxu1 %v5145_v49 }
 0xd88   :  { %5978 = vmatpush3.msra.mxu1 %v5129_v50 }
 0xda1   :  { %v5106_v39 = vpop.f32.mrf.mxu0 }
 0xda3   :  { %v5108_v40 = vpop.f32.mrf.mxu0 }
 0xda5   :  { %v5110_v41 = vpop.f32.mrf.mxu0 }
 0xda7   :  { %v5111_v31 = vpop.f32.mrf.mxu0 }
 0xe29   :  { %v4905_v55 = vpop.f32.mrf.mxu1 }
 0xe2a   :  { %v5107_v57 = vadd.f32 %v5106_v39, %v4905_v55 }
 0xe2b   :  { %v4907_v59 = vpop.f32.mrf.mxu1 }
 0xe2c   :  { %v5109_v60 = vadd.f32 %v5108_v40, %v4907_v59  ;;  %v5125_v61 = vadd.f32 %v5118_v56, %v5107_v57 }
 0xe2d   :  { %v4909_v62 = vpop.f32.mrf.mxu1 }
 0xe2e   :  { %v5126_v33 = vadd.f32 %v5122_v58, %v5109_v60  ;;  %v5127_v53 = vmax.f32 %v5125_v61, 0.0 }
 0xe2f   :  { %v4910_v63 = vpop.f32.mrf.mxu1 }
 0xe30   :  { %v5128_v29 = vmax.f32 %v5126_v33, 0.0 }
 0xe32   :  { %5232 = vmatprep.mubr.f32.mxu1 %v5128_v29 }
 0xe33   :  { %5233 = vmatmul.mubr.f32.vlgmr.msra.gmra.mxu1 %v5127_v53 }
 0xef3   :  { %v5979_v4 = vpop.f32.mrf.mxu1 }
 0xef5   :  { %v5980_v21 = vpop.f32.mrf.mxu1 }
 0xef6   :  { %v5981_v6 = vadd.f32 %v5980_v21, %v5979_v4 }
 0xef8   :  { %v5235_v8 = vadd.f32 %v5981_v6, %v5888_v5 }
 0xefa   :  { %v5238_v12 = vmax.f32 %v5235_v8, 0.0 }
 0xefc   :  { %6081 = vmatmul.mubr.msk.f32.vlgmr.msra.gmra.mxu0 %vm5254_vm9, %v5238_v12 }
 0xfbc   :  { %v5324_v10 = vpop.f32.mrf.mxu0 }
 0xfbd   :  { %v5325_v7 = vadd.f32 %v5889_v9, %v5324_v10 }
 0xfbe   :  { %v6082_v11 = vpop.f32.mrf.mxu0 }
 0xfbf   :  { %5329 = vst.msk [vmem:[%s8473_s27] sm:$0x3] %vm5328_vm10, %v5325_v7 }
 0xfc0   :  { %5334 = vsyncpa [#allocation5], 1 }
 0xfc1   :  { %5335 = vsyncpa [#allocation7], 1 }
 0xfc2   :  { %5336 = vsyncpa [#allocation10], 1 }
 0xfc3   :  { %5337 = vsyncpa [#allocation13], 1 }
 0xfc4   :  { %5338 = vsyncpa [#allocation16], 1 }
 0xfc5   :  { %5339 = vsyncpa [#allocation19], 1 }
 0xfc6   :  { %5340 = vsyncpa [#allocation22], 1 }

</bundles_post_ra>
